<compile_context>
chip_gen: v7x
topology: tpu7x:2x2x1
jax: 0.10.0
libtpu: 0.0.40
codegen_flags: <defaults>
</compile_context>

<pallas_src>
import jax
import jax.numpy as jnp
from jax.experimental import pallas as pl
from jax.experimental.pallas import tpu as pltpu


def _leaky_relu(x, slope=0.2):
    # max(x, slope*x) == LeakyReLU(slope) for 0 < slope < 1
    return jnp.maximum(x, slope * x)


def _make_kernel(compute_dtype):
    """Kernel factory: MXU operands in `compute_dtype`, accumulation + adds in f32."""

    def kernel(x0_ref, x1_ref, x2_ref, x3_ref,
               w0_ref, b0_ref, w1_ref, b1_ref, w2_ref, b2_ref, w3_ref, b3_ref,
               out_ref):
        f32 = jnp.float32
        cd = compute_dtype

        # layer 0: lrelu(ln0(x3) + x2)
        h = jnp.dot(x3_ref[...].astype(cd), w0_ref[...], preferred_element_type=f32)
        h = _leaky_relu(h + b0_ref[...] + x2_ref[...].astype(f32))

        # layer 1: lrelu(ln1(h) + x1)
        h = jnp.dot(h.astype(cd), w1_ref[...], preferred_element_type=f32)
        h = _leaky_relu(h + b1_ref[...] + x1_ref[...].astype(f32))

        # layer 2: lrelu(ln2(h) + x0)
        h = jnp.dot(h.astype(cd), w2_ref[...], preferred_element_type=f32)
        h = _leaky_relu(h + b2_ref[...] + x0_ref[...].astype(f32))

        # layer 3: lrelu(ln3(h)) -> 1 channel (LeakyReLU applied, as in the PyTorch module)
        h = jnp.dot(h.astype(cd), w3_ref[...], preferred_element_type=f32)
        h = _leaky_relu(h + b3_ref[...])

        out_ref[...] = h.astype(out_ref.dtype)

    return kernel


def decoder_roughness(x0, x1, x2, x3, params, *, tm=512, compute_dtype=jnp.bfloat16):
    """x3:[N,32], x2/x1/x0:[N,256] -> [N,1].  Weights stored [in_features, out_features]."""
    N = x3.shape[0]
    assert tm % 8 == 0, "batch tile must be sublane-aligned (multiple of 8)"

    n_blocks = pl.cdiv(N, tm)          # partial last tile handled by Pallas boundary masking
    cd = compute_dtype

    w0, b0, w1, b1, w2, b2, w3, b3 = params
    ws = [w.astype(cd) for w in (w0, w1, w2, w3)]                           # MXU operands
    bs = [b.reshape(1, -1).astype(jnp.float32) for b in (b0, b1, b2, b3)]   # biases in f32

    full = lambda shape: pl.BlockSpec(shape, lambda i: (0,) * len(shape))

    out = pl.pallas_call(
        _make_kernel(cd),
        out_shape=jax.ShapeDtypeStruct((N, 1), jnp.float32),
        grid_spec=pltpu.PrefetchScalarGridSpec(
            num_scalar_prefetch=0,
            grid=(n_blocks,),
            in_specs=[
                pl.BlockSpec((tm, 256), lambda i: (i, 0)),   # x0
                pl.BlockSpec((tm, 256), lambda i: (i, 0)),   # x1
                pl.BlockSpec((tm, 256), lambda i: (i, 0)),   # x2
                pl.BlockSpec((tm, 32), lambda i: (i, 0)),    # x3
                full((32, 256)), full((1, 256)),             # ln0 (grid-invariant, resident)
                full((256, 256)), full((1, 256)),            # ln1
                full((256, 256)), full((1, 256)),            # ln2
                full((256, 1)), full((1, 1)),                # ln3
            ],
            out_specs=pl.BlockSpec((tm, 1), lambda i: (i, 0)),
        ),
        compiler_params=pltpu.CompilerParams(
            dimension_semantics=("parallel",),
        ),
    )(x0, x1, x2, x3,
      ws[0], bs[0], ws[1], bs[1], ws[2], bs[2], ws[3], bs[3])

    return out


def init_params(key):
    # Deterministic synthetic parameters (same shapes/init style as the PyTorch module).
    ks = jax.random.split(key, 8)

    def lin(kw, kb, fan_in, fan_out):
        bound = 1.0 / jnp.sqrt(fan_in)
        w = jax.random.uniform(kw, (fan_in, fan_out), jnp.float32, -bound, bound)
        b = jax.random.uniform(kb, (1, fan_out), jnp.float32, -bound, bound)
        return w, b

    w0, b0 = lin(ks[0], ks[1], 32, 256)
    w1, b1 = lin(ks[2], ks[3], 256, 256)
    w2, b2 = lin(ks[4], ks[5], 256, 256)
    w3, b3 = lin(ks[6], ks[7], 256, 1)
    return (w0, b0, w1, b1, w2, b2, w3, b3)


def reference(x0, x1, x2, x3, params, compute_dtype=jnp.float32):
    """Pure-JAX reference; emulates the kernel's MXU compute dtype, f32 everywhere else."""
    w0, b0, w1, b1, w2, b2, w3, b3 = params
    f32 = jnp.float32
    cd = compute_dtype
    mm = lambda a, w: jnp.dot(a.astype(cd), w.astype(cd), preferred_element_type=f32)
    b0, b1, b2, b3 = (b.reshape(1, -1).astype(f32) for b in (b0, b1, b2, b3))
    h = _leaky_relu(mm(x3, w0) + b0 + x2.astype(f32))
    h = _leaky_relu(mm(h, w1) + b1 + x1.astype(f32))
    h = _leaky_relu(mm(h, w2) + b2 + x0.astype(f32))
    h = _leaky_relu(mm(h, w3) + b3)
    return h


if __name__ == "__main__":
    key = jax.random.PRNGKey(0)
    kp, k0, k1, k2, k3 = jax.random.split(key, 5)

    N = 384  # deliberately not a multiple of tm to exercise the masked partial tail tile
    params = init_params(kp)
    x0 = jax.random.normal(k0, (N, 256), jnp.float32)
    x1 = jax.random.normal(k1, (N, 256), jnp.float32)
    x2 = jax.random.normal(k2, (N, 256), jnp.float32)
    x3 = jax.random.normal(k3, (N, 32), jnp.float32)

    # 1) float32 MXU path: strict numerical check against the plain-JAX reference.
    out_f32 = decoder_roughness(x0, x1, x2, x3, params, tm=256, compute_dtype=jnp.float32)
    out_f32 = jax.block_until_ready(out_f32)
    ref_f32 = reference(x0, x1, x2, x3, params, jnp.float32)
    assert out_f32.shape == (N, 1)
    assert jnp.allclose(out_f32, ref_f32, atol=1e-4, rtol=1e-4)

    # 2) bf16 MXU path (production default): checked against a bf16-matmul-emulating reference.
    out_bf16 = decoder_roughness(x0, x1, x2, x3, params, tm=256, compute_dtype=jnp.bfloat16)
    out_bf16 = jax.block_until_ready(out_bf16)
    ref_bf16 = reference(x0, x1, x2, x3, params, jnp.bfloat16)
    assert out_bf16.shape == (N, 1)
    assert jnp.allclose(out_bf16, ref_bf16, atol=2e-2, rtol=2e-2)

    print("KERNEL_OK")
</pallas_src>

<mosaic_0001>
module attributes {stable_mosaic.version = 11 : i64} {
  func.func @kernel(%arg0: i32, %arg1: memref<256x256xf32, #tpu.memory_space<vmem>>, %arg2: memref<256x256xf32, #tpu.memory_space<vmem>>, %arg3: memref<256x256xf32, #tpu.memory_space<vmem>>, %arg4: memref<256x32xf32, #tpu.memory_space<vmem>>, %arg5: memref<32x256xf32, #tpu.memory_space<vmem>>, %arg6: memref<1x256xf32, #tpu.memory_space<vmem>>, %arg7: memref<256x256xf32, #tpu.memory_space<vmem>>, %arg8: memref<1x256xf32, #tpu.memory_space<vmem>>, %arg9: memref<256x256xf32, #tpu.memory_space<vmem>>, %arg10: memref<1x256xf32, #tpu.memory_space<vmem>>, %arg11: memref<256x1xf32, #tpu.memory_space<vmem>>, %arg12: memref<1x1xf32, #tpu.memory_space<vmem>>, %arg13: memref<256x1xf32, #tpu.memory_space<vmem>>) attributes {dimension_semantics = [#tpu.dimension_semantics<parallel>], iteration_bounds = array<i64: 2>, scalar_prefetch = 0 : i64, scratch_operands = 0 : i64, tpu.core_type = #tpu.core_type<tc>, window_params = [{transform_indices = @transform_0, window_bounds = array<i64: 256, 256>}, {transform_indices = @transform_1, window_bounds = array<i64: 256, 256>}, {transform_indices = @transform_2, window_bounds = array<i64: 256, 256>}, {transform_indices = @transform_3, window_bounds = array<i64: 256, 32>}, {pipeline_mode = #tpu.pipeline_mode<synchronous>, transform_indices = @transform_4, window_bounds = array<i64: 32, 256>}, {pipeline_mode = #tpu.pipeline_mode<synchronous>, transform_indices = @transform_5, window_bounds = array<i64: 1, 256>}, {pipeline_mode = #tpu.pipeline_mode<synchronous>, transform_indices = @transform_6, window_bounds = array<i64: 256, 256>}, {pipeline_mode = #tpu.pipeline_mode<synchronous>, transform_indices = @transform_7, window_bounds = array<i64: 1, 256>}, {pipeline_mode = #tpu.pipeline_mode<synchronous>, transform_indices = @transform_8, window_bounds = array<i64: 256, 256>}, {pipeline_mode = #tpu.pipeline_mode<synchronous>, transform_indices = @transform_9, window_bounds = array<i64: 1, 256>}, {pipeline_mode = #tpu.pipeline_mode<synchronous>, transform_indices = @transform_10, window_bounds = array<i64: 256, 1>}, {pipeline_mode = #tpu.pipeline_mode<synchronous>, transform_indices = @transform_11, window_bounds = array<i64: 1, 1>}, {transform_indices = @transform_12, window_bounds = array<i64: 256, 1>}]} {
    %c0 = arith.constant 0 : index
    %c0_0 = arith.constant 0 : index
    %0 = vector.load %arg4[%c0, %c0_0] : memref<256x32xf32, #tpu.memory_space<vmem>>, vector<256x32xf32>
    %c0_1 = arith.constant 0 : index
    %c0_2 = arith.constant 0 : index
    %1 = vector.load %arg5[%c0_1, %c0_2] : memref<32x256xf32, #tpu.memory_space<vmem>>, vector<32x256xf32>
    %cst = arith.constant dense<0.000000e+00> : vector<256x256xf32>
    %2 = tpu.matmul %0, %1, %cst {dimension_numbers = #tpu.dot_dimension_numbers<[1], [0], [0], [1], [0, 0, 1, 1], [], []>} : vector<256x32xf32>, vector<32x256xf32>, vector<256x256xf32> -> vector<256x256xf32>
    %c0_3 = arith.constant 0 : index
    %c0_4 = arith.constant 0 : index
    %3 = vector.load %arg6[%c0_3, %c0_4] : memref<1x256xf32, #tpu.memory_space<vmem>>, vector<1x256xf32>
    %4 = vector.broadcast %3 : vector<1x256xf32> to vector<256x256xf32>
    %5 = arith.addf %2, %4 : vector<256x256xf32>
    %c0_5 = arith.constant 0 : index
    %c0_6 = arith.constant 0 : index
    %6 = vector.load %arg3[%c0_5, %c0_6] : memref<256x256xf32, #tpu.memory_space<vmem>>, vector<256x256xf32>
    %7 = arith.addf %5, %6 : vector<256x256xf32>
    %cst_7 = arith.constant 2.000000e-01 : f32
    %8 = vector.broadcast %cst_7 : f32 to vector<256x256xf32>
    %9 = arith.mulf %8, %7 : vector<256x256xf32>
    %10 = arith.maximumf %7, %9 : vector<256x256xf32>
    %c0_8 = arith.constant 0 : index
    %c0_9 = arith.constant 0 : index
    %11 = vector.load %arg7[%c0_8, %c0_9] : memref<256x256xf32, #tpu.memory_space<vmem>>, vector<256x256xf32>
    %cst_10 = arith.constant dense<0.000000e+00> : vector<256x256xf32>
    %12 = tpu.matmul %10, %11, %cst_10 {dimension_numbers = #tpu.dot_dimension_numbers<[1], [0], [0], [1], [0, 0, 1, 1], [], []>} : vector<256x256xf32>, vector<256x256xf32>, vector<256x256xf32> -> vector<256x256xf32>
    %c0_11 = arith.constant 0 : index
    %c0_12 = arith.constant 0 : index
    %13 = vector.load %arg8[%c0_11, %c0_12] : memref<1x256xf32, #tpu.memory_space<vmem>>, vector<1x256xf32>
    %14 = vector.broadcast %13 : vector<1x256xf32> to vector<256x256xf32>
    %15 = arith.addf %12, %14 : vector<256x256xf32>
    %c0_13 = arith.constant 0 : index
    %c0_14 = arith.constant 0 : index
    %16 = vector.load %arg2[%c0_13, %c0_14] : memref<256x256xf32, #tpu.memory_space<vmem>>, vector<256x256xf32>
    %17 = arith.addf %15, %16 : vector<256x256xf32>
    %cst_15 = arith.constant 2.000000e-01 : f32
    %18 = vector.broadcast %cst_15 : f32 to vector<256x256xf32>
    %19 = arith.mulf %18, %17 : vector<256x256xf32>
    %20 = arith.maximumf %17, %19 : vector<256x256xf32>
    %c0_16 = arith.constant 0 : index
    %c0_17 = arith.constant 0 : index
    %21 = vector.load %arg9[%c0_16, %c0_17] : memref<256x256xf32, #tpu.memory_space<vmem>>, vector<256x256xf32>
    %cst_18 = arith.constant dense<0.000000e+00> : vector<256x256xf32>
    %22 = tpu.matmul %20, %21, %cst_18 {dimension_numbers = #tpu.dot_dimension_numbers<[1], [0], [0], [1], [0, 0, 1, 1], [], []>} : vector<256x256xf32>, vector<256x256xf32>, vector<256x256xf32> -> vector<256x256xf32>
    %c0_19 = arith.constant 0 : index
    %c0_20 = arith.constant 0 : index
    %23 = vector.load %arg10[%c0_19, %c0_20] : memref<1x256xf32, #tpu.memory_space<vmem>>, vector<1x256xf32>
    %24 = vector.broadcast %23 : vector<1x256xf32> to vector<256x256xf32>
    %25 = arith.addf %22, %24 : vector<256x256xf32>
    %c0_21 = arith.constant 0 : index
    %c0_22 = arith.constant 0 : index
    %26 = vector.load %arg1[%c0_21, %c0_22] : memref<256x256xf32, #tpu.memory_space<vmem>>, vector<256x256xf32>
    %27 = arith.addf %25, %26 : vector<256x256xf32>
    %cst_23 = arith.constant 2.000000e-01 : f32
    %28 = vector.broadcast %cst_23 : f32 to vector<256x256xf32>
    %29 = arith.mulf %28, %27 : vector<256x256xf32>
    %30 = arith.maximumf %27, %29 : vector<256x256xf32>
    %c0_24 = arith.constant 0 : index
    %c0_25 = arith.constant 0 : index
    %31 = vector.load %arg11[%c0_24, %c0_25] : memref<256x1xf32, #tpu.memory_space<vmem>>, vector<256x1xf32>
    %cst_26 = arith.constant dense<0.000000e+00> : vector<256x1xf32>
    %32 = tpu.matmul %30, %31, %cst_26 {dimension_numbers = #tpu.dot_dimension_numbers<[1], [0], [0], [1], [0, 0, 1, 1], [], []>} : vector<256x256xf32>, vector<256x1xf32>, vector<256x1xf32> -> vector<256x1xf32>
    %c0_27 = arith.constant 0 : index
    %c0_28 = arith.constant 0 : index
    %33 = vector.load %arg12[%c0_27, %c0_28] : memref<1x1xf32, #tpu.memory_space<vmem>>, vector<1x1xf32>
    %34 = vector.broadcast %33 : vector<1x1xf32> to vector<256x1xf32>
    %35 = arith.addf %32, %34 : vector<256x1xf32>
    %cst_29 = arith.constant 2.000000e-01 : f32
    %36 = vector.broadcast %cst_29 : f32 to vector<256x1xf32>
    %37 = arith.mulf %36, %35 : vector<256x1xf32>
    %38 = arith.maximumf %35, %37 : vector<256x1xf32>
    %c0_30 = arith.constant 0 : index
    %c0_31 = arith.constant 0 : index
    %39 = vector.load %arg13[%c0_30, %c0_31] : memref<256x1xf32, #tpu.memory_space<vmem>>, vector<256x1xf32>
    tpu.vector_store %arg13[%c0_30, %c0_31], %38 {strides = array<i32>} : memref<256x1xf32, #tpu.memory_space<vmem>>, vector<256x1xf32>,
    return
  }
  func.func @transform_0(%arg0: i32) -> (i32, i32) {
    %c0_i32 = arith.constant 0 : i32
    %c0_i32_0 = arith.constant 0 : i32
    return %arg0, %c0_i32 : i32, i32
  }
  func.func @transform_1(%arg0: i32) -> (i32, i32) {
    %c0_i32 = arith.constant 0 : i32
    %c0_i32_0 = arith.constant 0 : i32
    return %arg0, %c0_i32 : i32, i32
  }
  func.func @transform_2(%arg0: i32) -> (i32, i32) {
    %c0_i32 = arith.constant 0 : i32
    %c0_i32_0 = arith.constant 0 : i32
    return %arg0, %c0_i32 : i32, i32
  }
  func.func @transform_3(%arg0: i32) -> (i32, i32) {
    %c0_i32 = arith.constant 0 : i32
    %c0_i32_0 = arith.constant 0 : i32
    return %arg0, %c0_i32 : i32, i32
  }
  func.func @transform_4(%arg0: i32) -> (i32, i32) {
    %c0_i32 = arith.constant 0 : i32
    %c0_i32_0 = arith.constant 0 : i32
    %c0_i32_1 = arith.constant 0 : i32
    return %c0_i32, %c0_i32_0 : i32, i32
  }
  func.func @transform_5(%arg0: i32) -> (i32, i32) {
    %c0_i32 = arith.constant 0 : i32
    %c0_i32_0 = arith.constant 0 : i32
    %c0_i32_1 = arith.constant 0 : i32
    return %c0_i32, %c0_i32_0 : i32, i32
  }
  func.func @transform_6(%arg0: i32) -> (i32, i32) {
    %c0_i32 = arith.constant 0 : i32
    %c0_i32_0 = arith.constant 0 : i32
    %c0_i32_1 = arith.constant 0 : i32
    return %c0_i32, %c0_i32_0 : i32, i32
  }
  func.func @transform_7(%arg0: i32) -> (i32, i32) {
    %c0_i32 = arith.constant 0 : i32
    %c0_i32_0 = arith.constant 0 : i32
    %c0_i32_1 = arith.constant 0 : i32
    return %c0_i32, %c0_i32_0 : i32, i32
  }
  func.func @transform_8(%arg0: i32) -> (i32, i32) {
    %c0_i32 = arith.constant 0 : i32
    %c0_i32_0 = arith.constant 0 : i32
    %c0_i32_1 = arith.constant 0 : i32
    return %c0_i32, %c0_i32_0 : i32, i32
  }
  func.func @transform_9(%arg0: i32) -> (i32, i32) {
    %c0_i32 = arith.constant 0 : i32
    %c0_i32_0 = arith.constant 0 : i32
    %c0_i32_1 = arith.constant 0 : i32
    return %c0_i32, %c0_i32_0 : i32, i32
  }
  func.func @transform_10(%arg0: i32) -> (i32, i32) {
    %c0_i32 = arith.constant 0 : i32
    %c0_i32_0 = arith.constant 0 : i32
    %c0_i32_1 = arith.constant 0 : i32
    return %c0_i32, %c0_i32_0 : i32, i32
  }
  func.func @transform_11(%arg0: i32) -> (i32, i32) {
    %c0_i32 = arith.constant 0 : i32
    %c0_i32_0 = arith.constant 0 : i32
    %c0_i32_1 = arith.constant 0 : i32
    return %c0_i32, %c0_i32_0 : i32, i32
  }
  func.func @transform_12(%arg0: i32) -> (i32, i32) {
    %c0_i32 = arith.constant 0 : i32
    %c0_i32_0 = arith.constant 0 : i32
    return %arg0, %c0_i32 : i32, i32
  }
}

</mosaic_0001>

<bundles_post_ra>
// kernel: tpu_custom_call.1
= control target key start
LH: loop header
LB: loop body
LE: loop exit
PB: predicated region body
PF: predicated region fallthrough
CT: control target
= control target key end

     0   :  { %s5315_s0 = inlined_call_operand.hbm [shape: f32[384,256], index: 0, kind: input, shape index: {}]   ;;  %s5316_s1 = inlined_call_operand.hbm [shape: f32[384,256], index: 1, kind: input, shape index: {}]   ;;  %s5317_s2 = inlined_call_operand.hbm [shape: f32[384,256], index: 2, kind: input, shape index: {}]   ;;  %s5318_s3 = inlined_call_operand.vmem [shape: f32[384,32], index: 3, kind: input, shape index: {}]   ;;  %s5319_s4 = inlined_call_operand.vmem [shape: f32[32,256], index: 4, kind: input, shape index: {}]   ;;  %s5320_s5 = inlined_call_operand.vmem [shape: f32[1,256], index: 5, kind: input, shape index: {}]   ;;  %s5321_s6 = inlined_call_operand.vmem [shape: f32[256,256], index: 6, kind: input, shape index: {}]   ;;  %s5322_s7 = inlined_call_operand.vmem [shape: f32[1,256], index: 7, kind: input, shape index: {}]   ;;  %s5323_s8 = inlined_call_operand.hbm [shape: f32[256,256], index: 8, kind: input, shape index: {}]   ;;  %s5324_s9 = inlined_call_operand.vmem [shape: f32[1,256], index: 9, kind: input, shape index: {}]   ;;  %s5325_s10 = inlined_call_operand.vmem [shape: f32[256,1], index: 10, kind: input, shape index: {}]   ;;  %s5326_s11 = inlined_call_operand.<no memory space> [shape: f32[1,1], index: 11, kind: input, shape index: {}]   ;;  %s5327_s12 = inlined_call_operand.vmem [shape: f32[384,1], index: 12, kind: output, shape index: {}]  }
   0x1   :  { %5333 = sst [smem:[#allocation16_spill]] %s5315_s0  ;;  %v17_v0 = vstv %s5326_s11 }
   0x2   :  { %5334 = sst [smem:[#allocation17_spill]] %s5323_s8  ;;  %18 = vst [vmem:[#allocation2] sm:$0x1] %v17_v0 }
   0x3   :  { %5335 = sst [smem:[#allocation18_spill]] %s5327_s12 }
   0x4   :  { %19 = vsyncpa [#allocation4], 0 }
   0x5   :  { %21 = vsyncpa [#allocation4 + $0x1], 0 }
   0x6   :  { %22 = vsyncpa [#allocation6], 0 }
   0x7   :  { %24 = vsyncpa [#allocation6 + $0x1], 0 }
   0x8   :  { %25 = vsyncpa [#allocation9], 0  ;;  %s3966_s23 = smov 0   ;;  %s3968_s24 = smov 0  }
   0x9   :  { %s3970_s25 = smov 0   ;;  %s3972_s26 = smov 0  }
   0xa LB: > { %s3985_s11 = sadd.s32 4294967295, %s3850_s26   ;;  %s3988_s27 = sadd.s32 1, %s3850_s26   ;;  %s3850_s26 = sphi %s3972_s26, %s5359_s26   ;;  %s3846_s25 = sphi %s3970_s25, %s5363_s25   ;;  %s3842_s24 = sphi %s3968_s24, %s5362_s24   ;;  %s3838_s23 = sphi %s3966_s23, %s5361_s23  }
   0xb   : > { %5336 = sst [smem:[#allocation14_spill]] %s3988_s27  ;;  %s35_s28 = ssub.s32 %s3850_s26, %s3988_s27 }
   0xc   : > { %s38_s29 = sadd.s32 1, %s3846_s25  ;;  %p36_p0 = scmp.eq.s32.totalorder %s35_s28, 0 }
   0xd   : > { %p45_p1 = scmp.ne.s32.totalorder %s3846_s25, %s3842_s24  ;;  %p46_p2 = scmp.eq.s32.totalorder %s3850_s26, 0 }
   0xe   : > { %p51_p3 = scmp.ne.s32.totalorder %s3842_s24, %s3838_s23  ;;  %p5328_p5 = scmp.eq.s32.totalorder %s3985_s11, 0 }
   0xf   : > { %s3998_s30 = scalar_select %p36_p0, %s3846_s25, %s38_s29  }
  0x10   : > { %p4000_p4 = por %p46_p2, %p45_p1  ;;  %p321_p6 = scmp.eq.s32.totalorder %s3985_s11, 1 }
  0x11   : > { %5337 = sst [smem:[#allocation15_spill]] %s3998_s30  ;;  %p3228_p7 = scmp.ge.s32.totalorder %s3850_s26, 1 }
  0x12   : > { %s5338_s13 = scalar_select %p4000_p4, 1, 0 }
  0x13   : > { %p4009_p8 = por %p5328_p5, %p51_p3  ;;  %p334_p9 = scmp.lt.s32.totalorder %s3850_s26, 3 }
  0x14   : > { %p4014_p10 = por %p321_p6, %p45_p1  ;;  %s3884_s17 = smov [#allocation8]  }
  0x15   : > { %s5339_s14 = scalar_select %p4009_p8, 1, 0 }
  0x16   : > { %s5340_s15 = scalar_select %p4014_p10, 1, 0 }
  0x17   : > { %p4018_p11 = pnand %p3228_p7, %p334_p9  ;;  %s358_s18 = sshll.u32 %s3884_s17, 4  ;;  %s359_s18 = int_to_ptr.vmem [resolvable:$true] %s358_s18 }
  0x18   : > { %s5343_s8 = sld [smem:[#allocation17_spill]] }
  0x19   : > { %s5341_s16 = scalar_select %p4018_p11, 1, 0 }
  0x1a   : > { %p3551_p12 = pneg %p4018_p11 }
  0x1c   : > { %p4026_p13 = pnand %p3551_p12, %p5328_p5 }
  0x1e   : > { %s3664_s22 = scalar_lea.hbm %s5343_s8, 8192  ;;  %p3666_p1 = pneg %p4026_p13 }
  0x1f   : > { %p3665_p0 = scmp.ne.s32.totalorder %s5343_s8, %s3664_s22  ;;  %p3671_p6 = scmp.lt.u32.totalorder %s3664_s22, %s5343_s8 }
  0x21   : > { %p3667_p2 = pnand %p3666_p1, %p3665_p0 }
  0x23   : > { %p3668_p3 = pneg %p3667_p2 }
  0x25   : > { %p3673_p7 = pnand %p3671_p6, %p3668_p3 }
  0x27   : > { %3676 = shalt.err (!%p3673_p7)
}
  0x28   : > { %s3677_s30 = scalar_lea.vmem %s359_s18, 8192  ;;  %p3685_p10 = scmp.lt.s32.totalorder %s359_s18, %s359_s18 }
  0x29   : > { %p3678_p9 = scmp.ne.s32.totalorder %s359_s18, %s3677_s30  ;;  %p3686_p8 = scmp.lt.s32.totalorder %s3677_s30, %s3677_s30 }
  0x2b   : > { %p3680_p12 = pnand %p3678_p9, %p3666_p1  ;;  %p3687_p11 = por %p3686_p8, %p3685_p10 }
  0x2d   : > { %p3681_p5 = pneg %p3680_p12 }
  0x2f   : > { %p3688_p4 = pnand %p3687_p11, %p3681_p5 }
  0x31   : > { %3691 = shalt.err (!%p3688_p4)
}
  0x32   : > { %s3885_s20 = smov 256   ;;  %s3886_s21 = smov 16  }
  0x33   : > { %3554 = dma.hbm_to_vmem [thread:$0]  (!%p4026_p13), %s5343_s8, 8192, %s359_s18, [#allocation9], %s3885_s20, %s3885_s20, %s3886_s21  }
  0x34   : > { %p3230_p0 = scmp.ge.s32.totalorder %s3850_s26, 2 }
  0x35   : > { %p5344_p2 = scmp.ne.s32.totalorder (!%p3230_p0), %s5338_s13, 0 }
  0x36   : > { %377 = sbr.rel (%p3230_p0) target bundleno = 175 (0xaf), region = 48 }
  0x3d   : > { %380 = sbr.rel (!%p5344_p2) target bundleno = 101 (0x65), region = 52  ;;  %s381_s30 = sand.u32 (%p5344_p2), 1, %s3846_s25  }
  0x3e   : > { %s3232_s22 = sshll.u32 (%p5344_p2), %s3850_s26, 5  ;;  %s3231_s29 = sshll.u32 (%p5344_p2), %s381_s30, 9 }
  0x3f   : > { %s387_s17 = ssub.s32 (%p5344_p2), 48, %s3232_s22  ;;  %s4054_s23 = scalar_lea.sflag (%p5344_p2), [#allocation4], %s381_s30 }
  0x40   : > { %p388_p4 = scmp.lt.s32.totalorder (%p5344_p2), %s387_s17, 32  ;;  %s385_s18 = scalar_lea.vmem (%p5344_p2), [#allocation3], %s3231_s29 }
  0x44   : > { %s5365_s17 = smov (!%p388_p4, %s387_s17), 32 }
  0x45   : > { %s4051_s27 = sshll.u32 %s5365_s17, 8 }
  0x46   : > { %s393_s19 = ssub.s32 8192, %s4051_s27 }
  0x47   : > { %394 = vsyncadd %s4054_s23, %s393_s19  ;;  %p3235_p5 = scmp.ne.s32.totalorder %s4051_s27, 0  ;;  %s3318_s20 = sshll.u32 %s3850_s26, 13 }
  0x48   : > { %s5345_s0 = sld [smem:[#allocation16_spill]]  ;;  %s400_s30 = sshll.u32 %s385_s18, 4  ;;  %s4064_s30 = int_to_ptr.vmem [resolvable:$true] %s400_s30 }
  0x4e   : > { %s4062_s22 = scalar_lea.hbm %s5345_s0, %s3318_s20  ;;  %s3696_s8 = scalar_lea.hbm %s5345_s0, 12288 }
  0x4f   : > { %s3692_s29 = scalar_lea.hbm %s4062_s22, %s4051_s27  ;;  %p3697_p13 = scmp.lt.u32.totalorder %s4062_s22, %s5345_s0 }
  0x50   : > { %p3693_p8 = scmp.ne.s32.totalorder %s4062_s22, %s3692_s29  ;;  %p3698_p1 = scmp.lt.u32.totalorder %s3696_s8, %s3692_s29 }
  0x51   : > { %p3700_p6 = scmp.lt.u32.totalorder %s3692_s29, %s4062_s22 }
  0x52   : > { %p3694_p10 = pnand %p3693_p8, %p3235_p5  ;;  %p3699_p3 = por %p3698_p1, %p3697_p13 }
  0x54   : > { %p3695_p11 = pneg %p3694_p10  ;;  %p3701_p7 = por %p3700_p6, %p3699_p3 }
  0x56   : > { %p3702_p9 = pnand %p3701_p7, %p3695_p11 }
  0x58   : > { %3705 = shalt.err (!%p3702_p9)
}
  0x59   : > { %s3706_s18 = scalar_lea.vmem %s4064_s30, %s4051_s27  ;;  %s3887_s20 = smov [#allocation3]  }
  0x5a   : > { %p3707_p12 = scmp.ne.s32.totalorder %s4064_s30, %s3706_s18  ;;  %s3710_s28 = sshll.u32 %s3887_s20, 4  ;;  %s3711_s28 = int_to_ptr.vmem [resolvable:$false] %s3710_s28 }
  0x5b   : > { %s3712_s12 = scalar_lea.vmem %s3711_s28, 16384  ;;  %p3713_p4 = scmp.lt.s32.totalorder %s4064_s30, %s3711_s28 }
  0x5c   : > { %p3708_p0 = pnand %p3707_p12, %p3235_p5  ;;  %p3714_p8 = scmp.lt.s32.totalorder %s3712_s12, %s3706_s18 }
  0x5e   : > { %p3709_p2 = pneg %p3708_p0  ;;  %p3715_p10 = por %p3714_p8, %p3713_p4 }
  0x60   : > { %p3716_p13 = pnand %p3715_p10, %p3709_p2 }
  0x62   : > { %3719 = shalt.err (!%p3716_p13)
}
  0x63   : > { %s3888_s8 = smov 256   ;;  %s3889_s29 = smov 16  }
  0x64   : > { %406 = dma.hbm_to_vmem [thread:$0]  (%p3235_p5), %s4062_s22, %s4051_s27, %s4064_s30, %s4054_s23, %s3888_s8, %s3888_s8, %s3889_s29  }
  0x65 PF: > { %p5346_p11 = scmp.ne.s32.totalorder %s5338_s13, 0 }
  0x66   : > { %s410_s17 = sand.u32 (%p5346_p11), 1, %s3850_s26   ;;  %s412_s19 = sand.u32 (%p5346_p11), 1, %s3846_s25  }
  0x67   : > { %409 = sbr.rel (!%p5346_p11) target bundleno = 138 (0x8a), region = 56  ;;  %s3240_s21 = sshll.u32 (%p5346_p11), %s412_s19, 9 }
  0x68   : > { %s3241_s18 = sshll.u32 (%p5346_p11), %s3850_s26, 5  ;;  %s4099_s0 = scalar_lea.sflag (%p5346_p11), [#allocation6], %s410_s17 }
  0x69   : > { %s416_s20 = ssub.s32 (%p5346_p11), 48, %s3241_s18  ;;  %s414_s27 = scalar_lea.vmem (%p5346_p11), [#allocation5], %s3240_s21 }
  0x6a   : > { %p417_p1 = scmp.lt.s32.totalorder (%p5346_p11), %s416_s20, 32 }
  0x6e   : > { %s5367_s20 = smov (!%p417_p1, %s416_s20), 32 }
  0x6f   : > { %s4096_s28 = sshll.u32 %s5367_s20, 8 }
  0x70   : > { %s422_s12 = ssub.s32 8192, %s4096_s28 }
  0x71   : > { %423 = vsyncadd %s4099_s0, %s422_s12  ;;  %p3244_p5 = scmp.ne.s32.totalorder %s4096_s28, 0  ;;  %s3321_s23 = sshll.u32 %s3850_s26, 13 }
  0x72   : > { %s4107_s8 = scalar_lea.hbm %s5316_s1, %s3321_s23  ;;  %s429_s29 = sshll.u32 %s414_s27, 4  ;;  %s4109_s29 = int_to_ptr.vmem [resolvable:$true] %s429_s29 }
  0x73   : > { %s3720_s17 = scalar_lea.hbm %s4107_s8, %s4096_s28  ;;  %s3724_s18 = scalar_lea.hbm %s5316_s1, 12288 }
  0x74   : > { %p3721_p3 = scmp.ne.s32.totalorder %s4107_s8, %s3720_s17  ;;  %p3725_p9 = scmp.lt.u32.totalorder %s4107_s8, %s5316_s1 }
  0x75   : > { %p3726_p12 = scmp.lt.u32.totalorder %s3724_s18, %s3720_s17  ;;  %p3728_p2 = scmp.lt.u32.totalorder %s3720_s17, %s4107_s8 }
  0x76   : > { %p3722_p6 = pnand %p3721_p3, %p3244_p5 }
  0x77   : > { %p3727_p0 = por %p3726_p12, %p3725_p9 }
  0x78   : > { %p3723_p7 = pneg %p3722_p6 }
  0x79   : > { %p3729_p4 = por %p3728_p2, %p3727_p0 }
  0x7b   : > { %p3730_p8 = pnand %p3729_p4, %p3723_p7 }
  0x7d   : > { %3733 = shalt.err (!%p3730_p8)
}
  0x7e   : > { %s3734_s27 = scalar_lea.vmem %s4109_s29, %s4096_s28  ;;  %s3890_s23 = smov [#allocation5]  }
  0x7f   : > { %p3735_p10 = scmp.ne.s32.totalorder %s4109_s29, %s3734_s27  ;;  %s3738_s22 = sshll.u32 %s3890_s23, 4  ;;  %s3739_s22 = int_to_ptr.vmem [resolvable:$false] %s3738_s22 }
  0x80   : > { %s3740_s30 = scalar_lea.vmem %s3739_s22, 16384  ;;  %p3741_p1 = scmp.lt.s32.totalorder %s4109_s29, %s3739_s22 }
  0x81   : > { %p3736_p13 = pnand %p3735_p10, %p3244_p5  ;;  %p3742_p3 = scmp.lt.s32.totalorder %s3740_s30, %s3734_s27 }
  0x83   : > { %p3737_p11 = pneg %p3736_p13  ;;  %p3743_p6 = por %p3742_p3, %p3741_p1 }
  0x85   : > { %p3744_p9 = pnand %p3743_p6, %p3737_p11 }
  0x87   : > { %3747 = shalt.err (!%p3744_p9)
}
  0x88   : > { %s3891_s17 = smov 256   ;;  %s3892_s19 = smov 16  }
  0x89   : > { %435 = dma.hbm_to_vmem [thread:$0]  (%p3244_p5), %s4107_s8, %s4096_s28, %s4109_s29, %s4099_s0, %s3891_s17, %s3891_s17, %s3892_s19  }
  0x8a PF: > { %p5347_p7 = scmp.ne.s32.totalorder %s5338_s13, 0 }
  0x8b   : > { %s439_s21 = sand.u32 (%p5347_p7), 1, %s3850_s26   ;;  %s441_s18 = sand.u32 (%p5347_p7), 1, %s3846_s25  }
  0x8c   : > { %438 = sbr.rel (!%p5347_p7) target bundleno = 175 (0xaf), region = 60  ;;  %s3249_s20 = sshll.u32 (%p5347_p7), %s441_s18, 9 }
  0x8d   : > { %s3250_s12 = sshll.u32 (%p5347_p7), %s3850_s26, 5  ;;  %s4144_s30 = scalar_lea.sflag (%p5347_p7), [#allocation6], %s439_s21 }
  0x8e   : > { %s445_s27 = ssub.s32 (%p5347_p7), 48, %s3250_s12  ;;  %s443_s0 = scalar_lea.vmem (%p5347_p7), [#allocation7], %s3249_s20 }
  0x8f   : > { %p446_p12 = scmp.lt.s32.totalorder (%p5347_p7), %s445_s27, 32 }
  0x93   : > { %s5369_s27 = smov (!%p446_p12, %s445_s27), 32 }
  0x94   : > { %s4141_s23 = sshll.u32 %s5369_s27, 8 }
  0x95   : > { %s451_s22 = ssub.s32 8192, %s4141_s23 }
  0x96   : > { %452 = vsyncadd %s4144_s30, %s451_s22  ;;  %p3253_p5 = scmp.ne.s32.totalorder %s4141_s23, 0  ;;  %s3324_s13 = sshll.u32 %s3850_s26, 13 }
  0x97   : > { %s4152_s29 = scalar_lea.hbm %s5317_s2, %s3324_s13  ;;  %s458_s17 = sshll.u32 %s443_s0, 4  ;;  %s4154_s17 = int_to_ptr.vmem [resolvable:$true] %s458_s17 }
  0x98   : > { %s3748_s19 = scalar_lea.hbm %s4152_s29, %s4141_s23  ;;  %s3752_s26 = scalar_lea.hbm %s5317_s2, 12288 }
  0x99   : > { %p3749_p0 = scmp.ne.s32.totalorder %s4152_s29, %s3748_s19  ;;  %p3753_p8 = scmp.lt.u32.totalorder %s4152_s29, %s5317_s2 }
  0x9a   : > { %p3754_p10 = scmp.lt.u32.totalorder %s3752_s26, %s3748_s19  ;;  %p3756_p11 = scmp.lt.u32.totalorder %s3748_s19, %s4152_s29 }
  0x9b   : > { %p3750_p2 = pnand %p3749_p0, %p3253_p5 }
  0x9c   : > { %p3755_p13 = por %p3754_p10, %p3753_p8 }
  0x9d   : > { %p3751_p4 = pneg %p3750_p2 }
  0x9e   : > { %p3757_p1 = por %p3756_p11, %p3755_p13 }
  0xa0   : > { %p3758_p3 = pnand %p3757_p1, %p3751_p4 }
  0xa2   : > { %3761 = shalt.err (!%p3758_p3)
}
  0xa3   : > { %s3762_s27 = scalar_lea.vmem %s4154_s17, %s4141_s23  ;;  %s3893_s22 = smov [#allocation7]  }
  0xa4   : > { %p3763_p6 = scmp.ne.s32.totalorder %s4154_s17, %s3762_s27  ;;  %s3766_s0 = sshll.u32 %s3893_s22, 4  ;;  %s3767_s0 = int_to_ptr.vmem [resolvable:$false] %s3766_s0 }
  0xa5   : > { %s3768_s13 = scalar_lea.vmem %s3767_s0, 16384  ;;  %p3769_p12 = scmp.lt.s32.totalorder %s4154_s17, %s3767_s0 }
  0xa6   : > { %p3764_p9 = pnand %p3763_p6, %p3253_p5  ;;  %p3770_p0 = scmp.lt.s32.totalorder %s3768_s13, %s3762_s27 }
  0xa8   : > { %p3765_p7 = pneg %p3764_p9  ;;  %p3771_p2 = por %p3770_p0, %p3769_p12 }
  0xaa   : > { %p3772_p8 = pnand %p3771_p2, %p3765_p7 }
  0xac   : > { %3775 = shalt.err (!%p3772_p8)
}
  0xad   : > { %s3894_s28 = smov 256   ;;  %s3895_s8 = smov 16  }
  0xae   : > { %464 = dma.hbm_to_vmem [thread:$0]  (%p3253_p5), %s4152_s29, %s4141_s23, %s4154_s17, %s4144_s30, %s3894_s28, %s3894_s28, %s3895_s8  }
  0xaf PF: > { %p5348_p4 = scmp.ne.s32.totalorder %s5341_s16, 0 }
  0xb0   : > { %s4184_s19 = sand.u32 (!%p5348_p4), 1, %s3842_s24   ;;  %p5349_p10 = scmp.ne.s32.totalorder (!%p5348_p4), %s5339_s14, 0 }
  0xb1   : > { %487 = sbr.rel (%p5348_p4) target bundleno = 1267 (0x4f3), region = 68  ;;  %s3259_s21 = sshll.u32 (!%p5348_p4), %s4184_s19, 9 }
  0xb2   : > { %s490_s18 = scalar_lea.sflag (!%p5348_p4), [#allocation4], %s4184_s19  ;;  %s4188_s26 = scalar_lea.vmem (!%p5348_p4), [#allocation3], %s3259_s21 }
  0xb8   : > { %3825 = dma.done.wait (%p5349_p10), %s490_s18, 8192  }
  0xb9   : > { %3827 = vsyncadd (%p5349_p10), %s490_s18, 4294959104  ;;  %s498_s23 = sand.u32 1, %s3985_s11   ;;  %s4195_s30 = scalar_lea.vmem [#allocation5], %s3259_s21 }
  0xba   : > { %s499_s16 = scalar_lea.sflag [#allocation6], %s498_s23 }
  0xbb   : > { %3829 = dma.done.wait (%p5349_p10), %s499_s16, 16384  }
  0xbc   : > { %3831 = vsyncadd (%p5349_p10), %s499_s16, 4294950912  ;;  %s4201_s29 = scalar_lea.vmem [#allocation7], %s3259_s21  ;;  %p5350_p5 = scmp.eq.s32.totalorder %s3985_s11, 0 }
  0xbe   : > { %3833 = dma.done.wait (%p5350_p5), [#allocation9], 8192   ;;  %p5351_p13 = pmov %p5350_p5 }
  0xbf   : > { %s4208_s17 = sshll.u32 %s3985_s11, 5  ;;  %v3896_v1 = vmov 0.0   ;;  %v644_v2 = vld [vmem:[%s5319_s4 + $0x8] sm:$0xff]  ;;  %v646_v3 = vld [vmem:[%s5319_s4 + $0x18] sm:$0xff]  ;;  %v643_v4 = vld [vmem:[%s5319_s4] sm:$0xff]  ;;  %vm663_vm0 = vcmask 261120  }
  0xc0   : > { %3835 = vsyncadd (%p5351_p13), [#allocation9], 4294959104  ;;  %824 = vmatprep.mubr.f32.mxu0 %v3896_v1  ;;  %p597_p11 = scmp.lt.s32.totalorder %s4208_s17, 47  ;;  %v3328_v5 = vpack.c.bf16 %v646_v3, %v644_v2  ;;  %v645_v6 = vld [vmem:[%s5319_s4 + $0x10] sm:$0xff]  ;;  %v648_v7 = vld [vmem:[%s5319_s4 + $0x28] sm:$0xff]  ;;  %vm2779_vm1 = vcmask 7168  }
  0xc1   : > { %v650_v8 = vld [vmem:[%s5319_s4 + $0x38] sm:$0xff]  ;;  %v3330_v9 = vpack.c.bf16 %v645_v6, %v643_v4  ;;  %v647_v11 = vld [vmem:[%s5319_s4 + $0x20] sm:$0xff]  ;;  %v649_v12 = vld [vmem:[%s5319_s4 + $0x30] sm:$0xff]  ;;  %p5352_p1 = scmp.ne.s32.totalorder %s5340_s15, 0 }
  0xc2   : > { %s598_s20 = scalar_select %p597_p11, %s4208_s17, 47  ;;  %v3332_v10 = vpack.c.bf16 %v650_v8, %v648_v7  ;;  %3329 = vmatprep.subr.bf16.mxu0 %v3328_v5  ;;  %v3334_v13 = vpack.c.bf16 %v649_v12, %v647_v11  ;;  %v1274_v16 = vld [vmem:[%s5321_s6 + $0x8] sm:$0xff]  ;;  %v1276_v17 = vld [vmem:[%s5321_s6 + $0x18] sm:$0xff]  ;;  %v1273_v19 = vld [vmem:[%s5321_s6] sm:$0xff] }
  0xc3   : > { %3331 = vmatpush1.bf16.msra.mxu0 %v3330_v9  ;;  %v3336_v18 = vpack.c.bf16 %v1276_v17, %v1274_v16  ;;  %v1275_v20 = vld [vmem:[%s5321_s6 + $0x10] sm:$0xff]  ;;  %v1278_v21 = vld [vmem:[%s5321_s6 + $0x28] sm:$0xff]  ;;  %v1280_v23 = vld [vmem:[%s5321_s6 + $0x38] sm:$0xff] }
  0xc4   : > { %s3265_s0 = sshll.u32 %s598_s20, 3  ;;  %3333 = vmatprep.subr.bf16.mxu0 %v3332_v10  ;;  %v3338_v22 = vpack.c.bf16 %v1275_v20, %v1273_v19  ;;  %v1277_v24 = vld [vmem:[%s5321_s6 + $0x20] sm:$0xff]  ;;  %v1279_v25 = vld [vmem:[%s5321_s6 + $0x30] sm:$0xff]  ;;  %v3340_v27 = vpack.c.bf16 %v1280_v23, %v1278_v21  ;;  %v1282_v28 = vld [vmem:[%s5321_s6 + $0x48] sm:$0xff] }
  0xc5   : > { %s4240_s8 = scalar_lea.vmem %s5318_s3, %s3265_s0  ;;  %3337 = vmatprep.subr.bf16.mxu1 %v3336_v18  ;;  %v1284_v29 = vld [vmem:[%s5321_s6 + $0x58] sm:$0xff]  ;;  %v3342_v30 = vpack.c.bf16 %v1279_v25, %v1277_v24  ;;  %v1281_v32 = vld [vmem:[%s5321_s6 + $0x40] sm:$0xff]  ;;  %v1283_v33 = vld [vmem:[%s5321_s6 + $0x50] sm:$0xff]  ;;  %s5353_s0 = sld [smem:[#allocation18_spill]] (%p5352_p1) }
  0xc6   : > { %v611_v14 = vld [vmem:[%s4240_s8] sm:$0xff]  ;;  %v612_v15 = vld [vmem:[%s4240_s8 + $0x8] sm:$0xff]  ;;  %v613_v26 = vld [vmem:[%s4240_s8 + $0x10] sm:$0xff]  ;;  %3339 = vmatpush1.bf16.msra.mxu1 %v3338_v22  ;;  %v3344_v31 = vpack.c.bf16 %v1284_v29, %v1282_v28  ;;  %v3346_v37 = vpack.c.bf16 %v1283_v33, %v1281_v32 }
  0xc7   : > { %3335 = vmatpush1.bf16.msra.mxu0 %v3334_v13  ;;  %3341 = vmatprep.subr.bf16.mxu1 %v3340_v27  ;;  %v1286_v34 = vld [vmem:[%s5321_s6 + $0x68] sm:$0xff]  ;;  %v1288_v35 = vld [vmem:[%s5321_s6 + $0x78] sm:$0xff]  ;;  %v1285_v39 = vld [vmem:[%s5321_s6 + $0x60] sm:$0xff] }
  0xc8   : > { %v614_v36 = vld [vmem:[%s4240_s8 + $0x18] sm:$0xff]  ;;  %v3348_v38 = vpack.c.bf16 %v1288_v35, %v1286_v34  ;;  %v1287_v40 = vld [vmem:[%s5321_s6 + $0x70] sm:$0xff]  ;;  %v1290_v41 = vld [vmem:[%s5321_s6 + $0x88] sm:$0xff] }
  0xc9   : > { %v1292_v42 = vld [vmem:[%s5321_s6 + $0x98] sm:$0xff]  ;;  %v615_v43 = vld [vmem:[%s4240_s8 + $0x20] sm:$0xff]  ;;  %v3350_v44 = vpack.c.bf16 %v1287_v40, %v1285_v39  ;;  %v1291_v47 = vld [vmem:[%s5321_s6 + $0x90] sm:$0xff] }
  0xca   : > { %3266 = vmatmul.mubr.msk.f32.vlgmr.msra.gmra.mrb[0].mxu0 %vm663_vm0, %v611_v14  ;;  %3343 = vmatpush1.bf16.msra.mxu1 %v3342_v30  ;;  %v3352_v45 = vpack.c.bf16 %v1292_v42, %v1290_v41  ;;  %v1289_v46 = vld [vmem:[%s5321_s6 + $0x80] sm:$0xff]  ;;  %v1294_v48 = vld [vmem:[%s5321_s6 + $0xa8] sm:$0xff]  ;;  %v1296_v49 = vld [vmem:[%s5321_s6 + $0xb8] sm:$0xff] }
  0xcb   : > { %830 = vmatprep.mubr.f32.mxu0 %v3896_v1  ;;  %3345 = vmatprep.subr.bf16.mxu1 %v3344_v31  ;;  %v616_v50 = vld [vmem:[%s4240_s8 + $0x28] sm:$0xff]  ;;  %v3354_v51 = vpack.c.bf16 %v1291_v47, %v1289_v46  ;;  %v3356_v52 = vpack.c.bf16 %v1296_v49, %v1294_v48  ;;  %v1293_v53 = vld [vmem:[%s5321_s6 + $0xa0] sm:$0xff]  ;;  %v1295_v54 = vld [vmem:[%s5321_s6 + $0xb0] sm:$0xff] }
  0xcc   : > { %v1298_v55 = vld [vmem:[%s5321_s6 + $0xc8] sm:$0xff]  ;;  %v1300_v56 = vld [vmem:[%s5321_s6 + $0xd8] sm:$0xff]  ;;  %v617_v57 = vld [vmem:[%s4240_s8 + $0x30] sm:$0xff]  ;;  %v3358_v58 = vpack.c.bf16 %v1295_v54, %v1293_v53 }
  0xcd   : > { %v3360_v59 = vpack.c.bf16 %v1300_v56, %v1298_v55  ;;  %v1297_v60 = vld [vmem:[%s5321_s6 + $0xc0] sm:$0xff]  ;;  %v1299_v61 = vld [vmem:[%s5321_s6 + $0xd0] sm:$0xff]  ;;  %v1302_v62 = vld [vmem:[%s5321_s6 + $0xe8] sm:$0xff] }
  0xce   : > { %3267 = vmatmul.mubr.msk.f32.gmra.mrb[2].mxu0 %vm663_vm0, %v612_v15  ;;  %3347 = vmatpush1.bf16.msra.mxu1 %v3346_v37  ;;  %v1304_v63 = vld [vmem:[%s5321_s6 + $0xf8] sm:$0xff]  ;;  %v3362_v2 = vpack.c.bf16 %v1299_v61, %v1297_v60  ;;  %v1301_v4 = vld [vmem:[%s5321_s6 + $0xe0] sm:$0xff]  ;;  %v1303_v5 = vld [vmem:[%s5321_s6 + $0xf0] sm:$0xff] }
  0xcf   : > { %836 = vmatprep.mubr.f32.mxu0 %v3896_v1  ;;  %3349 = vmatprep.subr.bf16.mxu1 %v3348_v38  ;;  %v618_v0 = vld [vmem:[%s4240_s8 + $0x38] sm:$0xff]  ;;  %v3364_v3 = vpack.c.bf16 %v1304_v63, %v1302_v62  ;;  %v1306_v6 = vld [vmem:[%s5321_s6 + $0x108] sm:$0xff]  ;;  %v619_v8 = vld [vmem:[%s4240_s8 + $0x40] sm:$0xff]  ;;  %v3366_v9 = vpack.c.bf16 %v1303_v5, %v1301_v4 }
  0xd0   : > { %v1308_v7 = vld [vmem:[%s5321_s6 + $0x118] sm:$0xff]  ;;  %v1305_v11 = vld [vmem:[%s5321_s6 + $0x100] sm:$0xff]  ;;  %v1307_v12 = vld [vmem:[%s5321_s6 + $0x110] sm:$0xff] }
  0xd1   : > { %v3368_v10 = vpack.c.bf16 %v1308_v7, %v1306_v6  ;;  %v1310_v13 = vld [vmem:[%s5321_s6 + $0x128] sm:$0xff]  ;;  %v1312_v14 = vld [vmem:[%s5321_s6 + $0x138] sm:$0xff]  ;;  %v3370_v16 = vpack.c.bf16 %v1307_v12, %v1305_v11  ;;  %v1309_v18 = vld [vmem:[%s5321_s6 + $0x120] sm:$0xff] }
  0xd2   : > { %3268 = vmatmul.mubr.msk.f32.gmra.mrb[4].mxu0 %vm663_vm0, %v613_v26  ;;  %3351 = vmatpush1.bf16.msra.mxu1 %v3350_v44  ;;  %v620_v15 = vld [vmem:[%s4240_s8 + $0x48] sm:$0xff]  ;;  %v3372_v17 = vpack.c.bf16 %v1312_v14, %v1310_v13  ;;  %v1311_v19 = vld [vmem:[%s5321_s6 + $0x130] sm:$0xff]  ;;  %v1316_v21 = vld [vmem:[%s5321_s6 + $0x158] sm:$0xff] }
  0xd3   : > { %842 = vmatprep.mubr.f32.mxu0 %v3896_v1  ;;  %3353 = vmatprep.subr.bf16.mxu1 %v3352_v45  ;;  %v1314_v20 = vld [vmem:[%s5321_s6 + $0x148] sm:$0xff]  ;;  %v621_v22 = vld [vmem:[%s4240_s8 + $0x50] sm:$0xff]  ;;  %v3374_v23 = vpack.c.bf16 %v1311_v19, %v1309_v18  ;;  %v1313_v25 = vld [vmem:[%s5321_s6 + $0x140] sm:$0xff] }
  0xd4   : > { %v3376_v24 = vpack.c.bf16 %v1316_v21, %v1314_v20  ;;  %v1315_v26 = vld [vmem:[%s5321_s6 + $0x150] sm:$0xff]  ;;  %v1318_v27 = vld [vmem:[%s5321_s6 + $0x168] sm:$0xff]  ;;  %v1320_v28 = vld [vmem:[%s5321_s6 + $0x178] sm:$0xff] }
  0xd5   : > { %v622_v29 = vld [vmem:[%s4240_s8 + $0x58] sm:$0xff]  ;;  %v3378_v30 = vpack.c.bf16 %v1315_v26, %v1313_v25  ;;  %v3380_v31 = vpack.c.bf16 %v1320_v28, %v1318_v27  ;;  %v1317_v32 = vld [vmem:[%s5321_s6 + $0x160] sm:$0xff]  ;;  %v1319_v33 = vld [vmem:[%s5321_s6 + $0x170] sm:$0xff] }
  0xd6   : > { %3269 = vmatmul.mubr.msk.f32.gmra.mrb[6].mxu0 %vm663_vm0, %v614_v36  ;;  %3355 = vmatpush1.bf16.msra.mxu1 %v3354_v51  ;;  %v1322_v34 = vld [vmem:[%s5321_s6 + $0x188] sm:$0xff]  ;;  %v1324_v35 = vld [vmem:[%s5321_s6 + $0x198] sm:$0xff]  ;;  %v623_v36 = vld [vmem:[%s4240_s8 + $0x60] sm:$0xff]  ;;  %v3382_v37 = vpack.c.bf16 %v1319_v33, %v1317_v32 }
  0xd7   : > { %848 = vmatprep.mubr.f32.mxu0 %v3896_v1  ;;  %3357 = vmatprep.subr.bf16.mxu1 %v3356_v52  ;;  %v3384_v38 = vpack.c.bf16 %v1324_v35, %v1322_v34  ;;  %v1321_v39 = vld [vmem:[%s5321_s6 + $0x180] sm:$0xff]  ;;  %v1323_v40 = vld [vmem:[%s5321_s6 + $0x190] sm:$0xff]  ;;  %v1326_v41 = vld [vmem:[%s5321_s6 + $0x1a8] sm:$0xff] }
  0xd8   : > { %v1328_v42 = vld [vmem:[%s5321_s6 + $0x1b8] sm:$0xff]  ;;  %v3386_v44 = vpack.c.bf16 %v1323_v40, %v1321_v39  ;;  %v625_v46 = vld [vmem:[%s4240_s8 + $0x70] sm:$0xff]  ;;  %v627_v48 = vld [vmem:[%s4240_s8 + $0x80] sm:$0xff] }
  0xd9   : > { %v3388_v45 = vpack.c.bf16 %v1328_v42, %v1326_v41  ;;  %v626_v47 = vld [vmem:[%s4240_s8 + $0x78] sm:$0xff]  ;;  %v628_v49 = vld [vmem:[%s4240_s8 + $0x88] sm:$0xff]  ;;  %v631_v52 = vld [vmem:[%s4240_s8 + $0xa0] sm:$0xff] }
  0xda   : > { %3270 = vmatmul.mubr.msk.f32.gmra.mrb[8].mxu0 %vm663_vm0, %v615_v43  ;;  %3359 = vmatpush1.bf16.msra.mxu1 %v3358_v58  ;;  %v624_v43 = vld [vmem:[%s4240_s8 + $0x68] sm:$0xff]  ;;  %v630_v51 = vld [vmem:[%s4240_s8 + $0x98] sm:$0xff]  ;;  %v1325_v53 = vld [vmem:[%s5321_s6 + $0x1a0] sm:$0xff] }
  0xdb   : > { %854 = vmatprep.mubr.f32.mxu0 %v3896_v1  ;;  %3361 = vmatprep.subr.bf16.mxu1 %v3360_v59  ;;  %v1327_v54 = vld [vmem:[%s5321_s6 + $0x1b0] sm:$0xff]  ;;  %v632_v55 = vld [vmem:[%s4240_s8 + $0xa8] sm:$0xff]  ;;  %v1332_v58 = vld [vmem:[%s5321_s6 + $0x1d8] sm:$0xff] }
  0xdc   : > { %v3390_v56 = vpack.c.bf16 %v1327_v54, %v1325_v53  ;;  %v1329_v60 = vld [vmem:[%s5321_s6 + $0x1c0] sm:$0xff]  ;;  %v1331_v61 = vld [vmem:[%s5321_s6 + $0x1d0] sm:$0xff]  ;;  %v634_v6 = vld [vmem:[%s4240_s8 + $0xb8] sm:$0xff] }
  0xdd   : > { %v633_v62 = vld [vmem:[%s4240_s8 + $0xb0] sm:$0xff]  ;;  %v3394_v63 = vpack.c.bf16 %v1331_v61, %v1329_v60  ;;  %v1333_v4 = vld [vmem:[%s5321_s6 + $0x1e0] sm:$0xff]  ;;  %v638_v11 = vld [vmem:[%s4240_s8 + $0xd8] sm:$0xff] }
  0xde   : > { %3271 = vmatmul.mubr.msk.f32.gmra.mrb[10].mxu0 %vm663_vm0, %v616_v50  ;;  %3363 = vmatpush1.bf16.msra.mxu1 %v3362_v2  ;;  %v629_v50 = vld [vmem:[%s4240_s8 + $0x90] sm:$0xff]  ;;  %v1336_v2 = vld [vmem:[%s5321_s6 + $0x1f8] sm:$0xff]  ;;  %v639_v12 = vld [vmem:[%s4240_s8 + $0xe0] sm:$0xff] }
  0xdf   : > { %860 = vmatprep.mubr.f32.mxu0 %v3896_v1  ;;  %3365 = vmatprep.subr.bf16.mxu1 %v3364_v3  ;;  %v1335_v5 = vld [vmem:[%s5321_s6 + $0x1f0] sm:$0xff]  ;;  %v640_v13 = vld [vmem:[%s4240_s8 + $0xe8] sm:$0xff]  ;;  %v1869_v25 = vld [vmem:[#allocation8 + $0x38] sm:$0xff] }
  0xe0   : > { %v3398_v7 = vpack.c.bf16 %v1335_v5, %v1333_v4  ;;  %v641_v14 = vld [vmem:[%s4240_s8 + $0xf0] sm:$0xff]  ;;  %v1862_v19 = vld [vmem:[#allocation8] sm:$0xff]  ;;  %v1873_v34 = vld [vmem:[#allocation8 + $0x58] sm:$0xff] }
  0xe1   : > { %v1864_v20 = vld [vmem:[#allocation8 + $0x10] sm:$0xff]  ;;  %v1866_v27 = vld [vmem:[#allocation8 + $0x20] sm:$0xff]  ;;  %v1871_v33 = vld [vmem:[#allocation8 + $0x48] sm:$0xff] }
  0xe2   : > { %3272 = vmatmul.mubr.msk.f32.gmra.mrb[12].mxu0 %vm663_vm0, %v617_v57  ;;  %3367 = vmatpush1.bf16.msra.mxu1 %v3366_v9  ;;  %v1330_v57 = vld [vmem:[%s5321_s6 + $0x1c8] sm:$0xff]  ;;  %v3402_v21 = vpack.c.bf16 %v1864_v20, %v1862_v19  ;;  %v1868_v28 = vld [vmem:[#allocation8 + $0x30] sm:$0xff] }
  0xe3   : > { %866 = vmatprep.mubr.f32.mxu0 %v3896_v1  ;;  %3369 = vmatprep.subr.bf16.mxu1 %v3368_v10  ;;  %v3392_v59 = vpack.c.bf16 %v1332_v58, %v1330_v57  ;;  %v636_v9 = vld [vmem:[%s4240_s8 + $0xc8] sm:$0xff]  ;;  %v637_v10 = vld [vmem:[%s4240_s8 + $0xd0] sm:$0xff] }
  0xe4   : > { %v1017_v41 = vld [vmem:[%s4201_s29] sm:$0xff]  ;;  %v1019_v53 = vld [vmem:[%s4201_s29 + $0x10] sm:$0xff]  ;;  %v1887_v20 = vld [vmem:[#allocation8 + $0xc8] sm:$0xff] }
  0xe5   : > { %v1021_v61 = vld [vmem:[%s4201_s29 + $0x20] sm:$0xff]  ;;  %v1884_v19 = vld [vmem:[#allocation8 + $0xb0] sm:$0xff] }
  0xe6   : > { %3273 = vmatmul.mubr.msk.f32.gmra.mrb[14].mxu0 %vm663_vm0, %v618_v0  ;;  %3371 = vmatpush1.bf16.msra.mxu1 %v3370_v16  ;;  %v1334_v0 = vld [vmem:[%s5321_s6 + $0x1e8] sm:$0xff] }
  0xe7   : > { %872 = vmatprep.mubr.f32.mxu0 %v3896_v1  ;;  %3373 = vmatprep.subr.bf16.mxu1 %v3372_v17  ;;  %v3396_v3 = vpack.c.bf16 %v1336_v2, %v1334_v0  ;;  %v1863_v16 = vld [vmem:[#allocation8 + $0x8] sm:$0xff]  ;;  %v1865_v17 = vld [vmem:[#allocation8 + $0x18] sm:$0xff]  ;;  %v1878_v4 = vld [vmem:[#allocation8 + $0x80] sm:$0xff] }
  0xe8   : > { %v3400_v18 = vpack.c.bf16 %v1865_v17, %v1863_v16  ;;  %v1022_v0 = vld [vmem:[%s4201_s29 + $0x28] sm:$0xff] }
  0xe9   : > { %v1879_v2 = vld [vmem:[#allocation8 + $0x88] sm:$0xff] }
  0xea   : > { %3274 = vmatmul.mubr.msk.f32.gmra.mrb[16].mxu0 %vm663_vm0, %v619_v8  ;;  %3375 = vmatpush1.bf16.msra.mxu1 %v3374_v23  ;;  %v635_v8 = vld [vmem:[%s4240_s8 + $0xc0] sm:$0xff] }
  0xeb   : > { %878 = vmatprep.mubr.f32.mxu0 %v3896_v1  ;;  %3377 = vmatprep.subr.bf16.mxu1 %v3376_v24  ;;  %v1867_v24 = vld [vmem:[#allocation8 + $0x28] sm:$0xff] }
  0xec   : > { %3401 = vmatprep.subr.bf16.mxu0 %v3400_v18  ;;  %v3404_v26 = vpack.c.bf16 %v1869_v25, %v1867_v24  ;;  %v1882_v18 = vld [vmem:[#allocation8 + $0xa0] sm:$0xff] }
  0xed   : > { %3403 = vmatpush1.bf16.msra.mxu0 %v3402_v21  ;;  %v3422_v25 = vpack.c.bf16 %v1884_v19, %v1882_v18 }
  0xee   : > { %3275 = vmatmul.mubr.msk.f32.gmra.mrb[18].mxu0 %vm663_vm0, %v620_v15  ;;  %3379 = vmatpush1.bf16.msra.mxu1 %v3378_v30  ;;  %v642_v15 = vld [vmem:[%s4240_s8 + $0xf8] sm:$0xff]  ;;  %v651_v30 = vld [vmem:[%s5320_s5] sm:$0x3]  ;;  %s3325_s8 = sshll.u32 (%p5352_p1), %s3985_s11, 8 }
  0xef   : > { %884 = vmatprep.mubr.f32.mxu0 %v3896_v1  ;;  %3381 = vmatprep.subr.bf16.mxu1 %v3380_v31  ;;  %s5180_s13 = scalar_lea.vmem (%p5352_p1), %s5353_s0, %s3325_s8  }
  0xf0   : > { %3405 = vmatprep.subr.bf16.mxu0 %v3404_v26 }
  0xf2   : > { %3276 = vmatmul.mubr.msk.f32.gmra.mrb[20].mxu0 %vm663_vm0, %v621_v22  ;;  %3383 = vmatpush1.bf16.msra.mxu1 %v3382_v37  ;;  %v653_v22 = vlaneseq  ;;  %v1870_v37 = vld [vmem:[#allocation8 + $0x40] sm:$0xff] }
  0xf3   : > { %890 = vmatprep.mubr.f32.mxu0 %v3896_v1  ;;  %3385 = vmatprep.subr.bf16.mxu1 %v3384_v38  ;;  %v1872_v38 = vld [vmem:[#allocation8 + $0x50] sm:$0xff] }
  0xf4   : > { %v654_v23 = vshrl.u32 %v653_v22, 7  ;;  %v3410_v39 = vpack.c.bf16 %v1872_v38, %v1870_v37 }
  0xf6   : > { %3277 = vmatmul.mubr.msk.f32.gmra.mrb[22].mxu0 %vm663_vm0, %v622_v29  ;;  %3387 = vmatpush1.bf16.msra.mxu1 %v3386_v44  ;;  %v4529_v29 = vsub.s32 0, %v654_v23  ;;  %v4534_v31 = vsub.s32 1, %v654_v23  ;;  %v1018_v44 = vld [vmem:[%s4201_s29 + $0x8] sm:$0xff]  ;;  %v1889_v23 = vld [vmem:[#allocation8 + $0xd8] sm:$0xff] }
  0xf7   : > { %896 = vmatprep.mubr.f32.mxu0 %v3896_v1  ;;  %3389 = vmatprep.subr.bf16.mxu1 %v3388_v45 }
  0xf8   : > { %v4537_v32 = vrot.slane %v651_v30, %v4529_v29  ;;  %v4540_v35 = vrot.slane %v651_v30, %v4534_v31  ;;  %v3424_v30 = vpack.c.bf16 %v1889_v23, %v1887_v20 }
  0xfa   : > { %3278 = vmatmul.mubr.msk.f32.gmra.mrb[24].mxu0 %vm663_vm0, %v623_v36  ;;  %3391 = vmatpush1.bf16.msra.mxu1 %v3390_v56  ;;  %v3408_v36 = vpack.c.bf16 %v1873_v34, %v1871_v33  ;;  %v1886_v33 = vld [vmem:[#allocation8 + $0xc0] sm:$0xff]  ;;  %v1888_v34 = vld [vmem:[#allocation8 + $0xd0] sm:$0xff] }
  0xfb   : > { %902 = vmatprep.mubr.f32.mxu0 %v3896_v1  ;;  %3393 = vmatprep.subr.bf16.mxu1 %v3392_v59  ;;  %v1020_v59 = vld [vmem:[%s4201_s29 + $0x18] sm:$0xff] }
  0xfe   : > { %3279 = vmatmul.mubr.msk.f32.gmra.mrb[26].mxu0 %vm663_vm0, %v624_v43  ;;  %3395 = vmatpush1.bf16.msra.mxu1 %v3394_v63 }
  0xff   : > { %908 = vmatprep.mubr.f32.mxu0 %v3896_v1  ;;  %3397 = vmatprep.subr.bf16.mxu1 %v3396_v3  ;;  %v1881_v3 = vld [vmem:[#allocation8 + $0x98] sm:$0xff] }
 0x102   : > { %3280 = vmatmul.mubr.msk.f32.gmra.mrb[28].mxu0 %vm663_vm0, %v625_v46  ;;  %3399 = vmatpush1.bf16.msra.mxu1 %v3398_v7  ;;  %v1875_v46 = vld [vmem:[#allocation8 + $0x68] sm:$0xff] }
 0x103   : > { %914 = vmatprep.mubr.f32.mxu0 %v3896_v1 }
 0x106   : > { %3281 = vmatmul.mubr.msk.f32.gmra.mrb[30].mxu0 %vm663_vm0, %v626_v47  ;;  %v1877_v47 = vld [vmem:[#allocation8 + $0x78] sm:$0xff] }
 0x107   : > { %920 = vmatprep.mubr.f32.mxu0 %v3896_v1 }
 0x10a   : > { %3282 = vmatmul.mubr.msk.f32.gmra.mrb[32].mxu0 %vm663_vm0, %v627_v48  ;;  %v1874_v48 = vld [vmem:[#allocation8 + $0x60] sm:$0xff] }
 0x10b   : > { %926 = vmatprep.mubr.f32.mxu0 %v3896_v1 }
 0x10e   : > { %3283 = vmatmul.mubr.msk.f32.gmra.mrb[34].mxu0 %vm663_vm0, %v628_v49 }
 0x10f   : > { %932 = vmatprep.mubr.f32.mxu0 %v3896_v1 }
 0x112   : > { %3284 = vmatmul.mubr.msk.f32.gmra.mrb[36].mxu0 %vm663_vm0, %v629_v50  ;;  %v3412_v50 = vpack.c.bf16 %v1877_v47, %v1875_v46  ;;  %v3426_v46 = vpack.c.bf16 %v1888_v34, %v1886_v33  ;;  %v1903_v34 = vld [vmem:[#allocation8 + $0x148] sm:$0xff] }
 0x113   : > { %938 = vmatprep.mubr.f32.mxu0 %v3896_v1 }
 0x116   : > { %3285 = vmatmul.mubr.msk.f32.gmra.mrb[38].mxu0 %vm663_vm0, %v630_v51  ;;  %v1876_v51 = vld [vmem:[#allocation8 + $0x70] sm:$0xff] }
 0x117   : > { %944 = vmatprep.mubr.f32.mxu0 %v3896_v1 }
 0x11a   : > { %3286 = vmatmul.mubr.msk.f32.gmra.mrb[40].mxu0 %vm663_vm0, %v631_v52 }
 0x11b   : > { %950 = vmatprep.mubr.f32.mxu0 %v3896_v1 }
 0x11e   : > { %3287 = vmatmul.mubr.msk.f32.gmra.mrb[42].mxu0 %vm663_vm0, %v632_v55  ;;  %v3414_v55 = vpack.c.bf16 %v1876_v51, %v1874_v48 }
 0x11f   : > { %956 = vmatprep.mubr.f32.mxu0 %v3896_v1 }
 0x122   : > { %3288 = vmatmul.mubr.msk.f32.gmra.mrb[44].mxu0 %vm663_vm0, %v633_v62 }
 0x123   : > { %962 = vmatprep.mubr.f32.mxu0 %v3896_v1 }
 0x126   : > { %3289 = vmatmul.mubr.msk.f32.gmra.mrb[46].mxu0 %vm663_vm0, %v634_v6 }
 0x127   : > { %968 = vmatprep.mubr.f32.mxu0 %v3896_v1 }
 0x12a   : > { %3290 = vmatmul.mubr.msk.f32.gmra.mrb[48].mxu0 %vm663_vm0, %v635_v8 }
 0x12b   : > { %974 = vmatprep.mubr.f32.mxu0 %v3896_v1 }
 0x12e   : > { %3291 = vmatmul.mubr.msk.f32.gmra.mrb[50].mxu0 %vm663_vm0, %v636_v9  ;;  %v3416_v9 = vpack.c.bf16 %v1881_v3, %v1879_v2 }
 0x12f   : > { %980 = vmatprep.mubr.f32.mxu0 %v3896_v1 }
 0x132   : > { %3292 = vmatmul.mubr.msk.f32.gmra.mrb[52].mxu0 %vm663_vm0, %v637_v10  ;;  %v1880_v10 = vld [vmem:[#allocation8 + $0x90] sm:$0xff] }
 0x133   : > { %986 = vmatprep.mubr.f32.mxu0 %v3896_v1  ;;  %v3418_v16 = vpack.c.bf16 %v1880_v10, %v1878_v4  ;;  %v1027_v4 = vld [vmem:[%s4201_s29 + $0x50] sm:$0xff] }
 0x136   : > { %3293 = vmatmul.mubr.msk.f32.gmra.mrb[54].mxu0 %vm663_vm0, %v638_v11  ;;  %v1883_v11 = vld [vmem:[#allocation8 + $0xa8] sm:$0xff] }
 0x137   : > { %992 = vmatprep.mubr.f32.mxu0 %v3896_v1 }
 0x13a   : > { %3294 = vmatmul.mubr.msk.f32.gmra.mrb[56].mxu0 %vm663_vm0, %v639_v12  ;;  %v1885_v12 = vld [vmem:[#allocation8 + $0xb8] sm:$0xff] }
 0x13b   : > { %998 = vmatprep.mubr.f32.mxu0 %v3896_v1  ;;  %v3420_v17 = vpack.c.bf16 %v1885_v12, %v1883_v11  ;;  %v1028_v12 = vld [vmem:[%s4201_s29 + $0x58] sm:$0xff] }
 0x13e   : > { %3295 = vmatmul.mubr.msk.f32.gmra.mrb[58].mxu0 %vm663_vm0, %v640_v13 }
 0x13f   : > { %1004 = vmatprep.mubr.f32.mxu0 %v3896_v1 }
 0x142   : > { %3296 = vmatmul.mubr.msk.f32.gmra.mrb[60].mxu0 %vm663_vm0, %v641_v14 }
 0x143   : > { %1010 = vmatprep.mubr.f32.mxu0 %v3896_v1  ;;  %v3406_v1 = vpack.c.bf16 %v1868_v28, %v1866_v27  ;;  %v1023_v28 = vld [vmem:[%s4201_s29 + $0x30] sm:$0xff] }
 0x145   : > { %3407 = vmatpush1.bf16.msra.mxu0 %v3406_v1 }
 0x146   : > { %3297 = vmatmul.mubr.msk.f32.gmra.mrb[62].mxu0 %vm663_vm0, %v642_v15  ;;  %3409 = vmatprep.subr.bf16.mxu0 %v3408_v36 }
 0x149   : > { %3411 = vmatpush1.bf16.msra.mxu0 %v3410_v39  ;;  %v1024_v39 = vld [vmem:[%s4201_s29 + $0x38] sm:$0xff] }
 0x14a   : > { %3413 = vmatprep.subr.bf16.mxu0 %v3412_v50 }
 0x14d   : > { %3415 = vmatpush1.bf16.msra.mxu0 %v3414_v55 }
 0x14e   : > { %3417 = vmatprep.subr.bf16.mxu0 %v3416_v9 }
 0x151   : > { %3419 = vmatpush1.bf16.msra.mxu0 %v3418_v16 }
 0x152   : > { %3421 = vmatprep.subr.bf16.mxu0 %v3420_v17 }
 0x155   : > { %3423 = vmatpush1.bf16.msra.mxu0 %v3422_v25  ;;  %v1898_v25 = vld [vmem:[#allocation8 + $0x120] sm:$0xff] }
 0x156   : > { %3425 = vmatprep.subr.bf16.mxu0 %v3424_v30  ;;  %v1030_v30 = vld [vmem:[%s4201_s29 + $0x68] sm:$0xff] }
 0x159   : > { %3427 = vmatpush1.bf16.msra.mxu0 %v3426_v46  ;;  %v1902_v46 = vld [vmem:[#allocation8 + $0x140] sm:$0xff] }
 0x19d   : > { %v826_v40 = vpop.f32.mrb[0].mxu0 }
 0x19e   : > { %v827_v42 = vadd.f32 %v826_v40, %v4537_v32  ;;  %v828_v43 = vpop.f32.mrb[1].mxu0 }
 0x19f   : > { %v829_v45 = vadd.f32 %v828_v43, %v4540_v35 }
 0x1a0   : > { %v1081_v49 = vadd.f32 %v1017_v41, %v827_v42  ;;  %v1891_v41 = vld [vmem:[#allocation8 + $0xe8] sm:$0xff]  ;;  %v1893_v42 = vld [vmem:[#allocation8 + $0xf8] sm:$0xff] }
 0x1a1   : > { %v832_v52 = vpop.f32.mrb[2].mxu0  ;;  %v1082_v54 = vadd.f32 %v1018_v44, %v829_v45  ;;  %v3428_v51 = vpack.c.bf16 %v1893_v42, %v1891_v41 }
 0x1a2   : > { %v1145_v56 = vmul.f32 0.2, %v1081_v49  ;;  %v833_v57 = vadd.f32 %v832_v52, %v4537_v32  ;;  %v834_v58 = vpop.f32.mrb[3].mxu0  ;;  %v1890_v52 = vld [vmem:[#allocation8 + $0xe0] sm:$0xff] }
 0x1a3   : > { %v835_v60 = vadd.f32 %v834_v58, %v4540_v35  ;;  %v1146_v62 = vmul.f32 0.2, %v1082_v54  ;;  %3429 = vmatprep.subr.bf16.mxu0 %v3428_v51  ;;  %v1032_v51 = vld [vmem:[%s4201_s29 + $0x78] sm:$0xff] }
 0x1a4   : > { %v1083_v63 = vadd.f32 %v1019_v53, %v833_v57  ;;  %v1209_v8 = vmax.f32 %v1081_v49, %v1145_v56  ;;  %v1025_v49 = vld [vmem:[%s4201_s29 + $0x40] sm:$0xff]  ;;  %v1892_v53 = vld [vmem:[#allocation8 + $0xf0] sm:$0xff]  ;;  %v1026_v57 = vld [vmem:[%s4201_s29 + $0x48] sm:$0xff] }
 0x1a5   : > { %v1084_v5 = vadd.f32 %v1020_v59, %v835_v60  ;;  %v838_v6 = vpop.f32.mrb[4].mxu0  ;;  %v1210_v7 = vmax.f32 %v1082_v54, %v1146_v62  ;;  %v1895_v59 = vld [vmem:[#allocation8 + $0x108] sm:$0xff]  ;;  %v1897_v60 = vld [vmem:[#allocation8 + $0x118] sm:$0xff] }
 0x1a6   : > { %v1147_v13 = vmul.f32 0.2, %v1083_v63  ;;  %v839_v14 = vadd.f32 %v838_v6, %v4537_v32  ;;  %v840_v15 = vpop.f32.mrb[5].mxu0  ;;  %v3432_v6 = vpack.c.bf16 %v1897_v60, %v1895_v59 }
 0x1a7   : > { %v1148_v21 = vmul.f32 0.2, %v1084_v5  ;;  %v841_v22 = vadd.f32 %v840_v15, %v4540_v35  ;;  %1413 = vmatprep.mubr.f32.mxu1 %v1210_v7  ;;  %v1894_v7 = vld [vmem:[#allocation8 + $0x100] sm:$0xff]  ;;  %v1901_v15 = vld [vmem:[#allocation8 + $0x138] sm:$0xff] }
 0x1a8   : > { %v1085_v24 = vadd.f32 %v1021_v61, %v839_v14  ;;  %1414 = vmatmul.mubr.f32.vlgmr.msra.gmra.mrb[0].mxu1 %v1209_v8  ;;  %v1211_v40 = vmax.f32 %v1083_v63, %v1147_v13  ;;  %v1896_v8 = vld [vmem:[#allocation8 + $0x110] sm:$0xff]  ;;  %v1899_v14 = vld [vmem:[#allocation8 + $0x128] sm:$0xff] }
 0x1a9   : > { %v1086_v26 = vadd.f32 %v1022_v0, %v841_v22  ;;  %v844_v27 = vpop.f32.mrb[6].mxu0  ;;  %v1212_v1 = vmax.f32 %v1084_v5, %v1148_v21  ;;  %v3430_v0 = vpack.c.bf16 %v1892_v53, %v1890_v52  ;;  %v3434_v19 = vpack.c.bf16 %v1896_v8, %v1894_v7  ;;  %v1029_v22 = vld [vmem:[%s4201_s29 + $0x60] sm:$0xff]  ;;  %v1907_v53 = vld [vmem:[#allocation8 + $0x168] sm:$0xff] }
 0x1aa   : > { %v1149_v36 = vmul.f32 0.2, %v1085_v24  ;;  %v845_v37 = vadd.f32 %v844_v27, %v4537_v32  ;;  %v846_v38 = vpop.f32.mrb[7].mxu0  ;;  %v1911_v8 = vld [vmem:[#allocation8 + $0x188] sm:$0xff] }
 0x1ab   : > { %v1150_v43 = vmul.f32 0.2, %v1086_v26  ;;  %v847_v44 = vadd.f32 %v846_v38, %v4540_v35  ;;  %1419 = vmatprep.mubr.f32.mxu1 %v1212_v1  ;;  %3431 = vmatpush1.bf16.msra.mxu0 %v3430_v0  ;;  %v1906_v0 = vld [vmem:[#allocation8 + $0x160] sm:$0xff] }
 0x1ac   : > { %v1087_v45 = vadd.f32 %v1023_v28, %v845_v37  ;;  %1420 = vmatmul.mubr.f32.gmra.mrb[2].mxu1 %v1211_v40  ;;  %v1213_v58 = vmax.f32 %v1085_v24, %v1149_v36  ;;  %3433 = vmatprep.subr.bf16.mxu0 %v3432_v6  ;;  %v3436_v24 = vpack.c.bf16 %v1901_v15, %v1899_v14  ;;  %v1905_v36 = vld [vmem:[#allocation8 + $0x158] sm:$0xff]  ;;  %v1034_v6 = vld [vmem:[%s4201_s29 + $0x88] sm:$0xff] }
 0x1ad   : > { %v1088_v47 = vadd.f32 %v1024_v39, %v847_v44  ;;  %v850_v48 = vpop.f32.mrb[8].mxu0  ;;  %v1214_v50 = vmax.f32 %v1086_v26, %v1150_v43  ;;  %v1900_v26 = vld [vmem:[#allocation8 + $0x130] sm:$0xff] }
 0x1ae   : > { %v1151_v54 = vmul.f32 0.2, %v1087_v45  ;;  %v851_v55 = vadd.f32 %v850_v48, %v4537_v32  ;;  %v852_v56 = vpop.f32.mrb[9].mxu0  ;;  %v3438_v40 = vpack.c.bf16 %v1900_v26, %v1898_v25  ;;  %v1031_v43 = vld [vmem:[%s4201_s29 + $0x70] sm:$0xff]  ;;  %v1915_v26 = vld [vmem:[#allocation8 + $0x1a8] sm:$0xff] }
 0x1af   : > { %v1152_v61 = vmul.f32 0.2, %v1088_v47  ;;  %v853_v62 = vadd.f32 %v852_v56, %v4540_v35  ;;  %1425 = vmatprep.mubr.f32.mxu1 %v1214_v50  ;;  %3435 = vmatpush1.bf16.msra.mxu0 %v3434_v19  ;;  %v1910_v19 = vld [vmem:[#allocation8 + $0x180] sm:$0xff] }
 0x1b0   : > { %v1089_v63 = vadd.f32 %v1025_v49, %v851_v55  ;;  %1426 = vmatmul.mubr.f32.gmra.mrb[4].mxu1 %v1213_v58  ;;  %v1215_v13 = vmax.f32 %v1087_v45, %v1151_v54  ;;  %3437 = vmatprep.subr.bf16.mxu0 %v3436_v24  ;;  %v3440_v45 = vpack.c.bf16 %v1905_v36, %v1903_v34  ;;  %v1909_v54 = vld [vmem:[#allocation8 + $0x178] sm:$0xff] }
 0x1b1   : > { %v1090_v2 = vadd.f32 %v1026_v57, %v853_v62  ;;  %v856_v3 = vpop.f32.mrb[10].mxu0  ;;  %v1216_v5 = vmax.f32 %v1088_v47, %v1152_v61  ;;  %v1904_v47 = vld [vmem:[#allocation8 + $0x150] sm:$0xff]  ;;  %v1033_v61 = vld [vmem:[%s4201_s29 + $0x80] sm:$0xff]  ;;  %v1036_v24 = vld [vmem:[%s4201_s29 + $0x98] sm:$0xff] }
 0x1b2   : > { %v1153_v9 = vmul.f32 0.2, %v1089_v63  ;;  %v857_v10 = vadd.f32 %v856_v3, %v4537_v32  ;;  %v858_v11 = vpop.f32.mrb[11].mxu0  ;;  %v3442_v58 = vpack.c.bf16 %v1904_v47, %v1902_v46  ;;  %v1919_v47 = vld [vmem:[#allocation8 + $0x1c8] sm:$0xff] }
 0x1b3   : > { %v1154_v16 = vmul.f32 0.2, %v1090_v2  ;;  %v859_v17 = vadd.f32 %v858_v11, %v4540_v35  ;;  %1431 = vmatprep.mubr.f32.mxu1 %v1216_v5  ;;  %3439 = vmatpush1.bf16.msra.mxu0 %v3438_v40  ;;  %v1914_v40 = vld [vmem:[#allocation8 + $0x1a0] sm:$0xff] }
 0x1b4   : > { %v1091_v18 = vadd.f32 %v1027_v4, %v857_v10  ;;  %1432 = vmatmul.mubr.f32.gmra.mrb[6].mxu1 %v1215_v13  ;;  %v1217_v33 = vmax.f32 %v1089_v63, %v1153_v9  ;;  %3441 = vmatprep.subr.bf16.mxu0 %v3440_v45  ;;  %v3444_v63 = vpack.c.bf16 %v1909_v54, %v1907_v53  ;;  %v1913_v9 = vld [vmem:[#allocation8 + $0x198] sm:$0xff]  ;;  %v1038_v45 = vld [vmem:[%s4201_s29 + $0xa8] sm:$0xff] }
 0x1b5   : > { %v1092_v20 = vadd.f32 %v1028_v12, %v859_v17  ;;  %v862_v21 = vpop.f32.mrb[12].mxu0  ;;  %v1218_v23 = vmax.f32 %v1090_v2, %v1154_v16  ;;  %v1908_v2 = vld [vmem:[#allocation8 + $0x170] sm:$0xff] }
 0x1b6   : > { %v1155_v27 = vmul.f32 0.2, %v1091_v18  ;;  %v863_v28 = vadd.f32 %v862_v21, %v4537_v32  ;;  %v864_v1 = vpop.f32.mrb[13].mxu0  ;;  %v3446_v13 = vpack.c.bf16 %v1908_v2, %v1906_v0  ;;  %v1035_v16 = vld [vmem:[%s4201_s29 + $0x90] sm:$0xff] }
 0x1b7   : > { %v1156_v37 = vmul.f32 0.2, %v1092_v20  ;;  %v865_v38 = vadd.f32 %v864_v1, %v4540_v35  ;;  %1437 = vmatprep.mubr.f32.mxu1 %v1218_v23  ;;  %3443 = vmatpush1.bf16.msra.mxu0 %v3442_v58  ;;  %v1918_v58 = vld [vmem:[#allocation8 + $0x1c0] sm:$0xff] }
 0x1b8   : > { %v1093_v39 = vadd.f32 %v1029_v22, %v863_v28  ;;  %1438 = vmatmul.mubr.f32.gmra.mrb[8].mxu1 %v1217_v33  ;;  %v1219_v52 = vmax.f32 %v1091_v18, %v1155_v27  ;;  %3445 = vmatprep.subr.bf16.mxu0 %v3444_v63  ;;  %v3448_v18 = vpack.c.bf16 %v1913_v9, %v1911_v8  ;;  %v1917_v27 = vld [vmem:[#allocation8 + $0x1b8] sm:$0xff]  ;;  %v1041_v8 = vld [vmem:[%s4201_s29 + $0xc0] sm:$0xff] }
 0x1b9   : > { %v1094_v41 = vadd.f32 %v1030_v30, %v865_v38  ;;  %v868_v42 = vpop.f32.mrb[14].mxu0  ;;  %v1220_v44 = vmax.f32 %v1092_v20, %v1156_v37  ;;  %v1912_v20 = vld [vmem:[#allocation8 + $0x190] sm:$0xff]  ;;  %v1037_v37 = vld [vmem:[%s4201_s29 + $0xa0] sm:$0xff]  ;;  %v1040_v63 = vld [vmem:[%s4201_s29 + $0xb8] sm:$0xff] }
 0x1ba   : > { %v1157_v48 = vmul.f32 0.2, %v1093_v39  ;;  %v869_v49 = vadd.f32 %v868_v42, %v4537_v32  ;;  %v870_v50 = vpop.f32.mrb[15].mxu0  ;;  %v3450_v33 = vpack.c.bf16 %v1912_v20, %v1910_v19  ;;  %v1043_v20 = vld [vmem:[%s4201_s29 + $0xd0] sm:$0xff] }
 0x1bb   : > { %v1158_v55 = vmul.f32 0.2, %v1094_v41  ;;  %v871_v56 = vadd.f32 %v870_v50, %v4540_v35  ;;  %1443 = vmatprep.mubr.f32.mxu1 %v1220_v44  ;;  %3447 = vmatpush1.bf16.msra.mxu0 %v3446_v13  ;;  %v1042_v13 = vld [vmem:[%s4201_s29 + $0xc8] sm:$0xff] }
 0x1bc   : > { %v1095_v57 = vadd.f32 %v1031_v43, %v869_v49  ;;  %1444 = vmatmul.mubr.f32.gmra.mrb[10].mxu1 %v1219_v52  ;;  %v1221_v7 = vmax.f32 %v1093_v39, %v1157_v48  ;;  %3449 = vmatprep.subr.bf16.mxu0 %v3448_v18  ;;  %v3452_v39 = vpack.c.bf16 %v1917_v27, %v1915_v26  ;;  %v1921_v48 = vld [vmem:[#allocation8 + $0x1d8] sm:$0xff] }
 0x1bd   : > { %v1096_v59 = vadd.f32 %v1032_v51, %v871_v56  ;;  %v874_v60 = vpop.f32.mrb[16].mxu0  ;;  %v1222_v62 = vmax.f32 %v1094_v41, %v1158_v55  ;;  %v1916_v41 = vld [vmem:[#allocation8 + $0x1b0] sm:$0xff] }
 0x1be   : > { %v1159_v3 = vmul.f32 0.2, %v1095_v57  ;;  %v875_v4 = vadd.f32 %v874_v60, %v4537_v32  ;;  %v876_v5 = vpop.f32.mrb[17].mxu0  ;;  %v3454_v52 = vpack.c.bf16 %v1916_v41, %v1914_v40  ;;  %v1039_v55 = vld [vmem:[%s4201_s29 + $0xb0] sm:$0xff]  ;;  %v1046_v40 = vld [vmem:[%s4201_s29 + $0xe8] sm:$0xff] }
 0x1bf   : > { %v1160_v10 = vmul.f32 0.2, %v1096_v59  ;;  %v877_v11 = vadd.f32 %v876_v5, %v4540_v35  ;;  %1449 = vmatprep.mubr.f32.mxu1 %v1222_v62  ;;  %3451 = vmatpush1.bf16.msra.mxu0 %v3450_v33 }
 0x1c0   : > { %v1097_v12 = vadd.f32 %v1033_v61, %v875_v4  ;;  %1450 = vmatmul.mubr.f32.gmra.mrb[12].mxu1 %v1221_v7  ;;  %v1223_v25 = vmax.f32 %v1095_v57, %v1159_v3  ;;  %3453 = vmatprep.subr.bf16.mxu0 %v3452_v39  ;;  %v3456_v57 = vpack.c.bf16 %v1921_v48, %v1919_v47  ;;  %v1047_v47 = vld [vmem:[%s4201_s29 + $0xf0] sm:$0xff] }
 0x1c1   : > { %v1098_v14 = vadd.f32 %v1034_v6, %v877_v11  ;;  %v880_v15 = vpop.f32.mrb[18].mxu0  ;;  %v1224_v17 = vmax.f32 %v1096_v59, %v1160_v10  ;;  %v1920_v59 = vld [vmem:[#allocation8 + $0x1d0] sm:$0xff] }
 0x1c2   : > { %v1161_v21 = vmul.f32 0.2, %v1097_v12  ;;  %v881_v22 = vadd.f32 %v880_v15, %v4537_v32  ;;  %v882_v23 = vpop.f32.mrb[19].mxu0  ;;  %v3458_v5 = vpack.c.bf16 %v1920_v59, %v1918_v58  ;;  %v1049_v59 = vld [vmem:[%s4201_s29 + $0x100] sm:$0xff] }
 0x1c3   : > { %v1162_v28 = vmul.f32 0.2, %v1098_v14  ;;  %v883_v1 = vadd.f32 %v882_v23, %v4540_v35  ;;  %1455 = vmatprep.mubr.f32.mxu1 %v1224_v17  ;;  %3455 = vmatpush1.bf16.msra.mxu0 %v3454_v52  ;;  %v1048_v52 = vld [vmem:[%s4201_s29 + $0xf8] sm:$0xff] }
 0x1c4   : > { %v1099_v30 = vadd.f32 %v1035_v16, %v881_v22  ;;  %1456 = vmatmul.mubr.f32.gmra.mrb[14].mxu1 %v1223_v25  ;;  %v1225_v46 = vmax.f32 %v1097_v12, %v1161_v21  ;;  %3457 = vmatprep.subr.bf16.mxu0 %v3456_v57  ;;  %v1044_v25 = vld [vmem:[%s4201_s29 + $0xd8] sm:$0xff] }
 0x1c5   : > { %v1100_v34 = vadd.f32 %v1036_v24, %v883_v1  ;;  %v886_v36 = vpop.f32.mrb[20].mxu0  ;;  %v1226_v38 = vmax.f32 %v1098_v14, %v1162_v28 }
 0x1c6   : > { %v1163_v42 = vmul.f32 0.2, %v1099_v30  ;;  %v887_v43 = vadd.f32 %v886_v36, %v4537_v32  ;;  %v888_v44 = vpop.f32.mrb[21].mxu0 }
 0x1c7   : > { %v1164_v49 = vmul.f32 0.2, %v1100_v34  ;;  %v889_v50 = vadd.f32 %v888_v44, %v4540_v35  ;;  %1461 = vmatprep.mubr.f32.mxu1 %v1226_v38  ;;  %3459 = vmatpush1.bf16.msra.mxu0 %v3458_v5 }
 0x1c8   : > { %v1101_v51 = vadd.f32 %v1037_v37, %v887_v43  ;;  %1462 = vmatmul.mubr.f32.gmra.mrb[16].mxu1 %v1225_v46  ;;  %v1227_v0 = vmax.f32 %v1099_v30, %v1163_v42 }
 0x1c9   : > { %v1102_v53 = vadd.f32 %v1038_v45, %v889_v50  ;;  %v892_v54 = vpop.f32.mrb[22].mxu0  ;;  %v1228_v56 = vmax.f32 %v1100_v34, %v1164_v49  ;;  %v1045_v34 = vld [vmem:[%s4201_s29 + $0xe0] sm:$0xff] }
 0x1ca   : > { %v1165_v60 = vmul.f32 0.2, %v1101_v51  ;;  %v893_v61 = vadd.f32 %v892_v54, %v4537_v32  ;;  %v894_v62 = vpop.f32.mrb[23].mxu0 }
 0x1cb   : > { %v1166_v2 = vmul.f32 0.2, %v1102_v53  ;;  %v895_v3 = vadd.f32 %v894_v62, %v4540_v35  ;;  %1467 = vmatprep.mubr.f32.mxu1 %v1228_v56 }
 0x1cc   : > { %v1103_v4 = vadd.f32 %v1039_v55, %v893_v61  ;;  %1468 = vmatmul.mubr.f32.gmra.mrb[18].mxu1 %v1227_v0  ;;  %v1229_v14 = vmax.f32 %v1101_v51, %v1165_v60  ;;  %v1050_v0 = vld [vmem:[%s4201_s29 + $0x108] sm:$0xff] }
 0x1cd   : > { %v1104_v6 = vadd.f32 %v1040_v63, %v895_v3  ;;  %v898_v7 = vpop.f32.mrb[24].mxu0  ;;  %v1230_v9 = vmax.f32 %v1102_v53, %v1166_v2 }
 0x1ce   : > { %v1167_v10 = vmul.f32 0.2, %v1103_v4  ;;  %v899_v11 = vadd.f32 %v898_v7, %v4537_v32  ;;  %v900_v12 = vpop.f32.mrb[25].mxu0 }
 0x1cf   : > { %v1168_v15 = vmul.f32 0.2, %v1104_v6  ;;  %v901_v16 = vadd.f32 %v900_v12, %v4540_v35  ;;  %1473 = vmatprep.mubr.f32.mxu1 %v1230_v9 }
 0x1d0   : > { %v1105_v17 = vadd.f32 %v1041_v8, %v899_v11  ;;  %1474 = vmatmul.mubr.f32.gmra.mrb[20].mxu1 %v1229_v14  ;;  %v1231_v26 = vmax.f32 %v1103_v4, %v1167_v10  ;;  %v1051_v8 = vld [vmem:[%s4201_s29 + $0x110] sm:$0xff] }
 0x1d1   : > { %v1106_v18 = vadd.f32 %v1042_v13, %v901_v16  ;;  %v904_v19 = vpop.f32.mrb[26].mxu0  ;;  %v1232_v21 = vmax.f32 %v1104_v6, %v1168_v15  ;;  %v1052_v13 = vld [vmem:[%s4201_s29 + $0x118] sm:$0xff] }
 0x1d2   : > { %v1169_v22 = vmul.f32 0.2, %v1105_v17  ;;  %v905_v23 = vadd.f32 %v904_v19, %v4537_v32  ;;  %v906_v24 = vpop.f32.mrb[27].mxu0 }
 0x1d3   : > { %v1170_v27 = vmul.f32 0.2, %v1106_v18  ;;  %v907_v28 = vadd.f32 %v906_v24, %v4540_v35  ;;  %1479 = vmatprep.mubr.f32.mxu1 %v1232_v21 }
 0x1d4   : > { %v1107_v1 = vadd.f32 %v1043_v20, %v905_v23  ;;  %1480 = vmatmul.mubr.f32.gmra.mrb[22].mxu1 %v1231_v26  ;;  %v1233_v41 = vmax.f32 %v1105_v17, %v1169_v22  ;;  %v1053_v20 = vld [vmem:[%s4201_s29 + $0x120] sm:$0xff] }
 0x1d5   : > { %v1108_v30 = vadd.f32 %v1044_v25, %v907_v28  ;;  %v910_v33 = vpop.f32.mrb[28].mxu0  ;;  %v1234_v36 = vmax.f32 %v1106_v18, %v1170_v27  ;;  %v1054_v25 = vld [vmem:[%s4201_s29 + $0x128] sm:$0xff] }
 0x1d6   : > { %v1171_v37 = vmul.f32 0.2, %v1107_v1  ;;  %v911_v38 = vadd.f32 %v910_v33, %v4537_v32  ;;  %v912_v39 = vpop.f32.mrb[29].mxu0 }
 0x1d7   : > { %v1172_v42 = vmul.f32 0.2, %v1108_v30  ;;  %v913_v43 = vadd.f32 %v912_v39, %v4540_v35  ;;  %1485 = vmatprep.mubr.f32.mxu1 %v1234_v36 }
 0x1d8   : > { %v1109_v44 = vadd.f32 %v1045_v34, %v911_v38  ;;  %1486 = vmatmul.mubr.f32.gmra.mrb[24].mxu1 %v1233_v41  ;;  %v1235_v53 = vmax.f32 %v1107_v1, %v1171_v37  ;;  %v1055_v34 = vld [vmem:[%s4201_s29 + $0x130] sm:$0xff] }
 0x1d9   : > { %v1110_v45 = vadd.f32 %v1046_v40, %v913_v43  ;;  %v916_v46 = vpop.f32.mrb[30].mxu0  ;;  %v1236_v48 = vmax.f32 %v1108_v30, %v1172_v42  ;;  %v1056_v40 = vld [vmem:[%s4201_s29 + $0x138] sm:$0xff] }
 0x1da   : > { %v1173_v49 = vmul.f32 0.2, %v1109_v44  ;;  %v917_v50 = vadd.f32 %v916_v46, %v4537_v32  ;;  %v918_v51 = vpop.f32.mrb[31].mxu0 }
 0x1db   : > { %v1174_v54 = vmul.f32 0.2, %v1110_v45  ;;  %v919_v55 = vadd.f32 %v918_v51, %v4540_v35  ;;  %1491 = vmatprep.mubr.f32.mxu1 %v1236_v48 }
 0x1dc   : > { %v1111_v56 = vadd.f32 %v1047_v47, %v917_v50  ;;  %1492 = vmatmul.mubr.f32.gmra.mrb[26].mxu1 %v1235_v53  ;;  %v1237_v2 = vmax.f32 %v1109_v44, %v1173_v49  ;;  %v1057_v47 = vld [vmem:[%s4201_s29 + $0x140] sm:$0xff] }
 0x1dd   : > { %v1112_v57 = vadd.f32 %v1048_v52, %v919_v55  ;;  %v922_v58 = vpop.f32.mrb[32].mxu0  ;;  %v1238_v60 = vmax.f32 %v1110_v45, %v1174_v54  ;;  %v1058_v52 = vld [vmem:[%s4201_s29 + $0x148] sm:$0xff] }
 0x1de   : > { %v1175_v61 = vmul.f32 0.2, %v1111_v56  ;;  %v923_v62 = vadd.f32 %v922_v58, %v4537_v32  ;;  %v924_v63 = vpop.f32.mrb[33].mxu0 }
 0x1df   : > { %v1176_v3 = vmul.f32 0.2, %v1112_v57  ;;  %v925_v4 = vadd.f32 %v924_v63, %v4540_v35  ;;  %1497 = vmatprep.mubr.f32.mxu1 %v1238_v60 }
 0x1e0   : > { %v1113_v5 = vadd.f32 %v1049_v59, %v923_v62  ;;  %1498 = vmatmul.mubr.f32.gmra.mrb[28].mxu1 %v1237_v2  ;;  %v1239_v14 = vmax.f32 %v1111_v56, %v1175_v61  ;;  %v1059_v59 = vld [vmem:[%s4201_s29 + $0x150] sm:$0xff] }
 0x1e1   : > { %v1114_v6 = vadd.f32 %v1050_v0, %v925_v4  ;;  %v928_v7 = vpop.f32.mrb[34].mxu0  ;;  %v1240_v9 = vmax.f32 %v1112_v57, %v1176_v3  ;;  %v1060_v0 = vld [vmem:[%s4201_s29 + $0x158] sm:$0xff] }
 0x1e2   : > { %v1177_v10 = vmul.f32 0.2, %v1113_v5  ;;  %v929_v11 = vadd.f32 %v928_v7, %v4537_v32  ;;  %v930_v12 = vpop.f32.mrb[35].mxu0 }
 0x1e3   : > { %v1178_v15 = vmul.f32 0.2, %v1114_v6  ;;  %v931_v16 = vadd.f32 %v930_v12, %v4540_v35  ;;  %1503 = vmatprep.mubr.f32.mxu1 %v1240_v9 }
 0x1e4   : > { %v1115_v17 = vadd.f32 %v1051_v8, %v929_v11  ;;  %1504 = vmatmul.mubr.f32.gmra.mrb[30].mxu1 %v1239_v14  ;;  %v1241_v26 = vmax.f32 %v1113_v5, %v1177_v10  ;;  %v1061_v8 = vld [vmem:[%s4201_s29 + $0x160] sm:$0xff] }
 0x1e5   : > { %v1116_v18 = vadd.f32 %v1052_v13, %v931_v16  ;;  %v934_v19 = vpop.f32.mrb[36].mxu0  ;;  %v1242_v21 = vmax.f32 %v1114_v6, %v1178_v15  ;;  %v1062_v13 = vld [vmem:[%s4201_s29 + $0x168] sm:$0xff] }
 0x1e6   : > { %v1179_v22 = vmul.f32 0.2, %v1115_v17  ;;  %v935_v23 = vadd.f32 %v934_v19, %v4537_v32  ;;  %v936_v24 = vpop.f32.mrb[37].mxu0 }
 0x1e7   : > { %v1180_v27 = vmul.f32 0.2, %v1116_v18  ;;  %v937_v28 = vadd.f32 %v936_v24, %v4540_v35  ;;  %1509 = vmatprep.mubr.f32.mxu1 %v1242_v21 }
 0x1e8   : > { %v1117_v1 = vadd.f32 %v1053_v20, %v935_v23  ;;  %1510 = vmatmul.mubr.f32.gmra.mrb[32].mxu1 %v1241_v26  ;;  %v1243_v41 = vmax.f32 %v1115_v17, %v1179_v22  ;;  %v1063_v20 = vld [vmem:[%s4201_s29 + $0x170] sm:$0xff] }
 0x1e9   : > { %v1118_v30 = vadd.f32 %v1054_v25, %v937_v28  ;;  %v940_v33 = vpop.f32.mrb[38].mxu0  ;;  %v1244_v36 = vmax.f32 %v1116_v18, %v1180_v27  ;;  %v1064_v25 = vld [vmem:[%s4201_s29 + $0x178] sm:$0xff] }
 0x1ea   : > { %v1181_v37 = vmul.f32 0.2, %v1117_v1  ;;  %v941_v38 = vadd.f32 %v940_v33, %v4537_v32  ;;  %v942_v39 = vpop.f32.mrb[39].mxu0 }
 0x1eb   : > { %v1182_v42 = vmul.f32 0.2, %v1118_v30  ;;  %v943_v43 = vadd.f32 %v942_v39, %v4540_v35  ;;  %1515 = vmatprep.mubr.f32.mxu1 %v1244_v36 }
 0x1ec   : > { %v1119_v44 = vadd.f32 %v1055_v34, %v941_v38  ;;  %1516 = vmatmul.mubr.f32.gmra.mrb[34].mxu1 %v1243_v41  ;;  %v1245_v53 = vmax.f32 %v1117_v1, %v1181_v37  ;;  %v1065_v34 = vld [vmem:[%s4201_s29 + $0x180] sm:$0xff] }
 0x1ed   : > { %v1120_v45 = vadd.f32 %v1056_v40, %v943_v43  ;;  %v946_v46 = vpop.f32.mrb[40].mxu0  ;;  %v1246_v48 = vmax.f32 %v1118_v30, %v1182_v42  ;;  %v1066_v40 = vld [vmem:[%s4201_s29 + $0x188] sm:$0xff] }
 0x1ee   : > { %v1183_v49 = vmul.f32 0.2, %v1119_v44  ;;  %v947_v50 = vadd.f32 %v946_v46, %v4537_v32  ;;  %v948_v51 = vpop.f32.mrb[41].mxu0 }
 0x1ef   : > { %v1184_v54 = vmul.f32 0.2, %v1120_v45  ;;  %v949_v55 = vadd.f32 %v948_v51, %v4540_v35  ;;  %1521 = vmatprep.mubr.f32.mxu1 %v1246_v48  ;;  %v1922_v48 = vld [vmem:[#allocation8 + $0x1e0] sm:$0xff] }
 0x1f0   : > { %v1121_v56 = vadd.f32 %v1057_v47, %v947_v50  ;;  %1522 = vmatmul.mubr.f32.gmra.mrb[36].mxu1 %v1245_v53  ;;  %v1247_v2 = vmax.f32 %v1119_v44, %v1183_v49  ;;  %v1923_v44 = vld [vmem:[#allocation8 + $0x1e8] sm:$0xff]  ;;  %v1924_v49 = vld [vmem:[#allocation8 + $0x1f0] sm:$0xff] }
 0x1f1   : > { %v1122_v57 = vadd.f32 %v1058_v52, %v949_v55  ;;  %v952_v58 = vpop.f32.mrb[42].mxu0  ;;  %v1248_v60 = vmax.f32 %v1120_v45, %v1184_v54  ;;  %v1925_v45 = vld [vmem:[#allocation8 + $0x1f8] sm:$0xff]  ;;  %v1067_v52 = vld [vmem:[%s4201_s29 + $0x190] sm:$0xff]  ;;  %v3462_v54 = vpack.c.bf16 %v1924_v49, %v1922_v48 }
 0x1f2   : > { %v1185_v61 = vmul.f32 0.2, %v1121_v56  ;;  %v953_v62 = vadd.f32 %v952_v58, %v4537_v32  ;;  %v954_v63 = vpop.f32.mrb[43].mxu0  ;;  %v3460_v47 = vpack.c.bf16 %v1925_v45, %v1923_v44  ;;  %v1068_v58 = vld [vmem:[%s4201_s29 + $0x198] sm:$0xff] }
 0x1f3   : > { %v1186_v3 = vmul.f32 0.2, %v1122_v57  ;;  %v955_v4 = vadd.f32 %v954_v63, %v4540_v35  ;;  %1527 = vmatprep.mubr.f32.mxu1 %v1248_v60 }
 0x1f4   : > { %v1123_v5 = vadd.f32 %v1059_v59, %v953_v62  ;;  %1528 = vmatmul.mubr.f32.gmra.mrb[38].mxu1 %v1247_v2  ;;  %v1249_v14 = vmax.f32 %v1121_v56, %v1185_v61  ;;  %3461 = vmatprep.subr.bf16.mxu0 %v3460_v47  ;;  %v1069_v2 = vld [vmem:[%s4201_s29 + $0x1a0] sm:$0xff] }
 0x1f5   : > { %v1124_v6 = vadd.f32 %v1060_v0, %v955_v4  ;;  %v958_v7 = vpop.f32.mrb[44].mxu0  ;;  %v1250_v9 = vmax.f32 %v1122_v57, %v1186_v3  ;;  %3463 = vmatpush1.bf16.msra.mxu0 %v3462_v54 }
 0x1f6   : > { %v1187_v10 = vmul.f32 0.2, %v1123_v5  ;;  %v959_v11 = vadd.f32 %v958_v7, %v4537_v32  ;;  %v960_v12 = vpop.f32.mrb[45].mxu0  ;;  %v1070_v7 = vld [vmem:[%s4201_s29 + $0x1a8] sm:$0xff] }
 0x1f7   : > { %v1188_v15 = vmul.f32 0.2, %v1124_v6  ;;  %v961_v16 = vadd.f32 %v960_v12, %v4540_v35  ;;  %1533 = vmatprep.mubr.f32.mxu1 %v1250_v9 }
 0x1f8   : > { %v1125_v17 = vadd.f32 %v1061_v8, %v959_v11  ;;  %1534 = vmatmul.mubr.f32.gmra.mrb[40].mxu1 %v1249_v14  ;;  %v1251_v26 = vmax.f32 %v1123_v5, %v1187_v10  ;;  %v1071_v14 = vld [vmem:[%s4201_s29 + $0x1b0] sm:$0xff] }
 0x1f9   : > { %v1126_v18 = vadd.f32 %v1062_v13, %v961_v16  ;;  %v964_v19 = vpop.f32.mrb[46].mxu0  ;;  %v1252_v21 = vmax.f32 %v1124_v6, %v1188_v15 }
 0x1fa   : > { %v1189_v22 = vmul.f32 0.2, %v1125_v17  ;;  %v965_v23 = vadd.f32 %v964_v19, %v4537_v32  ;;  %v966_v24 = vpop.f32.mrb[47].mxu0  ;;  %v1072_v19 = vld [vmem:[%s4201_s29 + $0x1b8] sm:$0xff] }
 0x1fb   : > { %v1190_v27 = vmul.f32 0.2, %v1126_v18  ;;  %v967_v28 = vadd.f32 %v966_v24, %v4540_v35  ;;  %1539 = vmatprep.mubr.f32.mxu1 %v1252_v21 }
 0x1fc   : > { %v1127_v1 = vadd.f32 %v1063_v20, %v965_v23  ;;  %1540 = vmatmul.mubr.f32.gmra.mrb[42].mxu1 %v1251_v26  ;;  %v1253_v41 = vmax.f32 %v1125_v17, %v1189_v22  ;;  %v1073_v26 = vld [vmem:[%s4201_s29 + $0x1c0] sm:$0xff] }
 0x1fd   : > { %v1128_v30 = vadd.f32 %v1064_v25, %v967_v28  ;;  %v970_v33 = vpop.f32.mrb[48].mxu0  ;;  %v1254_v36 = vmax.f32 %v1126_v18, %v1190_v27 }
 0x1fe   : > { %v1191_v37 = vmul.f32 0.2, %v1127_v1  ;;  %v971_v38 = vadd.f32 %v970_v33, %v4537_v32  ;;  %v972_v39 = vpop.f32.mrb[49].mxu0  ;;  %v1074_v33 = vld [vmem:[%s4201_s29 + $0x1c8] sm:$0xff] }
 0x1ff   : > { %v1192_v42 = vmul.f32 0.2, %v1128_v30  ;;  %v973_v43 = vadd.f32 %v972_v39, %v4540_v35  ;;  %1545 = vmatprep.mubr.f32.mxu1 %v1254_v36 }
 0x200   : > { %v1129_v46 = vadd.f32 %v1065_v34, %v971_v38  ;;  %1546 = vmatmul.mubr.f32.gmra.mrb[44].mxu1 %v1253_v41  ;;  %v1255_v59 = vmax.f32 %v1127_v1, %v1191_v37  ;;  %v1075_v41 = vld [vmem:[%s4201_s29 + $0x1d0] sm:$0xff] }
 0x201   : > { %v1130_v50 = vadd.f32 %v1066_v40, %v973_v43  ;;  %v976_v51 = vpop.f32.mrb[50].mxu0  ;;  %v1256_v53 = vmax.f32 %v1128_v30, %v1192_v42 }
 0x202   : > { %v1193_v55 = vmul.f32 0.2, %v1129_v46  ;;  %v977_v56 = vadd.f32 %v976_v51, %v4537_v32  ;;  %v978_v57 = vpop.f32.mrb[51].mxu0 }
 0x203   : > { %v1194_v60 = vmul.f32 0.2, %v1130_v50  ;;  %v979_v61 = vadd.f32 %v978_v57, %v4540_v35  ;;  %1551 = vmatprep.mubr.f32.mxu1 %v1256_v53  ;;  %v1077_v53 = vld [vmem:[%s4201_s29 + $0x1e0] sm:$0xff] }
 0x204   : > { %v1131_v62 = vadd.f32 %v1067_v52, %v977_v56  ;;  %1552 = vmatmul.mubr.f32.gmra.mrb[46].mxu1 %v1255_v59  ;;  %v1257_v8 = vmax.f32 %v1129_v46, %v1193_v55  ;;  %v1076_v46 = vld [vmem:[%s4201_s29 + $0x1d8] sm:$0xff] }
 0x205   : > { %v1132_v63 = vadd.f32 %v1068_v58, %v979_v61  ;;  %v982_v0 = vpop.f32.mrb[52].mxu0  ;;  %v1258_v3 = vmax.f32 %v1130_v50, %v1194_v60  ;;  %v1078_v58 = vld [vmem:[%s4201_s29 + $0x1e8] sm:$0xff] }
 0x206   : > { %v1195_v4 = vmul.f32 0.2, %v1131_v62  ;;  %v983_v5 = vadd.f32 %v982_v0, %v4537_v32  ;;  %v984_v6 = vpop.f32.mrb[53].mxu0 }
 0x207   : > { %v1196_v9 = vmul.f32 0.2, %v1132_v63  ;;  %v985_v10 = vadd.f32 %v984_v6, %v4540_v35  ;;  %1557 = vmatprep.mubr.f32.mxu1 %v1258_v3 }
 0x208   : > { %v1133_v11 = vadd.f32 %v1069_v2, %v983_v5  ;;  %1558 = vmatmul.mubr.f32.gmra.mrb[48].mxu1 %v1257_v8  ;;  %v1259_v20 = vmax.f32 %v1131_v62, %v1195_v4  ;;  %v1079_v2 = vld [vmem:[%s4201_s29 + $0x1f0] sm:$0xff] }
 0x209   : > { %v1134_v12 = vadd.f32 %v1070_v7, %v985_v10  ;;  %v988_v13 = vpop.f32.mrb[54].mxu0  ;;  %v1260_v15 = vmax.f32 %v1132_v63, %v1196_v9  ;;  %v1080_v7 = vld [vmem:[%s4201_s29 + $0x1f8] sm:$0xff] }
 0x20a   : > { %v1197_v16 = vmul.f32 0.2, %v1133_v11  ;;  %v989_v17 = vadd.f32 %v988_v13, %v4537_v32  ;;  %v990_v18 = vpop.f32.mrb[55].mxu0 }
 0x20b   : > { %v1198_v21 = vmul.f32 0.2, %v1134_v12  ;;  %v991_v22 = vadd.f32 %v990_v18, %v4540_v35  ;;  %1563 = vmatprep.mubr.f32.mxu1 %v1260_v15 }
 0x20c   : > { %v1135_v23 = vadd.f32 %v1071_v14, %v989_v17  ;;  %1564 = vmatmul.mubr.f32.gmra.mrb[50].mxu1 %v1259_v20  ;;  %v1261_v34 = vmax.f32 %v1133_v11, %v1197_v16 }
 0x20d   : > { %v1136_v24 = vadd.f32 %v1072_v19, %v991_v22  ;;  %v994_v25 = vpop.f32.mrb[56].mxu0  ;;  %v1262_v27 = vmax.f32 %v1134_v12, %v1198_v21  ;;  %v1606_v21 = vld [vmem:[%s4195_s30] sm:$0xff] }
 0x20e   : > { %v1199_v28 = vmul.f32 0.2, %v1135_v23  ;;  %v995_v1 = vadd.f32 %v994_v25, %v4537_v32  ;;  %v996_v30 = vpop.f32.mrb[57].mxu0 }
 0x20f   : > { %v1200_v36 = vmul.f32 0.2, %v1136_v24  ;;  %v997_v37 = vadd.f32 %v996_v30, %v4540_v35  ;;  %1569 = vmatprep.mubr.f32.mxu1 %v1262_v27  ;;  %v2451_v27 = vld [vmem:[%s5325_s10] sm:$0xff] }
 0x210   : > { %v1137_v38 = vadd.f32 %v1073_v26, %v995_v1  ;;  %1570 = vmatmul.mubr.f32.gmra.mrb[52].mxu1 %v1261_v34  ;;  %v1263_v47 = vmax.f32 %v1135_v23, %v1199_v28  ;;  %v2452_v28 = vld [vmem:[%s5325_s10 + $0x8] sm:$0xff]  ;;  %v3897_v34 = vmov 0.0|0.0  }
 0x211   : > { %v1138_v39 = vadd.f32 %v1074_v33, %v997_v37  ;;  %v1000_v40 = vpop.f32.mrb[58].mxu0  ;;  %v1264_v42 = vmax.f32 %v1136_v24, %v1200_v36  ;;  %v1607_v24 = vld [vmem:[%s4195_s30 + $0x8] sm:$0xff]  ;;  %v1608_v33 = vld [vmem:[%s4195_s30 + $0x10] sm:$0xff]  ;;  %3512 = vmatprep.subr.bf16.mxu1 %v3897_v34  ;;  %v3465_v36 = vpack.c.bf16 %v2452_v28, %v2451_v27  ;;  %3464 = vmatprep.subr.bf16.mxu0 %v3897_v34 }
 0x212   : > { %v1201_v43 = vmul.f32 0.2, %v1137_v38  ;;  %v1001_v44 = vadd.f32 %v1000_v40, %v4537_v32  ;;  %v1002_v45 = vpop.f32.mrb[59].mxu0  ;;  %v1609_v40 = vld [vmem:[%s4195_s30 + $0x18] sm:$0xff] }
 0x213   : > { %v1202_v48 = vmul.f32 0.2, %v1138_v39  ;;  %v1003_v49 = vadd.f32 %v1002_v45, %v4540_v35  ;;  %1575 = vmatprep.mubr.f32.mxu1 %v1264_v42  ;;  %3528 = vmatpush1.bf16.msra.mxu1 %v3465_v36  ;;  %v2454_v45 = vld [vmem:[%s5325_s10 + $0x18] sm:$0xff] }
 0x214   : > { %v1139_v50 = vadd.f32 %v1075_v41, %v1001_v44  ;;  %1576 = vmatmul.mubr.f32.gmra.mrb[54].mxu1 %v1263_v47  ;;  %v1265_v59 = vmax.f32 %v1137_v38, %v1201_v43  ;;  %3513 = vmatprep.subr.bf16.mxu1 %v3897_v34  ;;  %v2453_v44 = vld [vmem:[%s5325_s10 + $0x10] sm:$0xff] }
 0x215   : > { %v1140_v51 = vadd.f32 %v1076_v46, %v1003_v49  ;;  %v1006_v52 = vpop.f32.mrb[60].mxu0  ;;  %v1266_v54 = vmax.f32 %v1138_v39, %v1202_v48  ;;  %v1610_v48 = vld [vmem:[%s4195_s30 + $0x20] sm:$0xff] }
 0x216   : > { %v1203_v55 = vmul.f32 0.2, %v1139_v50  ;;  %v1007_v56 = vadd.f32 %v1006_v52, %v4537_v32  ;;  %v1008_v57 = vpop.f32.mrb[61].mxu0 }
 0x217   : > { %v1204_v60 = vmul.f32 0.2, %v1140_v51  ;;  %v1009_v61 = vadd.f32 %v1008_v57, %v4540_v35  ;;  %1581 = vmatprep.mubr.f32.mxu1 %v1266_v54  ;;  %v2456_v57 = vld [vmem:[%s5325_s10 + $0x28] sm:$0xff] }
 0x218   : > { %v1141_v62 = vadd.f32 %v1077_v53, %v1007_v56  ;;  %1582 = vmatmul.mubr.f32.gmra.mrb[56].mxu1 %v1265_v59  ;;  %v1267_v8 = vmax.f32 %v1139_v50, %v1203_v55  ;;  %v3468_v50 = vpack.c.bf16 %v2454_v45, %v2453_v44  ;;  %v1611_v55 = vld [vmem:[%s4195_s30 + $0x28] sm:$0xff]  ;;  %v2455_v56 = vld [vmem:[%s5325_s10 + $0x20] sm:$0xff] }
 0x219   : > { %v1142_v63 = vadd.f32 %v1078_v58, %v1009_v61  ;;  %v1012_v0 = vpop.f32.mrb[62].mxu0  ;;  %v1268_v3 = vmax.f32 %v1140_v51, %v1204_v60 }
 0x21a   : > { %v1205_v4 = vmul.f32 0.2, %v1141_v62  ;;  %v1013_v5 = vadd.f32 %v1012_v0, %v4537_v32  ;;  %v1014_v6 = vpop.f32.mrb[63].mxu0  ;;  %3529 = vmatpush1.bf16.msra.mxu1 %v3468_v50 }
 0x21b   : > { %v1206_v9 = vmul.f32 0.2, %v1142_v63  ;;  %v1015_v10 = vadd.f32 %v1014_v6, %v4540_v35  ;;  %1587 = vmatprep.mubr.f32.mxu1 %v1268_v3  ;;  %v1337_v35 = vld [vmem:[%s5322_s7] sm:$0x3]  ;;  %3514 = vmatprep.subr.bf16.mxu1 %v3897_v34 }
 0x21c   : > { %v1143_v11 = vadd.f32 %v1079_v2, %v1013_v5  ;;  %1588 = vmatmul.mubr.f32.gmra.mrb[58].mxu1 %v1267_v8  ;;  %v1269_v15 = vmax.f32 %v1141_v62, %v1205_v4  ;;  %v4674_v18 = vrot.slane %v1337_v35, %v4529_v29  ;;  %v4677_v19 = vrot.slane %v1337_v35, %v4534_v31  ;;  %v1613_v6 = vld [vmem:[%s4195_s30 + $0x38] sm:$0xff]  ;;  %v2457_v8 = vld [vmem:[%s5325_s10 + $0x30] sm:$0xff] }
 0x21d   : > { %v1144_v12 = vadd.f32 %v1080_v7, %v1015_v10  ;;  %v1270_v13 = vmax.f32 %v1142_v63, %v1206_v9  ;;  %v1612_v63 = vld [vmem:[%s4195_s30 + $0x30] sm:$0xff]  ;;  %v3471_v2 = vpack.c.bf16 %v2456_v57, %v2455_v56  ;;  %v2463_v57 = vld [vmem:[%s5325_s10 + $0x60] sm:$0xff] }
 0x21e   : > { %v1207_v14 = vmul.f32 0.2, %v1143_v11  ;;  %v2458_v9 = vld [vmem:[%s5325_s10 + $0x38] sm:$0xff] }
 0x21f   : > { %v1208_v16 = vmul.f32 0.2, %v1144_v12  ;;  %1593 = vmatprep.mubr.f32.mxu1 %v1270_v13  ;;  %3530 = vmatpush1.bf16.msra.mxu1 %v3471_v2 }
 0x220   : > { %1594 = vmatmul.mubr.f32.gmra.mrb[60].mxu1 %v1269_v15  ;;  %v1271_v32 = vmax.f32 %v1143_v11, %v1207_v14  ;;  %3515 = vmatprep.subr.bf16.mxu1 %v3897_v34  ;;  %v1614_v15 = vld [vmem:[%s4195_s30 + $0x40] sm:$0xff] }
 0x221   : > { %v1272_v17 = vmax.f32 %v1144_v12, %v1208_v16 }
 0x223   : > { %1599 = vmatprep.mubr.f32.mxu1 %v1272_v17  ;;  %v3474_v17 = vpack.c.bf16 %v2458_v9, %v2457_v8  ;;  %v2465_v9 = vld [vmem:[%s5325_s10 + $0x70] sm:$0xff] }
 0x224   : > { %1600 = vmatmul.mubr.f32.gmra.mrb[62].mxu1 %v1271_v32 }
 0x225   : > { %3531 = vmatpush1.bf16.msra.mxu1 %v3474_v17 }
 0x226   : > { %3516 = vmatprep.subr.bf16.mxu1 %v3897_v34 }
 0x27b   : > { %v1415_v20 = vpop.f32.mrb[0].mxu1 }
 0x27c   : > { %v1416_v22 = vadd.f32 %v1415_v20, %v4674_v18  ;;  %v1417_v23 = vpop.f32.mrb[1].mxu1 }
 0x27d   : > { %v1418_v25 = vadd.f32 %v1417_v23, %v4677_v19  ;;  %v2459_v23 = vld [vmem:[%s5325_s10 + $0x40] sm:$0xff] }
 0x27e   : > { %v1670_v26 = vadd.f32 %v1606_v21, %v1416_v22  ;;  %v1615_v21 = vld [vmem:[%s4195_s30 + $0x48] sm:$0xff] }
 0x27f   : > { %v1671_v1 = vadd.f32 %v1607_v24, %v1418_v25  ;;  %v1421_v30 = vpop.f32.mrb[2].mxu1  ;;  %v2460_v24 = vld [vmem:[%s5325_s10 + $0x48] sm:$0xff] }
 0x280   : > { %v1734_v37 = vmul.f32 0.2, %v1670_v26  ;;  %v1422_v38 = vadd.f32 %v1421_v30, %v4674_v18  ;;  %v1423_v39 = vpop.f32.mrb[3].mxu1  ;;  %v1616_v30 = vld [vmem:[%s4195_s30 + $0x50] sm:$0xff] }
 0x281   : > { %v1735_v41 = vmul.f32 0.2, %v1671_v1  ;;  %v1424_v42 = vadd.f32 %v1423_v39, %v4677_v19 }
 0x282   : > { %v1672_v43 = vadd.f32 %v1608_v33, %v1422_v38  ;;  %v1798_v51 = vmax.f32 %v1670_v26, %v1734_v37 }
 0x283   : > { %v1673_v46 = vadd.f32 %v1609_v40, %v1424_v42  ;;  %v1427_v47 = vpop.f32.mrb[4].mxu1  ;;  %v1799_v49 = vmax.f32 %v1671_v1, %v1735_v41  ;;  %v1617_v40 = vld [vmem:[%s4195_s30 + $0x58] sm:$0xff]  ;;  %v2461_v42 = vld [vmem:[%s5325_s10 + $0x50] sm:$0xff] }
 0x284   : > { %v1736_v52 = vmul.f32 0.2, %v1672_v43  ;;  %v1428_v53 = vadd.f32 %v1427_v47, %v4674_v18  ;;  %v1429_v54 = vpop.f32.mrb[5].mxu1 }
 0x285   : > { %v1737_v58 = vmul.f32 0.2, %v1673_v46  ;;  %v1430_v59 = vadd.f32 %v1429_v54, %v4677_v19  ;;  %2002 = vmatprep.mubr.f32.mxu0 %v1799_v49  ;;  %v1618_v49 = vld [vmem:[%s4195_s30 + $0x60] sm:$0xff] }
 0x286   : > { %v1674_v60 = vadd.f32 %v1610_v48, %v1428_v53  ;;  %2003 = vmatmul.mubr.f32.vlgmr.msra.gmra.mrb[64].mxu0 %v1798_v51  ;;  %v1800_v7 = vmax.f32 %v1672_v43, %v1736_v52  ;;  %v2462_v43 = vld [vmem:[%s5325_s10 + $0x58] sm:$0xff] }
 0x287   : > { %v1675_v61 = vadd.f32 %v1611_v55, %v1430_v59  ;;  %v1433_v62 = vpop.f32.mrb[6].mxu1  ;;  %v1801_v0 = vmax.f32 %v1673_v46, %v1737_v58  ;;  %3466 = vmatpush1.bf16.msra.mxu0 %v3465_v36  ;;  %v3477_v36 = vpack.c.bf16 %v2460_v24, %v2459_v23  ;;  %v3480_v51 = vpack.c.bf16 %v2462_v43, %v2461_v42  ;;  %v1619_v55 = vld [vmem:[%s4195_s30 + $0x68] sm:$0xff]  ;;  %v2467_v24 = vld [vmem:[%s5325_s10 + $0x80] sm:$0xff] }
 0x288   : > { %v1738_v3 = vmul.f32 0.2, %v1674_v60  ;;  %v1434_v4 = vadd.f32 %v1433_v62, %v4674_v18  ;;  %v1435_v5 = vpop.f32.mrb[7].mxu1  ;;  %3467 = vmatprep.subr.bf16.mxu0 %v3897_v34  ;;  %v2464_v58 = vld [vmem:[%s5325_s10 + $0x68] sm:$0xff]  ;;  %v2469_v43 = vld [vmem:[%s5325_s10 + $0x90] sm:$0xff] }
 0x289   : > { %v1739_v10 = vmul.f32 0.2, %v1675_v61  ;;  %v1436_v11 = vadd.f32 %v1435_v5, %v4677_v19  ;;  %2008 = vmatprep.mubr.f32.mxu0 %v1801_v0  ;;  %3532 = vmatpush1.bf16.msra.mxu1 %v3477_v36  ;;  %v1620_v0 = vld [vmem:[%s4195_s30 + $0x70] sm:$0xff] }
 0x28a   : > { %v1676_v12 = vadd.f32 %v1612_v63, %v1434_v4  ;;  %2009 = vmatmul.mubr.f32.gmra.mrb[66].mxu0 %v1800_v7  ;;  %v1802_v22 = vmax.f32 %v1674_v60, %v1738_v3  ;;  %3517 = vmatprep.subr.bf16.mxu1 %v3897_v34  ;;  %v3483_v3 = vpack.c.bf16 %v2464_v58, %v2463_v57  ;;  %v1621_v7 = vld [vmem:[%s4195_s30 + $0x78] sm:$0xff] }
 0x28b   : > { %v1677_v13 = vadd.f32 %v1613_v6, %v1436_v11  ;;  %v1439_v14 = vpop.f32.mrb[8].mxu1  ;;  %v1803_v16 = vmax.f32 %v1675_v61, %v1739_v10  ;;  %3469 = vmatpush1.bf16.msra.mxu0 %v3468_v50  ;;  %v2466_v10 = vld [vmem:[%s5325_s10 + $0x78] sm:$0xff]  ;;  %v2471_v58 = vld [vmem:[%s5325_s10 + $0xa0] sm:$0xff] }
 0x28c   : > { %v1740_v32 = vmul.f32 0.2, %v1676_v12  ;;  %v1440_v35 = vadd.f32 %v1439_v14, %v4674_v18  ;;  %v1441_v20 = vpop.f32.mrb[9].mxu1  ;;  %3470 = vmatprep.subr.bf16.mxu0 %v3897_v34 }
 0x28d   : > { %v1741_v25 = vmul.f32 0.2, %v1677_v13  ;;  %v1442_v26 = vadd.f32 %v1441_v20, %v4677_v19  ;;  %2014 = vmatprep.mubr.f32.mxu0 %v1803_v16  ;;  %3533 = vmatpush1.bf16.msra.mxu1 %v3480_v51  ;;  %v1622_v16 = vld [vmem:[%s4195_s30 + $0x80] sm:$0xff] }
 0x28e   : > { %v1678_v27 = vadd.f32 %v1614_v15, %v1440_v35  ;;  %2015 = vmatmul.mubr.f32.gmra.mrb[68].mxu0 %v1802_v22  ;;  %v1804_v41 = vmax.f32 %v1676_v12, %v1740_v32  ;;  %3518 = vmatprep.subr.bf16.mxu1 %v3897_v34  ;;  %v3486_v32 = vpack.c.bf16 %v2466_v10, %v2465_v9  ;;  %v1623_v22 = vld [vmem:[%s4195_s30 + $0x88] sm:$0xff] }
 0x28f   : > { %v1679_v28 = vadd.f32 %v1615_v21, %v1442_v26  ;;  %v1445_v1 = vpop.f32.mrb[10].mxu1  ;;  %v1805_v33 = vmax.f32 %v1677_v13, %v1741_v25  ;;  %3472 = vmatpush1.bf16.msra.mxu0 %v3471_v2  ;;  %v2468_v25 = vld [vmem:[%s5325_s10 + $0x88] sm:$0xff]  ;;  %v2473_v10 = vld [vmem:[%s5325_s10 + $0xb0] sm:$0xff] }
 0x290   : > { %v1742_v37 = vmul.f32 0.2, %v1678_v27  ;;  %v1446_v38 = vadd.f32 %v1445_v1, %v4674_v18  ;;  %v1447_v39 = vpop.f32.mrb[11].mxu1  ;;  %3473 = vmatprep.subr.bf16.mxu0 %v3897_v34 }
 0x291   : > { %v1743_v44 = vmul.f32 0.2, %v1679_v28  ;;  %v1448_v45 = vadd.f32 %v1447_v39, %v4677_v19  ;;  %2020 = vmatprep.mubr.f32.mxu0 %v1805_v33  ;;  %3534 = vmatpush1.bf16.msra.mxu1 %v3483_v3  ;;  %v1624_v33 = vld [vmem:[%s4195_s30 + $0x90] sm:$0xff] }
 0x292   : > { %v1680_v46 = vadd.f32 %v1616_v30, %v1446_v38  ;;  %2021 = vmatmul.mubr.f32.gmra.mrb[70].mxu0 %v1804_v41  ;;  %v1806_v56 = vmax.f32 %v1678_v27, %v1742_v37  ;;  %3519 = vmatprep.subr.bf16.mxu1 %v3897_v34  ;;  %v3489_v37 = vpack.c.bf16 %v2468_v25, %v2467_v24  ;;  %v1625_v41 = vld [vmem:[%s4195_s30 + $0x98] sm:$0xff] }
 0x293   : > { %v1681_v47 = vadd.f32 %v1617_v40, %v1448_v45  ;;  %v1451_v48 = vpop.f32.mrb[12].mxu1  ;;  %v1807_v50 = vmax.f32 %v1679_v28, %v1743_v44  ;;  %3475 = vmatpush1.bf16.msra.mxu0 %v3474_v17  ;;  %v2470_v44 = vld [vmem:[%s5325_s10 + $0x98] sm:$0xff]  ;;  %v2475_v25 = vld [vmem:[%s5325_s10 + $0xc0] sm:$0xff] }
 0x294   : > { %v1744_v52 = vmul.f32 0.2, %v1680_v46  ;;  %v1452_v53 = vadd.f32 %v1451_v48, %v4674_v18  ;;  %v1453_v54 = vpop.f32.mrb[13].mxu1  ;;  %3476 = vmatprep.subr.bf16.mxu0 %v3897_v34 }
 0x295   : > { %v1745_v59 = vmul.f32 0.2, %v1681_v47  ;;  %v1454_v60 = vadd.f32 %v1453_v54, %v4677_v19  ;;  %2026 = vmatprep.mubr.f32.mxu0 %v1807_v50  ;;  %3535 = vmatpush1.bf16.msra.mxu1 %v3486_v32  ;;  %v1626_v50 = vld [vmem:[%s4195_s30 + $0xa0] sm:$0xff] }
 0x296   : > { %v1682_v61 = vadd.f32 %v1618_v49, %v1452_v53  ;;  %2027 = vmatmul.mubr.f32.gmra.mrb[72].mxu0 %v1806_v56  ;;  %v1808_v8 = vmax.f32 %v1680_v46, %v1744_v52  ;;  %3520 = vmatprep.subr.bf16.mxu1 %v3897_v34  ;;  %v3492_v52 = vpack.c.bf16 %v2470_v44, %v2469_v43  ;;  %v1627_v56 = vld [vmem:[%s4195_s30 + $0xa8] sm:$0xff] }
 0x297   : > { %v1683_v62 = vadd.f32 %v1619_v55, %v1454_v60  ;;  %v1457_v63 = vpop.f32.mrb[14].mxu1  ;;  %v1809_v2 = vmax.f32 %v1681_v47, %v1745_v59  ;;  %3478 = vmatpush1.bf16.msra.mxu0 %v3477_v36  ;;  %v2472_v59 = vld [vmem:[%s5325_s10 + $0xa8] sm:$0xff] }
 0x298   : > { %v1746_v4 = vmul.f32 0.2, %v1682_v61  ;;  %v1458_v5 = vadd.f32 %v1457_v63, %v4674_v18  ;;  %v1459_v6 = vpop.f32.mrb[15].mxu1  ;;  %3479 = vmatprep.subr.bf16.mxu0 %v3897_v34 }
 0x299   : > { %v1747_v11 = vmul.f32 0.2, %v1683_v62  ;;  %v1460_v12 = vadd.f32 %v1459_v6, %v4677_v19  ;;  %2032 = vmatprep.mubr.f32.mxu0 %v1809_v2  ;;  %3536 = vmatpush1.bf16.msra.mxu1 %v3489_v37  ;;  %v1628_v2 = vld [vmem:[%s4195_s30 + $0xb0] sm:$0xff] }
 0x29a   : > { %v1684_v13 = vadd.f32 %v1620_v0, %v1458_v5  ;;  %2033 = vmatmul.mubr.f32.gmra.mrb[74].mxu0 %v1808_v8  ;;  %v1810_v23 = vmax.f32 %v1682_v61, %v1746_v4  ;;  %3521 = vmatprep.subr.bf16.mxu1 %v3897_v34  ;;  %v3495_v4 = vpack.c.bf16 %v2472_v59, %v2471_v58  ;;  %v1629_v8 = vld [vmem:[%s4195_s30 + $0xb8] sm:$0xff] }
 0x29b   : > { %v1685_v14 = vadd.f32 %v1621_v7, %v1460_v12  ;;  %v1463_v15 = vpop.f32.mrb[16].mxu1  ;;  %v1811_v17 = vmax.f32 %v1683_v62, %v1747_v11  ;;  %3481 = vmatpush1.bf16.msra.mxu0 %v3480_v51  ;;  %v2474_v11 = vld [vmem:[%s5325_s10 + $0xb8] sm:$0xff] }
 0x29c   : > { %v1748_v35 = vmul.f32 0.2, %v1684_v13  ;;  %v1464_v20 = vadd.f32 %v1463_v15, %v4674_v18  ;;  %v1465_v21 = vpop.f32.mrb[17].mxu1  ;;  %3482 = vmatprep.subr.bf16.mxu0 %v3897_v34 }
 0x29d   : > { %v1749_v26 = vmul.f32 0.2, %v1685_v14  ;;  %v1466_v27 = vadd.f32 %v1465_v21, %v4677_v19  ;;  %2038 = vmatprep.mubr.f32.mxu0 %v1811_v17  ;;  %3537 = vmatpush1.bf16.msra.mxu1 %v3492_v52  ;;  %v1630_v17 = vld [vmem:[%s4195_s30 + $0xc0] sm:$0xff] }
 0x29e   : > { %v1686_v28 = vadd.f32 %v1622_v16, %v1464_v20  ;;  %2039 = vmatmul.mubr.f32.gmra.mrb[76].mxu0 %v1810_v23  ;;  %v1812_v42 = vmax.f32 %v1684_v13, %v1748_v35  ;;  %3522 = vmatprep.subr.bf16.mxu1 %v3897_v34  ;;  %v3498_v35 = vpack.c.bf16 %v2474_v11, %v2473_v10  ;;  %v1631_v23 = vld [vmem:[%s4195_s30 + $0xc8] sm:$0xff]  ;;  %v1638_v10 = vld [vmem:[%s4195_s30 + $0x100] sm:$0xff] }
 0x29f   : > { %v1687_v1 = vadd.f32 %v1623_v22, %v1466_v27  ;;  %v1469_v30 = vpop.f32.mrb[18].mxu1  ;;  %v1813_v36 = vmax.f32 %v1685_v14, %v1749_v26  ;;  %3484 = vmatpush1.bf16.msra.mxu0 %v3483_v3  ;;  %v2476_v26 = vld [vmem:[%s5325_s10 + $0xc8] sm:$0xff] }
 0x2a0   : > { %v1750_v38 = vmul.f32 0.2, %v1686_v28  ;;  %v1470_v39 = vadd.f32 %v1469_v30, %v4674_v18  ;;  %v1471_v40 = vpop.f32.mrb[19].mxu1  ;;  %3485 = vmatprep.subr.bf16.mxu0 %v3897_v34 }
 0x2a1   : > { %v1751_v45 = vmul.f32 0.2, %v1687_v1  ;;  %v1472_v46 = vadd.f32 %v1471_v40, %v4677_v19  ;;  %2044 = vmatprep.mubr.f32.mxu0 %v1813_v36  ;;  %3538 = vmatpush1.bf16.msra.mxu1 %v3495_v4  ;;  %v1632_v36 = vld [vmem:[%s4195_s30 + $0xd0] sm:$0xff] }
 0x2a2   : > { %v1688_v47 = vadd.f32 %v1624_v33, %v1470_v39  ;;  %2045 = vmatmul.mubr.f32.gmra.mrb[78].mxu0 %v1812_v42  ;;  %v1814_v57 = vmax.f32 %v1686_v28, %v1750_v38  ;;  %3523 = vmatprep.subr.bf16.mxu1 %v3897_v34  ;;  %v3501_v38 = vpack.c.bf16 %v2476_v26, %v2475_v25  ;;  %v1633_v42 = vld [vmem:[%s4195_s30 + $0xd8] sm:$0xff] }
 0x2a3   : > { %v1689_v48 = vadd.f32 %v1625_v41, %v1472_v46  ;;  %v1475_v49 = vpop.f32.mrb[20].mxu1  ;;  %v1815_v51 = vmax.f32 %v1687_v1, %v1751_v45  ;;  %3487 = vmatpush1.bf16.msra.mxu0 %v3486_v32 }
 0x2a4   : > { %v1752_v53 = vmul.f32 0.2, %v1688_v47  ;;  %v1476_v54 = vadd.f32 %v1475_v49, %v4674_v18  ;;  %v1477_v55 = vpop.f32.mrb[21].mxu1  ;;  %3488 = vmatprep.subr.bf16.mxu0 %v3897_v34  ;;  %v1634_v49 = vld [vmem:[%s4195_s30 + $0xe0] sm:$0xff] }
 0x2a5   : > { %v1753_v60 = vmul.f32 0.2, %v1689_v48  ;;  %v1478_v61 = vadd.f32 %v1477_v55, %v4677_v19  ;;  %2050 = vmatprep.mubr.f32.mxu0 %v1815_v51  ;;  %3539 = vmatpush1.bf16.msra.mxu1 %v3498_v35 }
 0x2a6   : > { %v1690_v62 = vadd.f32 %v1626_v50, %v1476_v54  ;;  %2051 = vmatmul.mubr.f32.gmra.mrb[80].mxu0 %v1814_v57  ;;  %v1816_v9 = vmax.f32 %v1688_v47, %v1752_v53  ;;  %3524 = vmatprep.subr.bf16.mxu1 %v3897_v34  ;;  %v1635_v54 = vld [vmem:[%s4195_s30 + $0xe8] sm:$0xff] }
 0x2a7   : > { %v1691_v63 = vadd.f32 %v1627_v56, %v1478_v61  ;;  %v1481_v0 = vpop.f32.mrb[22].mxu1  ;;  %v1817_v3 = vmax.f32 %v1689_v48, %v1753_v60  ;;  %3490 = vmatpush1.bf16.msra.mxu0 %v3489_v37  ;;  %v1636_v61 = vld [vmem:[%s4195_s30 + $0xf0] sm:$0xff] }
 0x2a8   : > { %v1754_v5 = vmul.f32 0.2, %v1690_v62  ;;  %v1482_v6 = vadd.f32 %v1481_v0, %v4674_v18  ;;  %v1483_v7 = vpop.f32.mrb[23].mxu1  ;;  %3491 = vmatprep.subr.bf16.mxu0 %v3897_v34 }
 0x2a9   : > { %v1755_v12 = vmul.f32 0.2, %v1691_v63  ;;  %v1484_v13 = vadd.f32 %v1483_v7, %v4677_v19  ;;  %2056 = vmatprep.mubr.f32.mxu0 %v1817_v3  ;;  %3540 = vmatpush1.bf16.msra.mxu1 %v3501_v38  ;;  %v1637_v3 = vld [vmem:[%s4195_s30 + $0xf8] sm:$0xff] }
 0x2aa   : > { %v1692_v14 = vadd.f32 %v1628_v2, %v1482_v6  ;;  %2057 = vmatmul.mubr.f32.gmra.mrb[82].mxu0 %v1816_v9  ;;  %v1818_v24 = vmax.f32 %v1690_v62, %v1754_v5  ;;  %3525 = vmatprep.subr.bf16.mxu1 %v3897_v34 }
 0x2ab   : > { %v1693_v15 = vadd.f32 %v1629_v8, %v1484_v13  ;;  %v1487_v16 = vpop.f32.mrb[24].mxu1  ;;  %v1819_v32 = vmax.f32 %v1691_v63, %v1755_v12  ;;  %3493 = vmatpush1.bf16.msra.mxu0 %v3492_v52 }
 0x2ac   : > { %v1756_v20 = vmul.f32 0.2, %v1692_v14  ;;  %v1488_v21 = vadd.f32 %v1487_v16, %v4674_v18  ;;  %v1489_v22 = vpop.f32.mrb[25].mxu1  ;;  %3494 = vmatprep.subr.bf16.mxu0 %v3897_v34 }
 0x2ad   : > { %v1757_v27 = vmul.f32 0.2, %v1693_v15  ;;  %v1490_v28 = vadd.f32 %v1489_v22, %v4677_v19  ;;  %2062 = vmatprep.mubr.f32.mxu0 %v1819_v32  ;;  %v1640_v22 = vld [vmem:[%s4195_s30 + $0x110] sm:$0xff] }
 0x2ae   : > { %v1694_v1 = vadd.f32 %v1630_v17, %v1488_v21  ;;  %2063 = vmatmul.mubr.f32.gmra.mrb[84].mxu0 %v1818_v24  ;;  %v1820_v43 = vmax.f32 %v1692_v14, %v1756_v20 }
 0x2af   : > { %v1695_v30 = vadd.f32 %v1631_v23, %v1490_v28  ;;  %v1493_v33 = vpop.f32.mrb[26].mxu1  ;;  %v1821_v37 = vmax.f32 %v1693_v15, %v1757_v27  ;;  %3496 = vmatpush1.bf16.msra.mxu0 %v3495_v4  ;;  %v1639_v15 = vld [vmem:[%s4195_s30 + $0x108] sm:$0xff]  ;;  %v1641_v27 = vld [vmem:[%s4195_s30 + $0x118] sm:$0xff] }
 0x2b0   : > { %v1758_v39 = vmul.f32 0.2, %v1694_v1  ;;  %v1494_v40 = vadd.f32 %v1493_v33, %v4674_v18  ;;  %v1495_v41 = vpop.f32.mrb[27].mxu1  ;;  %3497 = vmatprep.subr.bf16.mxu0 %v3897_v34 }
 0x2b1   : > { %v1759_v44 = vmul.f32 0.2, %v1695_v30  ;;  %v1496_v45 = vadd.f32 %v1495_v41, %v4677_v19  ;;  %2068 = vmatprep.mubr.f32.mxu0 %v1821_v37 }
 0x2b2   : > { %v1696_v46 = vadd.f32 %v1632_v36, %v1494_v40  ;;  %2069 = vmatmul.mubr.f32.gmra.mrb[86].mxu0 %v1820_v43  ;;  %v1822_v55 = vmax.f32 %v1694_v1, %v1758_v39  ;;  %v1643_v43 = vld [vmem:[%s4195_s30 + $0x128] sm:$0xff] }
 0x2b3   : > { %v1697_v47 = vadd.f32 %v1633_v42, %v1496_v45  ;;  %v1499_v48 = vpop.f32.mrb[28].mxu1  ;;  %v1823_v50 = vmax.f32 %v1695_v30, %v1759_v44  ;;  %3499 = vmatpush1.bf16.msra.mxu0 %v3498_v35 }
 0x2b4   : > { %v1760_v51 = vmul.f32 0.2, %v1696_v46  ;;  %v1500_v52 = vadd.f32 %v1499_v48, %v4674_v18  ;;  %v1501_v53 = vpop.f32.mrb[29].mxu1  ;;  %3500 = vmatprep.subr.bf16.mxu0 %v3897_v34 }
 0x2b5   : > { %v1761_v56 = vmul.f32 0.2, %v1697_v47  ;;  %v1502_v57 = vadd.f32 %v1501_v53, %v4677_v19  ;;  %2074 = vmatprep.mubr.f32.mxu0 %v1823_v50  ;;  %v1644_v50 = vld [vmem:[%s4195_s30 + $0x130] sm:$0xff] }
 0x2b6   : > { %v1698_v58 = vadd.f32 %v1634_v49, %v1500_v52  ;;  %2075 = vmatmul.mubr.f32.gmra.mrb[88].mxu0 %v1822_v55  ;;  %v1824_v4 = vmax.f32 %v1696_v46, %v1760_v51  ;;  %v1645_v55 = vld [vmem:[%s4195_s30 + $0x138] sm:$0xff] }
 0x2b7   : > { %v1699_v59 = vadd.f32 %v1635_v54, %v1502_v57  ;;  %v1505_v60 = vpop.f32.mrb[30].mxu1  ;;  %v1825_v62 = vmax.f32 %v1697_v47, %v1761_v56  ;;  %3502 = vmatpush1.bf16.msra.mxu0 %v3501_v38  ;;  %v1642_v38 = vld [vmem:[%s4195_s30 + $0x120] sm:$0xff] }
 0x2b8   : > { %v1762_v63 = vmul.f32 0.2, %v1698_v58  ;;  %v1506_v0 = vadd.f32 %v1505_v60, %v4674_v18  ;;  %v1507_v2 = vpop.f32.mrb[31].mxu1  ;;  %3503 = vmatprep.subr.bf16.mxu0 %v3897_v34 }
 0x2b9   : > { %v1763_v5 = vmul.f32 0.2, %v1699_v59  ;;  %v1508_v6 = vadd.f32 %v1507_v2, %v4677_v19  ;;  %2080 = vmatprep.mubr.f32.mxu0 %v1825_v62  ;;  %v1646_v62 = vld [vmem:[%s4195_s30 + $0x140] sm:$0xff] }
 0x2ba   : > { %v1700_v7 = vadd.f32 %v1636_v61, %v1506_v0  ;;  %2081 = vmatmul.mubr.f32.gmra.mrb[90].mxu0 %v1824_v4  ;;  %v1826_v16 = vmax.f32 %v1698_v58, %v1762_v63  ;;  %v1647_v4 = vld [vmem:[%s4195_s30 + $0x148] sm:$0xff] }
 0x2bb   : > { %v1701_v8 = vadd.f32 %v1637_v3, %v1508_v6  ;;  %v1511_v9 = vpop.f32.mrb[32].mxu1  ;;  %v1827_v11 = vmax.f32 %v1699_v59, %v1763_v5 }
 0x2bc   : > { %v1764_v12 = vmul.f32 0.2, %v1700_v7  ;;  %v1512_v13 = vadd.f32 %v1511_v9, %v4674_v18  ;;  %v1513_v14 = vpop.f32.mrb[33].mxu1 }
 0x2bd   : > { %v1765_v17 = vmul.f32 0.2, %v1701_v8  ;;  %v1514_v32 = vadd.f32 %v1513_v14, %v4677_v19  ;;  %2086 = vmatprep.mubr.f32.mxu0 %v1827_v11  ;;  %v1648_v11 = vld [vmem:[%s4195_s30 + $0x150] sm:$0xff] }
 0x2be   : > { %v1702_v35 = vadd.f32 %v1638_v10, %v1512_v13  ;;  %2087 = vmatmul.mubr.f32.gmra.mrb[92].mxu0 %v1826_v16  ;;  %v1828_v28 = vmax.f32 %v1700_v7, %v1764_v12  ;;  %v1649_v16 = vld [vmem:[%s4195_s30 + $0x158] sm:$0xff] }
 0x2bf   : > { %v1703_v20 = vadd.f32 %v1639_v15, %v1514_v32  ;;  %v1517_v21 = vpop.f32.mrb[34].mxu1  ;;  %v1829_v23 = vmax.f32 %v1701_v8, %v1765_v17 }
 0x2c0   : > { %v1766_v24 = vmul.f32 0.2, %v1702_v35  ;;  %v1518_v25 = vadd.f32 %v1517_v21, %v4674_v18  ;;  %v1519_v26 = vpop.f32.mrb[35].mxu1 }
 0x2c1   : > { %v1767_v1 = vmul.f32 0.2, %v1703_v20  ;;  %v1520_v30 = vadd.f32 %v1519_v26, %v4677_v19  ;;  %2092 = vmatprep.mubr.f32.mxu0 %v1829_v23  ;;  %v1650_v23 = vld [vmem:[%s4195_s30 + $0x160] sm:$0xff] }
 0x2c2   : > { %v1704_v33 = vadd.f32 %v1640_v22, %v1518_v25  ;;  %2093 = vmatmul.mubr.f32.gmra.mrb[94].mxu0 %v1828_v28  ;;  %v1830_v44 = vmax.f32 %v1702_v35, %v1766_v24  ;;  %v1651_v28 = vld [vmem:[%s4195_s30 + $0x168] sm:$0xff] }
 0x2c3   : > { %v1705_v36 = vadd.f32 %v1641_v27, %v1520_v30  ;;  %v1523_v37 = vpop.f32.mrb[36].mxu1  ;;  %v1831_v39 = vmax.f32 %v1703_v20, %v1767_v1 }
 0x2c4   : > { %v1768_v40 = vmul.f32 0.2, %v1704_v33  ;;  %v1524_v41 = vadd.f32 %v1523_v37, %v4674_v18  ;;  %v1525_v42 = vpop.f32.mrb[37].mxu1  ;;  %v2477_v37 = vld [vmem:[%s5325_s10 + $0xd0] sm:$0xff] }
 0x2c5   : > { %v1769_v45 = vmul.f32 0.2, %v1705_v36  ;;  %v1526_v46 = vadd.f32 %v1525_v42, %v4677_v19  ;;  %2098 = vmatprep.mubr.f32.mxu0 %v1831_v39 }
 0x2c6   : > { %v1706_v47 = vadd.f32 %v1642_v38, %v1524_v41  ;;  %2099 = vmatmul.mubr.f32.gmra.mrb[96].mxu0 %v1830_v44  ;;  %v1832_v56 = vmax.f32 %v1704_v33, %v1768_v40  ;;  %v2478_v38 = vld [vmem:[%s5325_s10 + $0xd8] sm:$0xff] }
 0x2c7   : > { %v1707_v48 = vadd.f32 %v1643_v43, %v1526_v46  ;;  %v1529_v49 = vpop.f32.mrb[38].mxu1  ;;  %v1833_v51 = vmax.f32 %v1705_v36, %v1769_v45  ;;  %v1652_v41 = vld [vmem:[%s4195_s30 + $0x170] sm:$0xff]  ;;  %v3504_v43 = vpack.c.bf16 %v2478_v38, %v2477_v37 }
 0x2c8   : > { %v1770_v52 = vmul.f32 0.2, %v1706_v47  ;;  %v1530_v53 = vadd.f32 %v1529_v49, %v4674_v18  ;;  %v1531_v54 = vpop.f32.mrb[39].mxu1 }
 0x2c9   : > { %v1771_v57 = vmul.f32 0.2, %v1707_v48  ;;  %v1532_v58 = vadd.f32 %v1531_v54, %v4677_v19  ;;  %2104 = vmatprep.mubr.f32.mxu0 %v1833_v51  ;;  %3505 = vmatpush1.bf16.msra.mxu0 %v3504_v43 }
 0x2ca   : > { %v1708_v59 = vadd.f32 %v1644_v50, %v1530_v53  ;;  %2105 = vmatmul.mubr.f32.gmra.mrb[98].mxu0 %v1832_v56  ;;  %v1834_v5 = vmax.f32 %v1706_v47, %v1770_v52  ;;  %v1653_v47 = vld [vmem:[%s4195_s30 + $0x178] sm:$0xff]  ;;  %3506 = vmatprep.subr.bf16.mxu0 %v3897_v34  ;;  %v2480_v53 = vld [vmem:[%s5325_s10 + $0xe8] sm:$0xff] }
 0x2cb   : > { %v1709_v60 = vadd.f32 %v1645_v55, %v1532_v58  ;;  %v1535_v61 = vpop.f32.mrb[40].mxu1  ;;  %v1835_v63 = vmax.f32 %v1707_v48, %v1771_v57  ;;  %v2479_v52 = vld [vmem:[%s5325_s10 + $0xe0] sm:$0xff]  ;;  %3541 = vmatpush1.bf16.msra.mxu1 %v3504_v43 }
 0x2cc   : > { %v1772_v0 = vmul.f32 0.2, %v1708_v59  ;;  %v1536_v2 = vadd.f32 %v1535_v61, %v4674_v18  ;;  %v1537_v3 = vpop.f32.mrb[41].mxu1  ;;  %v1654_v56 = vld [vmem:[%s4195_s30 + $0x180] sm:$0xff]  ;;  %v3507_v58 = vpack.c.bf16 %v2480_v53, %v2479_v52  ;;  %3526 = vmatprep.subr.bf16.mxu1 %v3897_v34  ;;  %v1663_v53 = vld [vmem:[%s4195_s30 + $0x1c8] sm:$0xff] }
 0x2cd   : > { %v1773_v6 = vmul.f32 0.2, %v1709_v60  ;;  %v1538_v7 = vadd.f32 %v1537_v3, %v4677_v19  ;;  %2110 = vmatprep.mubr.f32.mxu0 %v1835_v63 }
 0x2ce   : > { %v1710_v8 = vadd.f32 %v1646_v62, %v1536_v2  ;;  %2111 = vmatmul.mubr.f32.gmra.mrb[100].mxu0 %v1834_v5  ;;  %v1836_v17 = vmax.f32 %v1708_v59, %v1772_v0  ;;  %v1655_v62 = vld [vmem:[%s4195_s30 + $0x188] sm:$0xff]  ;;  %v2482_v5 = vld [vmem:[%s5325_s10 + $0xf8] sm:$0xff] }
 0x2cf   : > { %v1711_v9 = vadd.f32 %v1647_v4, %v1538_v7  ;;  %v1541_v10 = vpop.f32.mrb[42].mxu1  ;;  %v1837_v12 = vmax.f32 %v1709_v60, %v1773_v6  ;;  %3508 = vmatpush1.bf16.msra.mxu0 %v3507_v58  ;;  %v2481_v4 = vld [vmem:[%s5325_s10 + $0xf0] sm:$0xff]  ;;  %3542 = vmatpush1.bf16.msra.mxu1 %v3507_v58 }
 0x2d0   : > { %v1774_v13 = vmul.f32 0.2, %v1710_v8  ;;  %v1542_v14 = vadd.f32 %v1541_v10, %v4674_v18  ;;  %v1543_v15 = vpop.f32.mrb[43].mxu1  ;;  %3509 = vmatprep.subr.bf16.mxu0 %v3897_v34  ;;  %v3510_v10 = vpack.c.bf16 %v2482_v5, %v2481_v4  ;;  %3527 = vmatprep.subr.bf16.mxu1 %v3897_v34 }
 0x2d1   : > { %v1775_v32 = vmul.f32 0.2, %v1711_v9  ;;  %v1544_v35 = vadd.f32 %v1543_v15, %v4677_v19  ;;  %2116 = vmatprep.mubr.f32.mxu0 %v1837_v12 }
 0x2d2   : > { %v1712_v20 = vadd.f32 %v1648_v11, %v1542_v14  ;;  %2117 = vmatmul.mubr.f32.gmra.mrb[102].mxu0 %v1836_v17  ;;  %v1838_v1 = vmax.f32 %v1710_v8, %v1774_v13  ;;  %v1656_v8 = vld [vmem:[%s4195_s30 + $0x190] sm:$0xff]  ;;  %v1657_v14 = vld [vmem:[%s4195_s30 + $0x198] sm:$0xff] }
 0x2d3   : > { %v1713_v21 = vadd.f32 %v1649_v16, %v1544_v35  ;;  %v1547_v22 = vpop.f32.mrb[44].mxu1  ;;  %v1839_v24 = vmax.f32 %v1711_v9, %v1775_v32  ;;  %3511 = vmatpush1.bf16.msra.mxu0 %v3510_v10  ;;  %3543 = vmatpush1.bf16.msra.mxu1 %v3510_v10 }
 0x2d4   : > { %v1776_v25 = vmul.f32 0.2, %v1712_v20  ;;  %v1548_v26 = vadd.f32 %v1547_v22, %v4674_v18  ;;  %v1549_v27 = vpop.f32.mrb[45].mxu1 }
 0x2d5   : > { %v1777_v30 = vmul.f32 0.2, %v1713_v21  ;;  %v1550_v33 = vadd.f32 %v1549_v27, %v4677_v19  ;;  %2122 = vmatprep.mubr.f32.mxu0 %v1839_v24 }
 0x2d6   : > { %v1714_v36 = vadd.f32 %v1650_v23, %v1548_v26  ;;  %2123 = vmatmul.mubr.f32.gmra.mrb[104].mxu0 %v1838_v1  ;;  %v1840_v48 = vmax.f32 %v1712_v20, %v1776_v25  ;;  %v1659_v26 = vld [vmem:[%s4195_s30 + $0x1a8] sm:$0xff] }
 0x2d7   : > { %v1715_v39 = vadd.f32 %v1651_v28, %v1550_v33  ;;  %v1553_v40 = vpop.f32.mrb[46].mxu1  ;;  %v1841_v42 = vmax.f32 %v1713_v21, %v1777_v30  ;;  %v1658_v21 = vld [vmem:[%s4195_s30 + $0x1a0] sm:$0xff] }
 0x2d8   : > { %v1778_v44 = vmul.f32 0.2, %v1714_v36  ;;  %v1554_v45 = vadd.f32 %v1553_v40, %v4674_v18  ;;  %v1555_v46 = vpop.f32.mrb[47].mxu1 }
 0x2d9   : > { %v1779_v49 = vmul.f32 0.2, %v1715_v39  ;;  %v1556_v50 = vadd.f32 %v1555_v46, %v4677_v19  ;;  %2128 = vmatprep.mubr.f32.mxu0 %v1841_v42 }
 0x2da   : > { %v1716_v51 = vadd.f32 %v1652_v41, %v1554_v45  ;;  %2129 = vmatmul.mubr.f32.gmra.mrb[106].mxu0 %v1840_v48  ;;  %v1842_v63 = vmax.f32 %v1714_v36, %v1778_v44  ;;  %v1660_v36 = vld [vmem:[%s4195_s30 + $0x1b0] sm:$0xff]  ;;  %v1661_v41 = vld [vmem:[%s4195_s30 + $0x1b8] sm:$0xff]  ;;  %v1662_v48 = vld [vmem:[%s4195_s30 + $0x1c0] sm:$0xff] }
 0x2db   : > { %v1717_v54 = vadd.f32 %v1653_v47, %v1556_v50  ;;  %v1559_v55 = vpop.f32.mrb[48].mxu1  ;;  %v1843_v57 = vmax.f32 %v1715_v39, %v1779_v49 }
 0x2dc   : > { %v1780_v59 = vmul.f32 0.2, %v1716_v51  ;;  %v1560_v60 = vadd.f32 %v1559_v55, %v4674_v18  ;;  %v1561_v61 = vpop.f32.mrb[49].mxu1 }
 0x2dd   : > { %v1781_v0 = vmul.f32 0.2, %v1717_v54  ;;  %v1562_v2 = vadd.f32 %v1561_v61, %v4677_v19  ;;  %2134 = vmatprep.mubr.f32.mxu0 %v1843_v57 }
 0x2de   : > { %v1718_v3 = vadd.f32 %v1654_v56, %v1560_v60  ;;  %2135 = vmatmul.mubr.f32.gmra.mrb[108].mxu0 %v1842_v63  ;;  %v1844_v15 = vmax.f32 %v1716_v51, %v1780_v59  ;;  %v1664_v60 = vld [vmem:[%s4195_s30 + $0x1d0] sm:$0xff] }
 0x2df   : > { %v1719_v6 = vadd.f32 %v1655_v62, %v1562_v2  ;;  %v1565_v7 = vpop.f32.mrb[50].mxu1  ;;  %v1845_v9 = vmax.f32 %v1717_v54, %v1781_v0  ;;  %v1665_v2 = vld [vmem:[%s4195_s30 + $0x1d8] sm:$0xff] }
 0x2e0   : > { %v1782_v11 = vmul.f32 0.2, %v1718_v3  ;;  %v1566_v12 = vadd.f32 %v1565_v7, %v4674_v18  ;;  %v1567_v13 = vpop.f32.mrb[51].mxu1 }
 0x2e1   : > { %v1783_v16 = vmul.f32 0.2, %v1719_v6  ;;  %v1568_v17 = vadd.f32 %v1567_v13, %v4677_v19  ;;  %2140 = vmatprep.mubr.f32.mxu0 %v1845_v9  ;;  %v1666_v9 = vld [vmem:[%s4195_s30 + $0x1e0] sm:$0xff] }
 0x2e2   : > { %v1720_v32 = vadd.f32 %v1656_v8, %v1566_v12  ;;  %2141 = vmatmul.mubr.f32.gmra.mrb[110].mxu0 %v1844_v15  ;;  %v1846_v34 = vmax.f32 %v1718_v3, %v1782_v11 }
 0x2e3   : > { %v1721_v35 = vadd.f32 %v1657_v14, %v1568_v17  ;;  %v1571_v20 = vpop.f32.mrb[52].mxu1  ;;  %v1847_v22 = vmax.f32 %v1719_v6, %v1783_v16  ;;  %v1667_v14 = vld [vmem:[%s4195_s30 + $0x1e8] sm:$0xff] }
 0x2e4   : > { %v1784_v23 = vmul.f32 0.2, %v1720_v32  ;;  %v1572_v24 = vadd.f32 %v1571_v20, %v4674_v18  ;;  %v1573_v25 = vpop.f32.mrb[53].mxu1 }
 0x2e5   : > { %v1785_v27 = vmul.f32 0.2, %v1721_v35  ;;  %v1574_v28 = vadd.f32 %v1573_v25, %v4677_v19  ;;  %2146 = vmatprep.mubr.f32.mxu0 %v1847_v22 }
 0x2e6   : > { %v1722_v1 = vadd.f32 %v1658_v21, %v1572_v24  ;;  %2147 = vmatmul.mubr.f32.gmra.mrb[112].mxu0 %v1846_v34  ;;  %v1848_v42 = vmax.f32 %v1720_v32, %v1784_v23  ;;  %v1668_v21 = vld [vmem:[%s4195_s30 + $0x1f0] sm:$0xff] }
 0x2e7   : > { %v1723_v30 = vadd.f32 %v1659_v26, %v1574_v28  ;;  %v1577_v33 = vpop.f32.mrb[54].mxu1  ;;  %v1849_v37 = vmax.f32 %v1721_v35, %v1785_v27  ;;  %v1669_v26 = vld [vmem:[%s4195_s30 + $0x1f8] sm:$0xff] }
 0x2e8   : > { %v1786_v38 = vmul.f32 0.2, %v1722_v1  ;;  %v1578_v39 = vadd.f32 %v1577_v33, %v4674_v18  ;;  %v1579_v40 = vpop.f32.mrb[55].mxu1 }
 0x2e9   : > { %v1787_v43 = vmul.f32 0.2, %v1723_v30  ;;  %v1580_v44 = vadd.f32 %v1579_v40, %v4677_v19  ;;  %2152 = vmatprep.mubr.f32.mxu0 %v1849_v37 }
 0x2ea   : > { %v1724_v45 = vadd.f32 %v1660_v36, %v1578_v39  ;;  %2153 = vmatmul.mubr.f32.gmra.mrb[114].mxu0 %v1848_v42  ;;  %v1850_v54 = vmax.f32 %v1722_v1, %v1786_v38 }
 0x2eb   : > { %v1725_v46 = vadd.f32 %v1661_v41, %v1580_v44  ;;  %v1583_v47 = vpop.f32.mrb[56].mxu1  ;;  %v1851_v49 = vmax.f32 %v1723_v30, %v1787_v43  ;;  %v2195_v43 = vld [vmem:[%s4188_s26] sm:$0xff] }
 0x2ec   : > { %v1788_v50 = vmul.f32 0.2, %v1724_v45  ;;  %v1584_v51 = vadd.f32 %v1583_v47, %v4674_v18  ;;  %v1585_v52 = vpop.f32.mrb[57].mxu1 }
 0x2ed   : > { %v1789_v55 = vmul.f32 0.2, %v1725_v46  ;;  %v1586_v56 = vadd.f32 %v1585_v52, %v4677_v19  ;;  %2158 = vmatprep.mubr.f32.mxu0 %v1851_v49 }
 0x2ee   : > { %v1726_v57 = vadd.f32 %v1662_v48, %v1584_v51  ;;  %2159 = vmatmul.mubr.f32.gmra.mrb[116].mxu0 %v1850_v54  ;;  %v1852_v3 = vmax.f32 %v1724_v45, %v1788_v50  ;;  %v2197_v51 = vld [vmem:[%s4188_s26 + $0x10] sm:$0xff] }
 0x2ef   : > { %v1727_v58 = vadd.f32 %v1663_v53, %v1586_v56  ;;  %v1589_v59 = vpop.f32.mrb[58].mxu1  ;;  %v1853_v61 = vmax.f32 %v1725_v46, %v1789_v55  ;;  %v2196_v46 = vld [vmem:[%s4188_s26 + $0x8] sm:$0xff] }
 0x2f0   : > { %v1790_v62 = vmul.f32 0.2, %v1726_v57  ;;  %v1590_v63 = vadd.f32 %v1589_v59, %v4674_v18  ;;  %v1591_v0 = vpop.f32.mrb[59].mxu1  ;;  %v2199_v59 = vld [vmem:[%s4188_s26 + $0x20] sm:$0xff] }
 0x2f1   : > { %v1791_v4 = vmul.f32 0.2, %v1727_v58  ;;  %v1592_v5 = vadd.f32 %v1591_v0, %v4677_v19  ;;  %2164 = vmatprep.mubr.f32.mxu0 %v1853_v61 }
 0x2f2   : > { %v1728_v6 = vadd.f32 %v1664_v60, %v1590_v63  ;;  %2165 = vmatmul.mubr.f32.gmra.mrb[118].mxu0 %v1852_v3  ;;  %v1854_v15 = vmax.f32 %v1726_v57, %v1790_v62 }
 0x2f3   : > { %v1729_v7 = vadd.f32 %v1665_v2, %v1592_v5  ;;  %v1595_v8 = vpop.f32.mrb[60].mxu1  ;;  %v1855_v10 = vmax.f32 %v1727_v58, %v1791_v4  ;;  %v2200_v2 = vld [vmem:[%s4188_s26 + $0x28] sm:$0xff] }
 0x2f4   : > { %v1792_v11 = vmul.f32 0.2, %v1728_v6  ;;  %v1596_v12 = vadd.f32 %v1595_v8, %v4674_v18  ;;  %v1597_v13 = vpop.f32.mrb[61].mxu1  ;;  %v2201_v8 = vld [vmem:[%s4188_s26 + $0x30] sm:$0xff] }
 0x2f5   : > { %v1793_v16 = vmul.f32 0.2, %v1729_v7  ;;  %v1598_v17 = vadd.f32 %v1597_v13, %v4677_v19  ;;  %2170 = vmatprep.mubr.f32.mxu0 %v1855_v10  ;;  %v2202_v13 = vld [vmem:[%s4188_s26 + $0x38] sm:$0xff] }
 0x2f6   : > { %v1730_v32 = vadd.f32 %v1666_v9, %v1596_v12  ;;  %2171 = vmatmul.mubr.f32.gmra.mrb[120].mxu0 %v1854_v15  ;;  %v1856_v34 = vmax.f32 %v1728_v6, %v1792_v11 }
 0x2f7   : > { %v1731_v35 = vadd.f32 %v1667_v14, %v1598_v17  ;;  %v1601_v20 = vpop.f32.mrb[62].mxu1  ;;  %v1857_v22 = vmax.f32 %v1729_v7, %v1793_v16 }
 0x2f8   : > { %v1794_v23 = vmul.f32 0.2, %v1730_v32  ;;  %v1602_v24 = vadd.f32 %v1601_v20, %v4674_v18  ;;  %v1603_v25 = vpop.f32.mrb[63].mxu1  ;;  %v2203_v20 = vld [vmem:[%s4188_s26 + $0x40] sm:$0xff] }
 0x2f9   : > { %v1795_v27 = vmul.f32 0.2, %v1731_v35  ;;  %v1604_v28 = vadd.f32 %v1603_v25, %v4677_v19  ;;  %2176 = vmatprep.mubr.f32.mxu0 %v1857_v22  ;;  %v1926_v19 = vld [vmem:[%s5324_s9] sm:$0x3]  ;;  %v2204_v25 = vld [vmem:[%s4188_s26 + $0x48] sm:$0xff] }
 0x2fa   : > { %v1732_v1 = vadd.f32 %v1668_v21, %v1602_v24  ;;  %2177 = vmatmul.mubr.f32.gmra.mrb[122].mxu0 %v1856_v34  ;;  %v1858_v37 = vmax.f32 %v1730_v32, %v1794_v23  ;;  %v4939_v40 = vrot.slane %v1926_v19, %v4529_v29  ;;  %v4942_v41 = vrot.slane %v1926_v19, %v4534_v31  ;;  %v2198_v31 = vld [vmem:[%s4188_s26 + $0x18] sm:$0xff] }
 0x2fb   : > { %v1733_v30 = vadd.f32 %v1669_v26, %v1604_v28  ;;  %v1859_v33 = vmax.f32 %v1731_v35, %v1795_v27 }
 0x2fc   : > { %v1796_v36 = vmul.f32 0.2, %v1732_v1 }
 0x2fd   : > { %v1797_v38 = vmul.f32 0.2, %v1733_v30  ;;  %2182 = vmatprep.mubr.f32.mxu0 %v1859_v33  ;;  %v2205_v33 = vld [vmem:[%s4188_s26 + $0x50] sm:$0xff] }
 0x2fe   : > { %2183 = vmatmul.mubr.f32.gmra.mrb[124].mxu0 %v1858_v37  ;;  %v1860_v18 = vmax.f32 %v1732_v1, %v1796_v36 }
 0x2ff   : > { %v1861_v39 = vmax.f32 %v1733_v30, %v1797_v38 }
 0x301   : > { %2188 = vmatprep.mubr.f32.mxu0 %v1861_v39 }
 0x302   : > { %2189 = vmatmul.mubr.f32.gmra.mrb[126].mxu0 %v1860_v18  ;;  %v2206_v18 = vld [vmem:[%s4188_s26 + $0x58] sm:$0xff] }
 0x359   : > { %v2004_v42 = vpop.f32.mrb[64].mxu0 }
 0x35a   : > { %v2005_v44 = vadd.f32 %v2004_v42, %v4939_v40  ;;  %v2006_v45 = vpop.f32.mrb[65].mxu0 }
 0x35b   : > { %v2007_v47 = vadd.f32 %v2006_v45, %v4942_v41 }
 0x35c   : > { %v2259_v48 = vadd.f32 %v2195_v43, %v2005_v44 }
 0x35d   : > { %v2260_v49 = vadd.f32 %v2196_v46, %v2007_v47  ;;  %v2010_v50 = vpop.f32.mrb[66].mxu0  ;;  %v2207_v47 = vld [vmem:[%s4188_s26 + $0x60] sm:$0xff] }
 0x35e   : > { %v2323_v52 = vmul.f32 0.2, %v2259_v48  ;;  %v2011_v29 = vadd.f32 %v2010_v50, %v4939_v40  ;;  %v2012_v53 = vpop.f32.mrb[67].mxu0 }
 0x35f   : > { %v2324_v54 = vmul.f32 0.2, %v2260_v49  ;;  %v2013_v55 = vadd.f32 %v2012_v53, %v4942_v41 }
 0x360   : > { %v2261_v56 = vadd.f32 %v2197_v51, %v2011_v29  ;;  %v2387_v61 = vmax.f32 %v2259_v48, %v2323_v52  ;;  %v2208_v52 = vld [vmem:[%s4188_s26 + $0x68] sm:$0xff] }
 0x361   : > { %v2262_v57 = vadd.f32 %v2198_v31, %v2013_v55  ;;  %v2016_v58 = vpop.f32.mrb[68].mxu0  ;;  %v2388_v60 = vmax.f32 %v2260_v49, %v2324_v54 }
 0x362   : > { %v2325_v62 = vmul.f32 0.2, %v2261_v56  ;;  %v2017_v63 = vadd.f32 %v2016_v58, %v4939_v40  ;;  %v2018_v0 = vpop.f32.mrb[69].mxu0 }
 0x363   : > { %v2326_v3 = vmul.f32 0.2, %v2262_v57  ;;  %v2019_v4 = vadd.f32 %v2018_v0, %v4942_v41  ;;  %2554 = vmatprep.mubr.f32.mxu0 %v2388_v60 }
 0x364   : > { %v2263_v5 = vadd.f32 %v2199_v59, %v2017_v63  ;;  %2555 = vmatmul.mubr.f32.vlgmr.msra.gmra.mrb[128].mxu0 %v2387_v61  ;;  %v2389_v14 = vmax.f32 %v2261_v56, %v2325_v62  ;;  %v2210_v62 = vld [vmem:[%s4188_s26 + $0x78] sm:$0xff] }
 0x365   : > { %v2264_v6 = vadd.f32 %v2200_v2, %v2019_v4  ;;  %v2022_v7 = vpop.f32.mrb[70].mxu0  ;;  %v2390_v9 = vmax.f32 %v2262_v57, %v2326_v3  ;;  %v2209_v57 = vld [vmem:[%s4188_s26 + $0x70] sm:$0xff] }
 0x366   : > { %v2327_v10 = vmul.f32 0.2, %v2263_v5  ;;  %v2023_v11 = vadd.f32 %v2022_v7, %v4939_v40  ;;  %v2024_v12 = vpop.f32.mrb[71].mxu0 }
 0x367   : > { %v2328_v15 = vmul.f32 0.2, %v2264_v6  ;;  %v2025_v16 = vadd.f32 %v2024_v12, %v4942_v41  ;;  %2559 = vmatprep.mubr.f32.mxu0 %v2390_v9 }
 0x368   : > { %v2265_v17 = vadd.f32 %v2201_v8, %v2023_v11  ;;  %2560 = vmatmul.mubr.f32.gmra.mrb[130].mxu0 %v2389_v14  ;;  %v2391_v26 = vmax.f32 %v2263_v5, %v2327_v10  ;;  %v2212_v11 = vld [vmem:[%s4188_s26 + $0x88] sm:$0xff] }
 0x369   : > { %v2266_v32 = vadd.f32 %v2202_v13, %v2025_v16  ;;  %v2028_v35 = vpop.f32.mrb[72].mxu0  ;;  %v2392_v21 = vmax.f32 %v2264_v6, %v2328_v15  ;;  %v2211_v6 = vld [vmem:[%s4188_s26 + $0x80] sm:$0xff] }
 0x36a   : > { %v2329_v22 = vmul.f32 0.2, %v2265_v17  ;;  %v2029_v23 = vadd.f32 %v2028_v35, %v4939_v40  ;;  %v2030_v24 = vpop.f32.mrb[73].mxu0 }
 0x36b   : > { %v2330_v34 = vmul.f32 0.2, %v2266_v32  ;;  %v2031_v27 = vadd.f32 %v2030_v24, %v4942_v41  ;;  %2564 = vmatprep.mubr.f32.mxu0 %v2392_v21  ;;  %v2214_v24 = vld [vmem:[%s4188_s26 + $0x98] sm:$0xff] }
 0x36c   : > { %v2267_v28 = vadd.f32 %v2203_v20, %v2029_v23  ;;  %2565 = vmatmul.mubr.f32.gmra.mrb[132].mxu0 %v2391_v26  ;;  %v2393_v19 = vmax.f32 %v2265_v17, %v2329_v22 }
 0x36d   : > { %v2268_v1 = vadd.f32 %v2204_v25, %v2031_v27  ;;  %v2034_v30 = vpop.f32.mrb[74].mxu0  ;;  %v2394_v36 = vmax.f32 %v2266_v32, %v2330_v34  ;;  %v2213_v32 = vld [vmem:[%s4188_s26 + $0x90] sm:$0xff] }
 0x36e   : > { %v2331_v37 = vmul.f32 0.2, %v2267_v28  ;;  %v2035_v38 = vadd.f32 %v2034_v30, %v4939_v40  ;;  %v2036_v39 = vpop.f32.mrb[75].mxu0 }
 0x36f   : > { %v2332_v42 = vmul.f32 0.2, %v2268_v1  ;;  %v2037_v43 = vadd.f32 %v2036_v39, %v4942_v41  ;;  %2569 = vmatprep.mubr.f32.mxu0 %v2394_v36 }
 0x370   : > { %v2269_v44 = vadd.f32 %v2205_v33, %v2035_v38  ;;  %2570 = vmatmul.mubr.f32.gmra.mrb[134].mxu0 %v2393_v19  ;;  %v2395_v29 = vmax.f32 %v2267_v28, %v2331_v37  ;;  %v2216_v38 = vld [vmem:[%s4188_s26 + $0xa8] sm:$0xff] }
 0x371   : > { %v2270_v45 = vadd.f32 %v2206_v18, %v2037_v43  ;;  %v2040_v46 = vpop.f32.mrb[76].mxu0  ;;  %v2396_v48 = vmax.f32 %v2268_v1, %v2332_v42  ;;  %v2215_v1 = vld [vmem:[%s4188_s26 + $0xa0] sm:$0xff] }
 0x372   : > { %v2333_v49 = vmul.f32 0.2, %v2269_v44  ;;  %v2041_v50 = vadd.f32 %v2040_v46, %v4939_v40  ;;  %v2042_v51 = vpop.f32.mrb[77].mxu0 }
 0x373   : > { %v2334_v53 = vmul.f32 0.2, %v2270_v45  ;;  %v2043_v31 = vadd.f32 %v2042_v51, %v4942_v41  ;;  %2574 = vmatprep.mubr.f32.mxu0 %v2396_v48 }
 0x374   : > { %v2271_v54 = vadd.f32 %v2207_v47, %v2041_v50  ;;  %2575 = vmatmul.mubr.f32.gmra.mrb[136].mxu0 %v2395_v29  ;;  %v2397_v63 = vmax.f32 %v2269_v44, %v2333_v49  ;;  %v2218_v50 = vld [vmem:[%s4188_s26 + $0xb8] sm:$0xff] }
 0x375   : > { %v2272_v55 = vadd.f32 %v2208_v52, %v2043_v31  ;;  %v2046_v56 = vpop.f32.mrb[78].mxu0  ;;  %v2398_v58 = vmax.f32 %v2270_v45, %v2334_v53  ;;  %v2217_v45 = vld [vmem:[%s4188_s26 + $0xb0] sm:$0xff] }
 0x376   : > { %v2335_v59 = vmul.f32 0.2, %v2271_v54  ;;  %v2047_v60 = vadd.f32 %v2046_v56, %v4939_v40  ;;  %v2048_v61 = vpop.f32.mrb[79].mxu0 }
 0x377   : > { %v2336_v0 = vmul.f32 0.2, %v2272_v55  ;;  %v2049_v2 = vadd.f32 %v2048_v61, %v4942_v41  ;;  %2579 = vmatprep.mubr.f32.mxu0 %v2398_v58 }
 0x378   : > { %v2273_v3 = vadd.f32 %v2209_v57, %v2047_v60  ;;  %2580 = vmatmul.mubr.f32.gmra.mrb[138].mxu0 %v2397_v63  ;;  %v2399_v12 = vmax.f32 %v2271_v54, %v2335_v59  ;;  %v2220_v60 = vld [vmem:[%s4188_s26 + $0xc8] sm:$0xff] }
 0x379   : > { %v2274_v4 = vadd.f32 %v2210_v62, %v2049_v2  ;;  %v2052_v5 = vpop.f32.mrb[80].mxu0  ;;  %v2400_v7 = vmax.f32 %v2272_v55, %v2336_v0  ;;  %v2219_v55 = vld [vmem:[%s4188_s26 + $0xc0] sm:$0xff] }
 0x37a   : > { %v2337_v8 = vmul.f32 0.2, %v2273_v3  ;;  %v2053_v9 = vadd.f32 %v2052_v5, %v4939_v40  ;;  %v2054_v10 = vpop.f32.mrb[81].mxu0 }
 0x37b   : > { %v2338_v13 = vmul.f32 0.2, %v2274_v4  ;;  %v2055_v14 = vadd.f32 %v2054_v10, %v4942_v41  ;;  %2584 = vmatprep.mubr.f32.mxu0 %v2400_v7 }
 0x37c   : > { %v2275_v15 = vadd.f32 %v2211_v6, %v2053_v9  ;;  %2585 = vmatmul.mubr.f32.gmra.mrb[140].mxu0 %v2399_v12  ;;  %v2401_v20 = vmax.f32 %v2273_v3, %v2337_v8  ;;  %v2222_v9 = vld [vmem:[%s4188_s26 + $0xd8] sm:$0xff] }
 0x37d   : > { %v2276_v16 = vadd.f32 %v2212_v11, %v2055_v14  ;;  %v2058_v17 = vpop.f32.mrb[82].mxu0  ;;  %v2402_v35 = vmax.f32 %v2274_v4, %v2338_v13  ;;  %v2221_v4 = vld [vmem:[%s4188_s26 + $0xd0] sm:$0xff] }
 0x37e   : > { %v2339_v21 = vmul.f32 0.2, %v2275_v15  ;;  %v2059_v22 = vadd.f32 %v2058_v17, %v4939_v40  ;;  %v2060_v23 = vpop.f32.mrb[83].mxu0 }
 0x37f   : > { %v2340_v25 = vmul.f32 0.2, %v2276_v16  ;;  %v2061_v26 = vadd.f32 %v2060_v23, %v4942_v41  ;;  %2589 = vmatprep.mubr.f32.mxu1 %v2402_v35 }
 0x380   : > { %v2277_v34 = vadd.f32 %v2213_v32, %v2059_v22  ;;  %2590 = vmatmul.mubr.f32.vlgmr.msra.gmra.mrb[64].mxu1 %v2401_v20  ;;  %v2403_v39 = vmax.f32 %v2275_v15, %v2339_v21  ;;  %v2224_v21 = vld [vmem:[%s4188_s26 + $0xe8] sm:$0xff] }
 0x381   : > { %v2278_v27 = vadd.f32 %v2214_v24, %v2061_v26  ;;  %v2064_v28 = vpop.f32.mrb[84].mxu0  ;;  %v2404_v30 = vmax.f32 %v2276_v16, %v2340_v25  ;;  %v2223_v16 = vld [vmem:[%s4188_s26 + $0xe0] sm:$0xff] }
 0x382   : > { %v2341_v33 = vmul.f32 0.2, %v2277_v34  ;;  %v2065_v36 = vadd.f32 %v2064_v28, %v4939_v40  ;;  %v2066_v37 = vpop.f32.mrb[85].mxu0 }
 0x383   : > { %v2342_v18 = vmul.f32 0.2, %v2278_v27  ;;  %v2067_v19 = vadd.f32 %v2066_v37, %v4942_v41  ;;  %2594 = vmatprep.mubr.f32.mxu1 %v2404_v30 }
 0x384   : > { %v2279_v42 = vadd.f32 %v2215_v1, %v2065_v36  ;;  %2595 = vmatmul.mubr.f32.gmra.mrb[66].mxu1 %v2403_v39  ;;  %v2405_v51 = vmax.f32 %v2277_v34, %v2341_v33  ;;  %v2226_v36 = vld [vmem:[%s4188_s26 + $0xf8] sm:$0xff] }
 0x385   : > { %v2280_v43 = vadd.f32 %v2216_v38, %v2067_v19  ;;  %v2070_v44 = vpop.f32.mrb[86].mxu0  ;;  %v2406_v46 = vmax.f32 %v2278_v27, %v2342_v18  ;;  %v2225_v27 = vld [vmem:[%s4188_s26 + $0xf0] sm:$0xff] }
 0x386   : > { %v2343_v47 = vmul.f32 0.2, %v2279_v42  ;;  %v2071_v48 = vadd.f32 %v2070_v44, %v4939_v40  ;;  %v2072_v49 = vpop.f32.mrb[87].mxu0 }
 0x387   : > { %v2344_v52 = vmul.f32 0.2, %v2280_v43  ;;  %v2073_v29 = vadd.f32 %v2072_v49, %v4942_v41  ;;  %2599 = vmatprep.mubr.f32.mxu1 %v2406_v46 }
 0x388   : > { %v2281_v53 = vadd.f32 %v2217_v45, %v2071_v48  ;;  %2600 = vmatmul.mubr.f32.gmra.mrb[68].mxu1 %v2405_v51  ;;  %v2407_v61 = vmax.f32 %v2279_v42, %v2343_v47  ;;  %v2228_v48 = vld [vmem:[%s4188_s26 + $0x108] sm:$0xff] }
 0x389   : > { %v2282_v31 = vadd.f32 %v2218_v50, %v2073_v29  ;;  %v2076_v54 = vpop.f32.mrb[88].mxu0  ;;  %v2408_v56 = vmax.f32 %v2280_v43, %v2344_v52  ;;  %v2227_v43 = vld [vmem:[%s4188_s26 + $0x100] sm:$0xff] }
 0x38a   : > { %v2345_v57 = vmul.f32 0.2, %v2281_v53  ;;  %v2077_v58 = vadd.f32 %v2076_v54, %v4939_v40  ;;  %v2078_v59 = vpop.f32.mrb[89].mxu0 }
 0x38b   : > { %v2346_v62 = vmul.f32 0.2, %v2282_v31  ;;  %v2079_v63 = vadd.f32 %v2078_v59, %v4942_v41  ;;  %2604 = vmatprep.mubr.f32.mxu1 %v2408_v56 }
 0x38c   : > { %v2283_v0 = vadd.f32 %v2219_v55, %v2077_v58  ;;  %2605 = vmatmul.mubr.f32.gmra.mrb[70].mxu1 %v2407_v61  ;;  %v2409_v10 = vmax.f32 %v2281_v53, %v2345_v57  ;;  %v2230_v58 = vld [vmem:[%s4188_s26 + $0x118] sm:$0xff] }
 0x38d   : > { %v2284_v2 = vadd.f32 %v2220_v60, %v2079_v63  ;;  %v2082_v3 = vpop.f32.mrb[90].mxu0  ;;  %v2410_v5 = vmax.f32 %v2282_v31, %v2346_v62  ;;  %v2229_v31 = vld [vmem:[%s4188_s26 + $0x110] sm:$0xff] }
 0x38e   : > { %v2347_v6 = vmul.f32 0.2, %v2283_v0  ;;  %v2083_v7 = vadd.f32 %v2082_v3, %v4939_v40  ;;  %v2084_v8 = vpop.f32.mrb[91].mxu0 }
 0x38f   : > { %v2348_v11 = vmul.f32 0.2, %v2284_v2  ;;  %v2085_v12 = vadd.f32 %v2084_v8, %v4942_v41  ;;  %2609 = vmatprep.mubr.f32.mxu1 %v2410_v5 }
 0x390   : > { %v2285_v13 = vadd.f32 %v2221_v4, %v2083_v7  ;;  %2610 = vmatmul.mubr.f32.gmra.mrb[72].mxu1 %v2409_v10  ;;  %v2411_v22 = vmax.f32 %v2283_v0, %v2347_v6  ;;  %v2232_v7 = vld [vmem:[%s4188_s26 + $0x128] sm:$0xff] }
 0x391   : > { %v2286_v14 = vadd.f32 %v2222_v9, %v2085_v12  ;;  %v2088_v15 = vpop.f32.mrb[92].mxu0  ;;  %v2412_v17 = vmax.f32 %v2284_v2, %v2348_v11  ;;  %v2231_v2 = vld [vmem:[%s4188_s26 + $0x120] sm:$0xff] }
 0x392   : > { %v2349_v32 = vmul.f32 0.2, %v2285_v13  ;;  %v2089_v35 = vadd.f32 %v2088_v15, %v4939_v40  ;;  %v2090_v20 = vpop.f32.mrb[93].mxu0 }
 0x393   : > { %v2350_v23 = vmul.f32 0.2, %v2286_v14  ;;  %v2091_v24 = vadd.f32 %v2090_v20, %v4942_v41  ;;  %2614 = vmatprep.mubr.f32.mxu1 %v2412_v17 }
 0x394   : > { %v2287_v25 = vadd.f32 %v2223_v16, %v2089_v35  ;;  %2615 = vmatmul.mubr.f32.gmra.mrb[74].mxu1 %v2411_v22  ;;  %v2413_v37 = vmax.f32 %v2285_v13, %v2349_v32  ;;  %v2234_v35 = vld [vmem:[%s4188_s26 + $0x138] sm:$0xff] }
 0x395   : > { %v2288_v26 = vadd.f32 %v2224_v21, %v2091_v24  ;;  %v2094_v34 = vpop.f32.mrb[94].mxu0  ;;  %v2414_v28 = vmax.f32 %v2286_v14, %v2350_v23  ;;  %v2233_v14 = vld [vmem:[%s4188_s26 + $0x130] sm:$0xff] }
 0x396   : > { %v2351_v1 = vmul.f32 0.2, %v2287_v25  ;;  %v2095_v30 = vadd.f32 %v2094_v34, %v4939_v40  ;;  %v2096_v33 = vpop.f32.mrb[95].mxu0 }
 0x397   : > { %v2352_v38 = vmul.f32 0.2, %v2288_v26  ;;  %v2097_v39 = vadd.f32 %v2096_v33, %v4942_v41  ;;  %2619 = vmatprep.mubr.f32.mxu1 %v2414_v28 }
 0x398   : > { %v2289_v18 = vadd.f32 %v2225_v27, %v2095_v30  ;;  %2620 = vmatmul.mubr.f32.gmra.mrb[76].mxu1 %v2413_v37  ;;  %v2415_v49 = vmax.f32 %v2287_v25, %v2351_v1  ;;  %v2236_v30 = vld [vmem:[%s4188_s26 + $0x148] sm:$0xff] }
 0x399   : > { %v2290_v19 = vadd.f32 %v2226_v36, %v2097_v39  ;;  %v2100_v42 = vpop.f32.mrb[96].mxu0  ;;  %v2416_v44 = vmax.f32 %v2288_v26, %v2352_v38  ;;  %v2235_v26 = vld [vmem:[%s4188_s26 + $0x140] sm:$0xff] }
 0x39a   : > { %v2353_v45 = vmul.f32 0.2, %v2289_v18  ;;  %v2101_v46 = vadd.f32 %v2100_v42, %v4939_v40  ;;  %v2102_v47 = vpop.f32.mrb[97].mxu0 }
 0x39b   : > { %v2354_v50 = vmul.f32 0.2, %v2290_v19  ;;  %v2103_v51 = vadd.f32 %v2102_v47, %v4942_v41  ;;  %2624 = vmatprep.mubr.f32.mxu1 %v2416_v44 }
 0x39c   : > { %v2291_v52 = vadd.f32 %v2227_v43, %v2101_v46  ;;  %2625 = vmatmul.mubr.f32.gmra.mrb[78].mxu1 %v2415_v49  ;;  %v2417_v59 = vmax.f32 %v2289_v18, %v2353_v45  ;;  %v2238_v46 = vld [vmem:[%s4188_s26 + $0x158] sm:$0xff] }
 0x39d   : > { %v2292_v29 = vadd.f32 %v2228_v48, %v2103_v51  ;;  %v2106_v53 = vpop.f32.mrb[98].mxu0  ;;  %v2418_v54 = vmax.f32 %v2290_v19, %v2354_v50  ;;  %v2237_v19 = vld [vmem:[%s4188_s26 + $0x150] sm:$0xff] }
 0x39e   : > { %v2355_v55 = vmul.f32 0.2, %v2291_v52  ;;  %v2107_v56 = vadd.f32 %v2106_v53, %v4939_v40  ;;  %v2108_v57 = vpop.f32.mrb[99].mxu0 }
 0x39f   : > { %v2356_v60 = vmul.f32 0.2, %v2292_v29  ;;  %v2109_v61 = vadd.f32 %v2108_v57, %v4942_v41  ;;  %2629 = vmatprep.mubr.f32.mxu1 %v2418_v54 }
 0x3a0   : > { %v2293_v62 = vadd.f32 %v2229_v31, %v2107_v56  ;;  %2630 = vmatmul.mubr.f32.gmra.mrb[80].mxu1 %v2417_v59  ;;  %v2419_v8 = vmax.f32 %v2291_v52, %v2355_v55  ;;  %v2240_v56 = vld [vmem:[%s4188_s26 + $0x168] sm:$0xff] }
 0x3a1   : > { %v2294_v63 = vadd.f32 %v2230_v58, %v2109_v61  ;;  %v2112_v0 = vpop.f32.mrb[100].mxu0  ;;  %v2420_v3 = vmax.f32 %v2292_v29, %v2356_v60  ;;  %v2239_v29 = vld [vmem:[%s4188_s26 + $0x160] sm:$0xff] }
 0x3a2   : > { %v2357_v4 = vmul.f32 0.2, %v2293_v62  ;;  %v2113_v5 = vadd.f32 %v2112_v0, %v4939_v40  ;;  %v2114_v6 = vpop.f32.mrb[101].mxu0 }
 0x3a3   : > { %v2358_v9 = vmul.f32 0.2, %v2294_v63  ;;  %v2115_v10 = vadd.f32 %v2114_v6, %v4942_v41  ;;  %2634 = vmatprep.mubr.f32.mxu1 %v2420_v3 }
 0x3a4   : > { %v2295_v11 = vadd.f32 %v2231_v2, %v2113_v5  ;;  %2635 = vmatmul.mubr.f32.gmra.mrb[82].mxu1 %v2419_v8  ;;  %v2421_v20 = vmax.f32 %v2293_v62, %v2357_v4  ;;  %v2242_v5 = vld [vmem:[%s4188_s26 + $0x178] sm:$0xff] }
 0x3a5   : > { %v2296_v12 = vadd.f32 %v2232_v7, %v2115_v10  ;;  %v2118_v13 = vpop.f32.mrb[102].mxu0  ;;  %v2422_v15 = vmax.f32 %v2294_v63, %v2358_v9  ;;  %v2241_v63 = vld [vmem:[%s4188_s26 + $0x170] sm:$0xff] }
 0x3a6   : > { %v2359_v16 = vmul.f32 0.2, %v2295_v11  ;;  %v2119_v17 = vadd.f32 %v2118_v13, %v4939_v40  ;;  %v2120_v32 = vpop.f32.mrb[103].mxu0 }
 0x3a7   : > { %v2360_v21 = vmul.f32 0.2, %v2296_v12  ;;  %v2121_v22 = vadd.f32 %v2120_v32, %v4942_v41  ;;  %2639 = vmatprep.mubr.f32.mxu1 %v2422_v15 }
 0x3a8   : > { %v2297_v23 = vadd.f32 %v2233_v14, %v2119_v17  ;;  %2640 = vmatmul.mubr.f32.gmra.mrb[84].mxu1 %v2421_v20  ;;  %v2423_v33 = vmax.f32 %v2295_v11, %v2359_v16  ;;  %v2244_v17 = vld [vmem:[%s4188_s26 + $0x188] sm:$0xff] }
 0x3a9   : > { %v2298_v24 = vadd.f32 %v2234_v35, %v2121_v22  ;;  %v2124_v25 = vpop.f32.mrb[104].mxu0  ;;  %v2424_v34 = vmax.f32 %v2296_v12, %v2360_v21  ;;  %v2243_v12 = vld [vmem:[%s4188_s26 + $0x180] sm:$0xff] }
 0x3aa   : > { %v2361_v27 = vmul.f32 0.2, %v2297_v23  ;;  %v2125_v28 = vadd.f32 %v2124_v25, %v4939_v40  ;;  %v2126_v1 = vpop.f32.mrb[105].mxu0 }
 0x3ab   : > { %v2362_v36 = vmul.f32 0.2, %v2298_v24  ;;  %v2127_v37 = vadd.f32 %v2126_v1, %v4942_v41  ;;  %2644 = vmatprep.mubr.f32.mxu1 %v2424_v34 }
 0x3ac   : > { %v2299_v38 = vadd.f32 %v2235_v26, %v2125_v28  ;;  %2645 = vmatmul.mubr.f32.gmra.mrb[86].mxu1 %v2423_v33  ;;  %v2425_v47 = vmax.f32 %v2297_v23, %v2361_v27  ;;  %v2246_v28 = vld [vmem:[%s4188_s26 + $0x198] sm:$0xff] }
 0x3ad   : > { %v2300_v39 = vadd.f32 %v2236_v30, %v2127_v37  ;;  %v2130_v18 = vpop.f32.mrb[106].mxu0  ;;  %v2426_v42 = vmax.f32 %v2298_v24, %v2362_v36  ;;  %v2245_v24 = vld [vmem:[%s4188_s26 + $0x190] sm:$0xff] }
 0x3ae   : > { %v2363_v43 = vmul.f32 0.2, %v2299_v38  ;;  %v2131_v44 = vadd.f32 %v2130_v18, %v4939_v40  ;;  %v2132_v45 = vpop.f32.mrb[107].mxu0 }
 0x3af   : > { %v2364_v48 = vmul.f32 0.2, %v2300_v39  ;;  %v2133_v49 = vadd.f32 %v2132_v45, %v4942_v41  ;;  %2649 = vmatprep.mubr.f32.mxu1 %v2426_v42 }
 0x3b0   : > { %v2301_v50 = vadd.f32 %v2237_v19, %v2131_v44  ;;  %2650 = vmatmul.mubr.f32.gmra.mrb[88].mxu1 %v2425_v47  ;;  %v2427_v57 = vmax.f32 %v2299_v38, %v2363_v43  ;;  %v2248_v44 = vld [vmem:[%s4188_s26 + $0x1a8] sm:$0xff] }
 0x3b1   : > { %v2302_v51 = vadd.f32 %v2238_v46, %v2133_v49  ;;  %v2136_v52 = vpop.f32.mrb[108].mxu0  ;;  %v2428_v53 = vmax.f32 %v2300_v39, %v2364_v48  ;;  %v2247_v39 = vld [vmem:[%s4188_s26 + $0x1a0] sm:$0xff] }
 0x3b2   : > { %v2365_v31 = vmul.f32 0.2, %v2301_v50  ;;  %v2137_v54 = vadd.f32 %v2136_v52, %v4939_v40  ;;  %v2138_v55 = vpop.f32.mrb[109].mxu0 }
 0x3b3   : > { %v2366_v58 = vmul.f32 0.2, %v2302_v51  ;;  %v2139_v59 = vadd.f32 %v2138_v55, %v4942_v41  ;;  %2654 = vmatprep.mubr.f32.mxu1 %v2428_v53 }
 0x3b4   : > { %v2303_v60 = vadd.f32 %v2239_v29, %v2137_v54  ;;  %2655 = vmatmul.mubr.f32.gmra.mrb[90].mxu1 %v2427_v57  ;;  %v2429_v6 = vmax.f32 %v2301_v50, %v2365_v31  ;;  %v2250_v54 = vld [vmem:[%s4188_s26 + $0x1b8] sm:$0xff] }
 0x3b5   : > { %v2304_v61 = vadd.f32 %v2240_v56, %v2139_v59  ;;  %v2142_v62 = vpop.f32.mrb[110].mxu0  ;;  %v2430_v0 = vmax.f32 %v2302_v51, %v2366_v58  ;;  %v2249_v51 = vld [vmem:[%s4188_s26 + $0x1b0] sm:$0xff] }
 0x3b6   : > { %v2367_v2 = vmul.f32 0.2, %v2303_v60  ;;  %v2143_v3 = vadd.f32 %v2142_v62, %v4939_v40  ;;  %v2144_v4 = vpop.f32.mrb[111].mxu0 }
 0x3b7   : > { %v2368_v7 = vmul.f32 0.2, %v2304_v61  ;;  %v2145_v8 = vadd.f32 %v2144_v4, %v4942_v41  ;;  %2659 = vmatprep.mubr.f32.mxu1 %v2430_v0 }
 0x3b8   : > { %v2305_v9 = vadd.f32 %v2241_v63, %v2143_v3  ;;  %2660 = vmatmul.mubr.f32.gmra.mrb[92].mxu1 %v2429_v6  ;;  %v2431_v32 = vmax.f32 %v2303_v60, %v2367_v2  ;;  %v2252_v3 = vld [vmem:[%s4188_s26 + $0x1c8] sm:$0xff] }
 0x3b9   : > { %v2306_v10 = vadd.f32 %v2242_v5, %v2145_v8  ;;  %v2148_v11 = vpop.f32.mrb[112].mxu0  ;;  %v2432_v13 = vmax.f32 %v2304_v61, %v2368_v7  ;;  %v2251_v61 = vld [vmem:[%s4188_s26 + $0x1c0] sm:$0xff] }
 0x3ba   : > { %v2369_v14 = vmul.f32 0.2, %v2305_v9  ;;  %v2149_v15 = vadd.f32 %v2148_v11, %v4939_v40  ;;  %v2150_v16 = vpop.f32.mrb[113].mxu0 }
 0x3bb   : > { %v2370_v35 = vmul.f32 0.2, %v2306_v10  ;;  %v2151_v20 = vadd.f32 %v2150_v16, %v4942_v41  ;;  %2664 = vmatprep.mubr.f32.mxu1 %v2432_v13 }
 0x3bc   : > { %v2307_v21 = vadd.f32 %v2243_v12, %v2149_v15  ;;  %2665 = vmatmul.mubr.f32.gmra.mrb[94].mxu1 %v2431_v32  ;;  %v2433_v1 = vmax.f32 %v2305_v9, %v2369_v14  ;;  %v2254_v15 = vld [vmem:[%s4188_s26 + $0x1d8] sm:$0xff] }
 0x3bd   : > { %v2308_v22 = vadd.f32 %v2244_v17, %v2151_v20  ;;  %v2154_v23 = vpop.f32.mrb[114].mxu0  ;;  %v2434_v25 = vmax.f32 %v2306_v10, %v2370_v35  ;;  %v2253_v10 = vld [vmem:[%s4188_s26 + $0x1d0] sm:$0xff] }
 0x3be   : > { %v2371_v26 = vmul.f32 0.2, %v2307_v21  ;;  %v2155_v34 = vadd.f32 %v2154_v23, %v4939_v40  ;;  %v2156_v27 = vpop.f32.mrb[115].mxu0 }
 0x3bf   : > { %v2372_v30 = vmul.f32 0.2, %v2308_v22  ;;  %v2157_v33 = vadd.f32 %v2156_v27, %v4942_v41  ;;  %2669 = vmatprep.mubr.f32.mxu1 %v2434_v25 }
 0x3c0   : > { %v2309_v36 = vadd.f32 %v2245_v24, %v2155_v34  ;;  %2670 = vmatmul.mubr.f32.gmra.mrb[96].mxu1 %v2433_v1  ;;  %v2435_v45 = vmax.f32 %v2307_v21, %v2371_v26  ;;  %v2256_v34 = vld [vmem:[%s4188_s26 + $0x1e8] sm:$0xff] }
 0x3c1   : > { %v2310_v37 = vadd.f32 %v2246_v28, %v2157_v33  ;;  %v2160_v38 = vpop.f32.mrb[116].mxu0  ;;  %v2436_v18 = vmax.f32 %v2308_v22, %v2372_v30  ;;  %v2255_v22 = vld [vmem:[%s4188_s26 + $0x1e0] sm:$0xff] }
 0x3c2   : > { %v2373_v19 = vmul.f32 0.2, %v2309_v36  ;;  %v2161_v42 = vadd.f32 %v2160_v38, %v4939_v40  ;;  %v2162_v43 = vpop.f32.mrb[117].mxu0 }
 0x3c3   : > { %v2374_v46 = vmul.f32 0.2, %v2310_v37  ;;  %v2163_v47 = vadd.f32 %v2162_v43, %v4942_v41  ;;  %2674 = vmatprep.mubr.f32.mxu1 %v2436_v18 }
 0x3c4   : > { %v2311_v48 = vadd.f32 %v2247_v39, %v2161_v42  ;;  %2675 = vmatmul.mubr.f32.gmra.mrb[98].mxu1 %v2435_v45  ;;  %v2437_v55 = vmax.f32 %v2309_v36, %v2373_v19  ;;  %v2258_v42 = vld [vmem:[%s4188_s26 + $0x1f8] sm:$0xff] }
 0x3c5   : > { %v2312_v49 = vadd.f32 %v2248_v44, %v2163_v47  ;;  %v2166_v50 = vpop.f32.mrb[118].mxu0  ;;  %v2438_v52 = vmax.f32 %v2310_v37, %v2374_v46  ;;  %v2257_v37 = vld [vmem:[%s4188_s26 + $0x1f0] sm:$0xff]  ;;  %s3263_s26 = sshll.u32 %s4184_s19, 8  ;;  %s2820_s19 = ssub.s32 (%p5352_p1), 48, %s4208_s17 }
 0x3c6   : > { %v2375_v29 = vmul.f32 0.2, %v2311_v48  ;;  %v2167_v53 = vadd.f32 %v2166_v50, %v4939_v40  ;;  %v2168_v31 = vpop.f32.mrb[119].mxu0  ;;  %s5077_s27 = scalar_lea.vmem [#allocation10], %s3263_s26   ;;  %p2821_p3 = scmp.lt.s32.totalorder (%p5352_p1), %s2820_s19, 32 }
 0x3c7   : > { %v2376_v56 = vmul.f32 0.2, %v2312_v49  ;;  %v2169_v57 = vadd.f32 %v2168_v31, %v4942_v41  ;;  %2679 = vmatprep.mubr.f32.mxu1 %v2438_v52 }
 0x3c8   : > { %v2313_v58 = vadd.f32 %v2249_v51, %v2167_v53  ;;  %2680 = vmatmul.mubr.f32.gmra.mrb[100].mxu1 %v2437_v55  ;;  %v2439_v4 = vmax.f32 %v2311_v48, %v2375_v29 }
 0x3c9   : > { %v2314_v59 = vadd.f32 %v2250_v54, %v2169_v57  ;;  %v2172_v60 = vpop.f32.mrb[120].mxu0  ;;  %v2440_v62 = vmax.f32 %v2312_v49, %v2376_v56 }
 0x3ca   : > { %v2377_v63 = vmul.f32 0.2, %v2313_v58  ;;  %v2173_v0 = vadd.f32 %v2172_v60, %v4939_v40  ;;  %v2174_v2 = vpop.f32.mrb[121].mxu0 }
 0x3cb   : > { %v2378_v5 = vmul.f32 0.2, %v2314_v59  ;;  %v2175_v6 = vadd.f32 %v2174_v2, %v4942_v41  ;;  %2684 = vmatprep.mubr.f32.mxu1 %v2440_v62 }
 0x3cc   : > { %v2315_v7 = vadd.f32 %v2251_v61, %v2173_v0  ;;  %2685 = vmatmul.mubr.f32.gmra.mrb[102].mxu1 %v2439_v4  ;;  %v2441_v16 = vmax.f32 %v2313_v58, %v2377_v63 }
 0x3cd   : > { %v2316_v8 = vadd.f32 %v2252_v3, %v2175_v6  ;;  %v2178_v9 = vpop.f32.mrb[122].mxu0  ;;  %v2442_v11 = vmax.f32 %v2314_v59, %v2378_v5 }
 0x3ce   : > { %v2379_v12 = vmul.f32 0.2, %v2315_v7  ;;  %v2179_v13 = vadd.f32 %v2178_v9, %v4939_v40  ;;  %v2180_v14 = vpop.f32.mrb[123].mxu0 }
 0x3cf   : > { %v2380_v17 = vmul.f32 0.2, %v2316_v8  ;;  %v2181_v32 = vadd.f32 %v2180_v14, %v4942_v41  ;;  %2689 = vmatprep.mubr.f32.mxu1 %v2442_v11 }
 0x3d0   : > { %v2317_v35 = vadd.f32 %v2253_v10, %v2179_v13  ;;  %2690 = vmatmul.mubr.f32.gmra.mrb[104].mxu1 %v2441_v16  ;;  %v2443_v27 = vmax.f32 %v2315_v7, %v2379_v12 }
 0x3d1   : > { %v2318_v20 = vadd.f32 %v2254_v15, %v2181_v32  ;;  %v2184_v21 = vpop.f32.mrb[124].mxu0  ;;  %v2444_v23 = vmax.f32 %v2316_v8, %v2380_v17 }
 0x3d2   : > { %v2381_v24 = vmul.f32 0.2, %v2317_v35  ;;  %v2185_v25 = vadd.f32 %v2184_v21, %v4939_v40  ;;  %v2186_v26 = vpop.f32.mrb[125].mxu0 }
 0x3d3   : > { %v2382_v28 = vmul.f32 0.2, %v2318_v20  ;;  %v2187_v1 = vadd.f32 %v2186_v26, %v4942_v41  ;;  %2694 = vmatprep.mubr.f32.mxu1 %v2444_v23 }
 0x3d4   : > { %v2319_v30 = vadd.f32 %v2255_v22, %v2185_v25  ;;  %2695 = vmatmul.mubr.f32.gmra.mrb[106].mxu1 %v2443_v27  ;;  %v2445_v43 = vmax.f32 %v2317_v35, %v2381_v24 }
 0x3d5   : > { %v2320_v33 = vadd.f32 %v2256_v34, %v2187_v1  ;;  %v2190_v36 = vpop.f32.mrb[126].mxu0  ;;  %v2446_v38 = vmax.f32 %v2318_v20, %v2382_v28 }
 0x3d6   : > { %v2383_v39 = vmul.f32 0.2, %v2319_v30  ;;  %v2191_v18 = vadd.f32 %v2190_v36, %v4939_v40  ;;  %v2192_v19 = vpop.f32.mrb[127].mxu0  ;;  %v5072_v40 = vld [vmem:[#allocation2] ss:$0 sm:$0xff] }
 0x3d7   : > { %v2384_v44 = vmul.f32 0.2, %v2320_v33  ;;  %v2193_v45 = vadd.f32 %v2192_v19, %v4942_v41  ;;  %2699 = vmatprep.mubr.f32.mxu1 %v2446_v38 }
 0x3d8   : > { %v2321_v46 = vadd.f32 %v2257_v37, %v2191_v18  ;;  %2700 = vmatmul.mubr.f32.gmra.mrb[108].mxu1 %v2445_v43  ;;  %v2447_v50 = vmax.f32 %v2319_v30, %v2383_v39 }
 0x3d9   : > { %v2322_v47 = vadd.f32 %v2258_v42, %v2193_v45  ;;  %v2448_v48 = vmax.f32 %v2320_v33, %v2384_v44 }
 0x3da   : > { %v2385_v49 = vmul.f32 0.2, %v2321_v46 }
 0x3db   : > { %v2386_v51 = vmul.f32 0.2, %v2322_v47  ;;  %2704 = vmatprep.mubr.f32.mxu1 %v2448_v48 }
 0x3dc   : > { %2705 = vmatmul.mubr.f32.gmra.mrb[110].mxu1 %v2447_v50  ;;  %v2449_v29 = vmax.f32 %v2321_v46, %v2385_v49 }
 0x3dd   : > { %v2450_v52 = vmax.f32 %v2322_v47, %v2386_v51 }
 0x3df   : > { %2709 = vmatprep.mubr.f32.mxu1 %v2450_v52 }
 0x3e0   : > { %2710 = vmatmul.mubr.f32.gmra.mrb[112].mxu1 %v2449_v29 }
 0x437   : > { %v2556_v53 = vpop.f32.mrb[128].mxu0 }
 0x438   : > { %v2557_v41 = vadd.f32 %v5072_v40, %v2556_v53  ;;  %v2558_v31 = vpop.f32.mrb[129].mxu0 }
 0x43a   : > { %v2715_v54 = vmul.f32 0.2, %v2557_v41 }
 0x43b   : > { %v2561_v55 = vpop.f32.mrb[130].mxu0 }
 0x43c   : > { %v2747_v56 = vmax.f32 %v2557_v41, %v2715_v54  ;;  %v2562_v57 = vadd.f32 %v5072_v40, %v2561_v55  ;;  %v2563_v58 = vpop.f32.mrb[131].mxu0 }
 0x43e   : > { %2780 = vst.msk [vmem:[%s5077_s27] sm:$0xff] %vm2779_vm1, %v2747_v56  ;;  %v2716_v59 = vmul.f32 0.2, %v2562_v57 }
 0x43f   : > { %v2566_v60 = vpop.f32.mrb[132].mxu0 }
 0x440   : > { %v2748_v61 = vmax.f32 %v2562_v57, %v2716_v59  ;;  %v2567_v62 = vadd.f32 %v5072_v40, %v2566_v60  ;;  %v2568_v63 = vpop.f32.mrb[133].mxu0 }
 0x442   : > { %2781 = vst.msk [vmem:[%s5077_s27 + $0x8] sm:$0xff] %vm2779_vm1, %v2748_v61  ;;  %v2717_v0 = vmul.f32 0.2, %v2567_v62 }
 0x443   : > { %v2571_v2 = vpop.f32.mrb[134].mxu0 }
 0x444   : > { %v2749_v3 = vmax.f32 %v2567_v62, %v2717_v0  ;;  %v2572_v4 = vadd.f32 %v5072_v40, %v2571_v2  ;;  %v2573_v5 = vpop.f32.mrb[135].mxu0 }
 0x446   : > { %2782 = vst.msk [vmem:[%s5077_s27 + $0x10] sm:$0xff] %vm2779_vm1, %v2749_v3  ;;  %v2718_v6 = vmul.f32 0.2, %v2572_v4 }
 0x447   : > { %v2576_v7 = vpop.f32.mrb[136].mxu0 }
 0x448   : > { %v2750_v8 = vmax.f32 %v2572_v4, %v2718_v6  ;;  %v2577_v9 = vadd.f32 %v5072_v40, %v2576_v7  ;;  %v2578_v10 = vpop.f32.mrb[137].mxu0 }
 0x44a   : > { %2783 = vst.msk [vmem:[%s5077_s27 + $0x18] sm:$0xff] %vm2779_vm1, %v2750_v8  ;;  %v2719_v11 = vmul.f32 0.2, %v2577_v9 }
 0x44b   : > { %v2581_v12 = vpop.f32.mrb[138].mxu0 }
 0x44c   : > { %v2751_v13 = vmax.f32 %v2577_v9, %v2719_v11  ;;  %v2582_v14 = vadd.f32 %v5072_v40, %v2581_v12  ;;  %v2583_v15 = vpop.f32.mrb[139].mxu0 }
 0x44e   : > { %2784 = vst.msk [vmem:[%s5077_s27 + $0x20] sm:$0xff] %vm2779_vm1, %v2751_v13  ;;  %v2720_v16 = vmul.f32 0.2, %v2582_v14 }
 0x44f   : > { %v2586_v17 = vpop.f32.mrb[140].mxu0 }
 0x450   : > { %v2752_v32 = vmax.f32 %v2582_v14, %v2720_v16  ;;  %v2587_v35 = vadd.f32 %v5072_v40, %v2586_v17  ;;  %v2588_v20 = vpop.f32.mrb[141].mxu0 }
 0x452   : > { %2785 = vst.msk [vmem:[%s5077_s27 + $0x28] sm:$0xff] %vm2779_vm1, %v2752_v32  ;;  %v2721_v21 = vmul.f32 0.2, %v2587_v35 }
 0x453   : > { %v2591_v22 = vpop.f32.mrb[64].mxu1 }
 0x454   : > { %v2753_v23 = vmax.f32 %v2587_v35, %v2721_v21  ;;  %v2592_v24 = vadd.f32 %v5072_v40, %v2591_v22  ;;  %v2593_v25 = vpop.f32.mrb[65].mxu1 }
 0x456   : > { %2786 = vst.msk [vmem:[%s5077_s27 + $0x30] sm:$0xff] %vm2779_vm1, %v2753_v23  ;;  %v2722_v26 = vmul.f32 0.2, %v2592_v24 }
 0x457   : > { %v2596_v34 = vpop.f32.mrb[66].mxu1 }
 0x458   : > { %v2754_v27 = vmax.f32 %v2592_v24, %v2722_v26  ;;  %v2597_v28 = vadd.f32 %v5072_v40, %v2596_v34  ;;  %v2598_v1 = vpop.f32.mrb[67].mxu1 }
 0x45a   : > { %2787 = vst.msk [vmem:[%s5077_s27 + $0x38] sm:$0xff] %vm2779_vm1, %v2754_v27  ;;  %v2723_v30 = vmul.f32 0.2, %v2597_v28 }
 0x45b   : > { %v2601_v33 = vpop.f32.mrb[68].mxu1 }
 0x45c   : > { %v2755_v36 = vmax.f32 %v2597_v28, %v2723_v30  ;;  %v2602_v37 = vadd.f32 %v5072_v40, %v2601_v33  ;;  %v2603_v38 = vpop.f32.mrb[69].mxu1 }
 0x45e   : > { %2788 = vst.msk [vmem:[%s5077_s27 + $0x40] sm:$0xff] %vm2779_vm1, %v2755_v36  ;;  %v2724_v39 = vmul.f32 0.2, %v2602_v37 }
 0x45f   : > { %v2606_v18 = vpop.f32.mrb[70].mxu1 }
 0x460   : > { %v2756_v19 = vmax.f32 %v2602_v37, %v2724_v39  ;;  %v2607_v42 = vadd.f32 %v5072_v40, %v2606_v18  ;;  %v2608_v43 = vpop.f32.mrb[71].mxu1 }
 0x462   : > { %2789 = vst.msk [vmem:[%s5077_s27 + $0x48] sm:$0xff] %vm2779_vm1, %v2756_v19  ;;  %v2725_v44 = vmul.f32 0.2, %v2607_v42 }
 0x463   : > { %v2611_v45 = vpop.f32.mrb[72].mxu1 }
 0x464   : > { %v2757_v46 = vmax.f32 %v2607_v42, %v2725_v44  ;;  %v2612_v47 = vadd.f32 %v5072_v40, %v2611_v45  ;;  %v2613_v48 = vpop.f32.mrb[73].mxu1 }
 0x466   : > { %2790 = vst.msk [vmem:[%s5077_s27 + $0x50] sm:$0xff] %vm2779_vm1, %v2757_v46  ;;  %v2726_v49 = vmul.f32 0.2, %v2612_v47 }
 0x467   : > { %v2616_v50 = vpop.f32.mrb[74].mxu1 }
 0x468   : > { %v2758_v51 = vmax.f32 %v2612_v47, %v2726_v49  ;;  %v2617_v52 = vadd.f32 %v5072_v40, %v2616_v50  ;;  %v2618_v29 = vpop.f32.mrb[75].mxu1 }
 0x46a   : > { %2791 = vst.msk [vmem:[%s5077_s27 + $0x58] sm:$0xff] %vm2779_vm1, %v2758_v51  ;;  %v2727_v53 = vmul.f32 0.2, %v2617_v52 }
 0x46b   : > { %v2621_v41 = vpop.f32.mrb[76].mxu1 }
 0x46c   : > { %v2759_v31 = vmax.f32 %v2617_v52, %v2727_v53  ;;  %v2622_v54 = vadd.f32 %v5072_v40, %v2621_v41  ;;  %v2623_v55 = vpop.f32.mrb[77].mxu1 }
 0x46e   : > { %2792 = vst.msk [vmem:[%s5077_s27 + $0x60] sm:$0xff] %vm2779_vm1, %v2759_v31  ;;  %v2728_v56 = vmul.f32 0.2, %v2622_v54 }
 0x46f   : > { %v2626_v57 = vpop.f32.mrb[78].mxu1 }
 0x470   : > { %v2760_v58 = vmax.f32 %v2622_v54, %v2728_v56  ;;  %v2627_v59 = vadd.f32 %v5072_v40, %v2626_v57  ;;  %v2628_v60 = vpop.f32.mrb[79].mxu1 }
 0x472   : > { %2793 = vst.msk [vmem:[%s5077_s27 + $0x68] sm:$0xff] %vm2779_vm1, %v2760_v58  ;;  %v2729_v61 = vmul.f32 0.2, %v2627_v59 }
 0x473   : > { %v2631_v62 = vpop.f32.mrb[80].mxu1 }
 0x474   : > { %v2761_v63 = vmax.f32 %v2627_v59, %v2729_v61  ;;  %v2632_v0 = vadd.f32 %v5072_v40, %v2631_v62  ;;  %v2633_v2 = vpop.f32.mrb[81].mxu1 }
 0x476   : > { %2794 = vst.msk [vmem:[%s5077_s27 + $0x70] sm:$0xff] %vm2779_vm1, %v2761_v63  ;;  %v2730_v3 = vmul.f32 0.2, %v2632_v0 }
 0x477   : > { %v2636_v4 = vpop.f32.mrb[82].mxu1 }
 0x478   : > { %v2762_v5 = vmax.f32 %v2632_v0, %v2730_v3  ;;  %v2637_v6 = vadd.f32 %v5072_v40, %v2636_v4  ;;  %v2638_v7 = vpop.f32.mrb[83].mxu1 }
 0x47a   : > { %2795 = vst.msk [vmem:[%s5077_s27 + $0x78] sm:$0xff] %vm2779_vm1, %v2762_v5  ;;  %v2731_v8 = vmul.f32 0.2, %v2637_v6 }
 0x47b   : > { %v2641_v9 = vpop.f32.mrb[84].mxu1 }
 0x47c   : > { %v2763_v10 = vmax.f32 %v2637_v6, %v2731_v8  ;;  %v2642_v11 = vadd.f32 %v5072_v40, %v2641_v9  ;;  %v2643_v12 = vpop.f32.mrb[85].mxu1 }
 0x47e   : > { %2796 = vst.msk [vmem:[%s5077_s27 + $0x80] sm:$0xff] %vm2779_vm1, %v2763_v10  ;;  %v2732_v13 = vmul.f32 0.2, %v2642_v11 }
 0x47f   : > { %v2646_v14 = vpop.f32.mrb[86].mxu1 }
 0x480   : > { %v2764_v15 = vmax.f32 %v2642_v11, %v2732_v13  ;;  %v2647_v16 = vadd.f32 %v5072_v40, %v2646_v14  ;;  %v2648_v17 = vpop.f32.mrb[87].mxu1 }
 0x482   : > { %2797 = vst.msk [vmem:[%s5077_s27 + $0x88] sm:$0xff] %vm2779_vm1, %v2764_v15  ;;  %v2733_v32 = vmul.f32 0.2, %v2647_v16 }
 0x483   : > { %v2651_v35 = vpop.f32.mrb[88].mxu1 }
 0x484   : > { %v2765_v20 = vmax.f32 %v2647_v16, %v2733_v32  ;;  %v2652_v21 = vadd.f32 %v5072_v40, %v2651_v35  ;;  %v2653_v22 = vpop.f32.mrb[89].mxu1 }
 0x486   : > { %2798 = vst.msk [vmem:[%s5077_s27 + $0x90] sm:$0xff] %vm2779_vm1, %v2765_v20  ;;  %v2734_v23 = vmul.f32 0.2, %v2652_v21 }
 0x487   : > { %v2656_v24 = vpop.f32.mrb[90].mxu1 }
 0x488   : > { %v2766_v25 = vmax.f32 %v2652_v21, %v2734_v23  ;;  %v2657_v26 = vadd.f32 %v5072_v40, %v2656_v24  ;;  %v2658_v34 = vpop.f32.mrb[91].mxu1 }
 0x48a   : > { %2799 = vst.msk [vmem:[%s5077_s27 + $0x98] sm:$0xff] %vm2779_vm1, %v2766_v25  ;;  %v2735_v27 = vmul.f32 0.2, %v2657_v26 }
 0x48b   : > { %v2661_v28 = vpop.f32.mrb[92].mxu1 }
 0x48c   : > { %v2767_v1 = vmax.f32 %v2657_v26, %v2735_v27  ;;  %v2662_v30 = vadd.f32 %v5072_v40, %v2661_v28  ;;  %v2663_v33 = vpop.f32.mrb[93].mxu1 }
 0x48e   : > { %2800 = vst.msk [vmem:[%s5077_s27 + $0xa0] sm:$0xff] %vm2779_vm1, %v2767_v1  ;;  %v2736_v36 = vmul.f32 0.2, %v2662_v30 }
 0x48f   : > { %v2666_v37 = vpop.f32.mrb[94].mxu1 }
 0x490   : > { %v2768_v38 = vmax.f32 %v2662_v30, %v2736_v36  ;;  %v2667_v39 = vadd.f32 %v5072_v40, %v2666_v37  ;;  %v2668_v18 = vpop.f32.mrb[95].mxu1 }
 0x492   : > { %2801 = vst.msk [vmem:[%s5077_s27 + $0xa8] sm:$0xff] %vm2779_vm1, %v2768_v38  ;;  %v2737_v19 = vmul.f32 0.2, %v2667_v39 }
 0x493   : > { %v2671_v42 = vpop.f32.mrb[96].mxu1 }
 0x494   : > { %v2769_v43 = vmax.f32 %v2667_v39, %v2737_v19  ;;  %v2672_v44 = vadd.f32 %v5072_v40, %v2671_v42  ;;  %v2673_v45 = vpop.f32.mrb[97].mxu1 }
 0x496   : > { %2802 = vst.msk [vmem:[%s5077_s27 + $0xb0] sm:$0xff] %vm2779_vm1, %v2769_v43  ;;  %v2738_v46 = vmul.f32 0.2, %v2672_v44 }
 0x497   : > { %v2676_v47 = vpop.f32.mrb[98].mxu1 }
 0x498   : > { %v2770_v48 = vmax.f32 %v2672_v44, %v2738_v46  ;;  %v2677_v49 = vadd.f32 %v5072_v40, %v2676_v47  ;;  %v2678_v50 = vpop.f32.mrb[99].mxu1 }
 0x49a   : > { %2803 = vst.msk [vmem:[%s5077_s27 + $0xb8] sm:$0xff] %vm2779_vm1, %v2770_v48  ;;  %v2739_v51 = vmul.f32 0.2, %v2677_v49 }
 0x49b   : > { %v2681_v52 = vpop.f32.mrb[100].mxu1 }
 0x49c   : > { %v2771_v29 = vmax.f32 %v2677_v49, %v2739_v51  ;;  %v2682_v53 = vadd.f32 %v5072_v40, %v2681_v52  ;;  %v2683_v41 = vpop.f32.mrb[101].mxu1 }
 0x49e   : > { %2804 = vst.msk [vmem:[%s5077_s27 + $0xc0] sm:$0xff] %vm2779_vm1, %v2771_v29  ;;  %v2740_v31 = vmul.f32 0.2, %v2682_v53 }
 0x49f   : > { %v2686_v54 = vpop.f32.mrb[102].mxu1 }
 0x4a0   : > { %v2772_v55 = vmax.f32 %v2682_v53, %v2740_v31  ;;  %v2687_v56 = vadd.f32 %v5072_v40, %v2686_v54  ;;  %v2688_v57 = vpop.f32.mrb[103].mxu1 }
 0x4a2   : > { %2805 = vst.msk [vmem:[%s5077_s27 + $0xc8] sm:$0xff] %vm2779_vm1, %v2772_v55  ;;  %v2741_v58 = vmul.f32 0.2, %v2687_v56 }
 0x4a3   : > { %v2691_v59 = vpop.f32.mrb[104].mxu1 }
 0x4a4   : > { %v2773_v60 = vmax.f32 %v2687_v56, %v2741_v58  ;;  %v2692_v61 = vadd.f32 %v5072_v40, %v2691_v59  ;;  %v2693_v62 = vpop.f32.mrb[105].mxu1 }
 0x4a6   : > { %2806 = vst.msk [vmem:[%s5077_s27 + $0xd0] sm:$0xff] %vm2779_vm1, %v2773_v60  ;;  %v2742_v63 = vmul.f32 0.2, %v2692_v61 }
 0x4a7   : > { %v2696_v0 = vpop.f32.mrb[106].mxu1 }
 0x4a8   : > { %v2774_v2 = vmax.f32 %v2692_v61, %v2742_v63  ;;  %v2697_v3 = vadd.f32 %v5072_v40, %v2696_v0  ;;  %v2698_v4 = vpop.f32.mrb[107].mxu1 }
 0x4aa   : > { %2807 = vst.msk [vmem:[%s5077_s27 + $0xd8] sm:$0xff] %vm2779_vm1, %v2774_v2  ;;  %v2743_v5 = vmul.f32 0.2, %v2697_v3 }
 0x4ab   : > { %v2701_v6 = vpop.f32.mrb[108].mxu1 }
 0x4ac   : > { %v2775_v7 = vmax.f32 %v2697_v3, %v2743_v5  ;;  %v2702_v8 = vadd.f32 %v5072_v40, %v2701_v6  ;;  %v2703_v9 = vpop.f32.mrb[109].mxu1 }
 0x4ae   : > { %2808 = vst.msk [vmem:[%s5077_s27 + $0xe0] sm:$0xff] %vm2779_vm1, %v2775_v7  ;;  %v2744_v10 = vmul.f32 0.2, %v2702_v8 }
 0x4af   : > { %v2706_v11 = vpop.f32.mrb[110].mxu1 }
 0x4b0   : > { %v2776_v12 = vmax.f32 %v2702_v8, %v2744_v10  ;;  %v2707_v13 = vadd.f32 %v5072_v40, %v2706_v11  ;;  %v2708_v14 = vpop.f32.mrb[111].mxu1 }
 0x4b2   : > { %2809 = vst.msk [vmem:[%s5077_s27 + $0xe8] sm:$0xff] %vm2779_vm1, %v2776_v12  ;;  %v2745_v15 = vmul.f32 0.2, %v2707_v13 }
 0x4b3   : > { %v2711_v16 = vpop.f32.mrb[112].mxu1 }
 0x4b4   : > { %v2777_v17 = vmax.f32 %v2707_v13, %v2745_v15  ;;  %v2712_v32 = vadd.f32 %v5072_v40, %v2711_v16  ;;  %v2713_v35 = vpop.f32.mrb[113].mxu1  ;;  %2818 = sbr.rel (!%p5352_p1) target bundleno = 1267 (0x4f3), region = 88 }
 0x4b6   : > { %2810 = vst.msk [vmem:[%s5077_s27 + $0xf0] sm:$0xff] %vm2779_vm1, %v2777_v17  ;;  %v2746_v20 = vmul.f32 0.2, %v2712_v32 }
 0x4b8   : > { %v2778_v21 = vmax.f32 %v2712_v32, %v2746_v20 }
 0x4ba   : > { %2811 = vst.msk [vmem:[%s5077_s27 + $0xf8] sm:$0xff] %vm2779_vm1, %v2778_v21 }
 0x4bb   : > { %s5371_s19 = smov (!%p2821_p3, %s2820_s19), 32 }
 0x4bc   : > { %s3301_s28 = sshll.u32 %s5371_s19, 7 }
 0x4bd   : > { %p3304_p6 = scmp.eq.s32.totalorder %s3301_s28, 0 }
 0x4be   : > { %s5186_s20 = sshrl.u32 (!%p3304_p6), %s5371_s19, 5 }
 0x4bf   : > { %2829 = sbr.rel (%p3304_p6) target bundleno = 1267 (0x4f3), region = 92  ;;  %p3305_p9 = scmp.le.s32.totalorder (!%p3304_p6), %s5186_s20, 0 }
 0x4c6   : > { %3147 = sbr.rel (%p3305_p9) target bundleno = 1246 (0x4de), region = 193  ;;  %s5354_s11 = smov (!%p3305_p9), %s5180_s13 }
 0x4c7   : > { %s5355_s15 = smov (!%p3305_p9), %s5077_s27  ;;  %s5195_s17 = smov (!%p3305_p9), 0  }
 0x4c8   : > { %s5197_s21 = smov (!%p3305_p9), 0  }
 0x4cd LB: >> { %v2953_v40 = vld [vmem:[%s3858_s15] sm:$0xff]  ;;  %v2955_v22 = vld [vmem:[%s3858_s15 + $0x8] sm:$0xff]  ;;  %v2957_v23 = vld [vmem:[%s3858_s15 + $0x10] sm:$0xff]  ;;  %s3017_s18 = sadd.s32 1, %s3862_s17  ;;  %s2947_s21 = sadd.s32 1, %s3866_s21   ;;  %s3866_s21 = sphi %s5197_s21, %s2947_s21   ;;  %s3862_s17 = sphi %s5195_s17, %s5358_s17   ;;  %s3858_s15 = sphi %s5355_s15, %s5357_s15   ;;  %s3854_s11 = sphi %s5354_s11, %s5356_s11  }
 0x4ce   : >> { %2954 = vst [vmem:[%s3854_s11] sm:$0xff] %v2953_v40  ;;  %2956 = vst [vmem:[%s3854_s11 + $0x8] sm:$0xff] %v2955_v22  ;;  %v2959_v24 = vld [vmem:[%s3858_s15 + $0x18] sm:$0xff]  ;;  %v2961_v25 = vld [vmem:[%s3858_s15 + $0x20] sm:$0xff]  ;;  %p3018_p7 = scmp.ge.s32.totalorder %s3017_s18, %s5186_s20  ;;  %p2946_p12 = scmp.ge.s32.totalorder %s2947_s21, %s5186_s20 }
 0x4cf   : >> { %2958 = vst [vmem:[%s3854_s11 + $0x10] sm:$0xff] %v2957_v23  ;;  %v2963_v26 = vld [vmem:[%s3858_s15 + $0x28] sm:$0xff]  ;;  %2960 = vst [vmem:[%s3854_s11 + $0x18] sm:$0xff] %v2959_v24  ;;  %v2965_v34 = vld [vmem:[%s3858_s15 + $0x30] sm:$0xff] }
 0x4d0   : >> { %2962 = vst [vmem:[%s3854_s11 + $0x20] sm:$0xff] %v2961_v25  ;;  %2964 = vst [vmem:[%s3854_s11 + $0x28] sm:$0xff] %v2963_v26  ;;  %v2967_v27 = vld [vmem:[%s3858_s15 + $0x38] sm:$0xff]  ;;  %v2969_v28 = vld [vmem:[%s3858_s15 + $0x40] sm:$0xff]  ;;  %s5373_s18 = smov (%p3018_p7, %s3017_s18), 0 }
 0x4d1   : >> { %2966 = vst [vmem:[%s3854_s11 + $0x30] sm:$0xff] %v2965_v34  ;;  %2968 = vst [vmem:[%s3854_s11 + $0x38] sm:$0xff] %v2967_v27  ;;  %v2971_v1 = vld [vmem:[%s3858_s15 + $0x48] sm:$0xff]  ;;  %v2973_v30 = vld [vmem:[%s3858_s15 + $0x50] sm:$0xff]  ;;  %s3306_s23 = sshll.u32 %s5373_s18, 8  ;;  %s5358_s17 = smov %s5373_s18 }
 0x4d2   : >> { %2970 = vst [vmem:[%s3854_s11 + $0x40] sm:$0xff] %v2969_v28  ;;  %v2975_v33 = vld [vmem:[%s3858_s15 + $0x58] sm:$0xff]  ;;  %2972 = vst [vmem:[%s3854_s11 + $0x48] sm:$0xff] %v2971_v1  ;;  %v2977_v36 = vld [vmem:[%s3858_s15 + $0x60] sm:$0xff]  ;;  %s5253_s16 = scalar_lea.vmem %s5077_s27, %s3306_s23 [#allocation10]   ;;  %s3023_s14 = scalar_lea.vmem %s5180_s13, %s3306_s23  }
 0x4d3   : >> { %2974 = vst [vmem:[%s3854_s11 + $0x50] sm:$0xff] %v2973_v30  ;;  %2976 = vst [vmem:[%s3854_s11 + $0x58] sm:$0xff] %v2975_v33  ;;  %v2979_v37 = vld [vmem:[%s3858_s15 + $0x68] sm:$0xff]  ;;  %v2981_v38 = vld [vmem:[%s3858_s15 + $0x70] sm:$0xff] }
 0x4d4   : >> { %2978 = vst [vmem:[%s3854_s11 + $0x60] sm:$0xff] %v2977_v36  ;;  %2980 = vst [vmem:[%s3854_s11 + $0x68] sm:$0xff] %v2979_v37  ;;  %v2983_v39 = vld [vmem:[%s3858_s15 + $0x78] sm:$0xff]  ;;  %v2985_v18 = vld [vmem:[%s3858_s15 + $0x80] sm:$0xff] }
 0x4d5   : >> { %2982 = vst [vmem:[%s3854_s11 + $0x70] sm:$0xff] %v2981_v38  ;;  %v2987_v19 = vld [vmem:[%s3858_s15 + $0x88] sm:$0xff]  ;;  %2984 = vst [vmem:[%s3854_s11 + $0x78] sm:$0xff] %v2983_v39  ;;  %v2989_v42 = vld [vmem:[%s3858_s15 + $0x90] sm:$0xff] }
 0x4d6   : >> { %2986 = vst [vmem:[%s3854_s11 + $0x80] sm:$0xff] %v2985_v18  ;;  %2988 = vst [vmem:[%s3854_s11 + $0x88] sm:$0xff] %v2987_v19  ;;  %v2991_v43 = vld [vmem:[%s3858_s15 + $0x98] sm:$0xff]  ;;  %v2993_v44 = vld [vmem:[%s3858_s15 + $0xa0] sm:$0xff] }
 0x4d7   : >> { %2990 = vst [vmem:[%s3854_s11 + $0x90] sm:$0xff] %v2989_v42  ;;  %2992 = vst [vmem:[%s3854_s11 + $0x98] sm:$0xff] %v2991_v43  ;;  %v2995_v45 = vld [vmem:[%s3858_s15 + $0xa8] sm:$0xff]  ;;  %v2997_v46 = vld [vmem:[%s3858_s15 + $0xb0] sm:$0xff]  ;;  %2949 = sbr.rel (!%p2946_p12) target bundleno = 1229 (0x4cd), region = 199 }
 0x4d8   : >> { %2994 = vst [vmem:[%s3854_s11 + $0xa0] sm:$0xff] %v2993_v44  ;;  %v2999_v47 = vld [vmem:[%s3858_s15 + $0xb8] sm:$0xff]  ;;  %2996 = vst [vmem:[%s3854_s11 + $0xa8] sm:$0xff] %v2995_v45  ;;  %v3001_v48 = vld [vmem:[%s3858_s15 + $0xc0] sm:$0xff] }
 0x4d9   : >> { %2998 = vst [vmem:[%s3854_s11 + $0xb0] sm:$0xff] %v2997_v46  ;;  %3000 = vst [vmem:[%s3854_s11 + $0xb8] sm:$0xff] %v2999_v47  ;;  %v3003_v49 = vld [vmem:[%s3858_s15 + $0xc8] sm:$0xff]  ;;  %v3005_v50 = vld [vmem:[%s3858_s15 + $0xd0] sm:$0xff] }
 0x4da   : >> { %3002 = vst [vmem:[%s3854_s11 + $0xc0] sm:$0xff] %v3001_v48  ;;  %3004 = vst [vmem:[%s3854_s11 + $0xc8] sm:$0xff] %v3003_v49  ;;  %v3007_v51 = vld [vmem:[%s3858_s15 + $0xd8] sm:$0xff]  ;;  %v3009_v52 = vld [vmem:[%s3858_s15 + $0xe0] sm:$0xff] }
 0x4db   : >> { %3006 = vst [vmem:[%s3854_s11 + $0xd0] sm:$0xff] %v3005_v50  ;;  %v3011_v29 = vld [vmem:[%s3858_s15 + $0xe8] sm:$0xff]  ;;  %3008 = vst [vmem:[%s3854_s11 + $0xd8] sm:$0xff] %v3007_v51  ;;  %v3013_v53 = vld [vmem:[%s3858_s15 + $0xf0] sm:$0xff] }
 0x4dc   : >> { %3010 = vst [vmem:[%s3854_s11 + $0xe0] sm:$0xff] %v3009_v52  ;;  %3012 = vst [vmem:[%s3854_s11 + $0xe8] sm:$0xff] %v3011_v29  ;;  %v3015_v41 = vld [vmem:[%s3858_s15 + $0xf8] sm:$0xff]  ;;  %s5357_s15 = smov %s5253_s16 }
 0x4dd   : >> { %3014 = vst [vmem:[%s3854_s11 + $0xf0] sm:$0xff] %v3013_v53  ;;  %3016 = vst [vmem:[%s3854_s11 + $0xf8] sm:$0xff] %v3015_v41  ;;  %s5356_s11 = smov %s3023_s14 }
 0x4de PF: > { %s5294_s30 = sand.u32 31, %s5371_s19   ;;  %s3326_s12 = sshll.u32 %s5186_s20, 8 }
 0x4df   : > { %s3028_s26 = scalar_lea.vmem %s5077_s27, %s3326_s12 [#allocation10]   ;;  %s3030_s8 = scalar_lea.vmem %s5180_s13, %s3326_s12  }
 0x4e0   : > { %p3311_p0 = scmp.le.s32.totalorder %s5294_s30, 0 }
 0x4e1   : > { %s3868_s22 = smov (!%p3311_p0), %s3030_s8   ;;  %s3872_s29 = smov (!%p3311_p0), %s3028_s26  }
 0x4e2   : > { %3161 = sbr.rel (%p3311_p0) target bundleno = 1267 (0x4f3), region = 204  ;;  %s3876_s0 = smov (!%p3311_p0), 0  }
 0x4e3   : > { %s3880_s28 = smov (!%p3311_p0), 0  }
 0x4e9 LB: >> { %v3040_v31 = vld [vmem:[%s3874_s29] sm:$0xff]  ;;  %s3042_s19 = sadd.s32 1, %s3878_s0  ;;  %s3034_s28 = sadd.s32 1, %s3882_s28   ;;  %s3882_s28 = sphi %s3880_s28, %s3034_s28   ;;  %s3878_s0 = sphi %s3876_s0, %s3877_s0   ;;  %s3874_s29 = sphi %s3872_s29, %s3047_s29   ;;  %s3870_s22 = sphi %s3868_s22, %s3048_s22  }
 0x4ea   : >> { %3041 = vst [vmem:[%s3870_s22] sm:$0xff] %v3040_v31  ;;  %p3043_p2 = scmp.ge.s32.totalorder %s3042_s19, %s5294_s30  ;;  %p3033_p8 = scmp.ge.s32.totalorder %s3034_s28, %s5294_s30 }
 0x4ec   : >> { %s5375_s19 = smov (%p3043_p2, %s3042_s19), 0  ;;  %3036 = sbr.rel (!%p3033_p8) target bundleno = 1257 (0x4e9), region = 210 }
 0x4ed   : >> { %s3312_s27 = sshll.u32 %s5375_s19, 3  ;;  %s3877_s0 = smov %s5375_s19  }
 0x4ee   : >> { %s3047_s29 = scalar_lea.vmem %s3028_s26, %s3312_s27 [#allocation10]   ;;  %s3048_s22 = scalar_lea.vmem %s3030_s8, %s3312_s27  }
 0x4f3 PF: > { %s5359_s26 = sld [smem:[#allocation14_spill]]  ;;  %s5360_s13 = sld [smem:[#allocation15_spill]] }
 0x4f4   : > { %s5361_s23 = smov %s3842_s24  ;;  %s5362_s24 = smov %s3846_s25 }
 0x4f9   : > { %p28_p4 = scmp.ge.s32.totalorder %s5359_s26, 4   ;;  %s5363_s25 = smov %s5360_s13 }
 0x4fb   :  { %30 = sbr.rel (!%p28_p4) target bundleno = 10 (0xa), region = 221 }
 0x502   :  { %3064 = vsyncpa [#allocation4], 1 }
 0x503   :  { %3066 = vsyncpa [#allocation4 + $0x1], 1 }
 0x504   :  { %3067 = vsyncpa [#allocation6], 1 }
 0x505   :  { %3069 = vsyncpa [#allocation6 + $0x1], 1 }
 0x506   :  { %3070 = vsyncpa [#allocation9], 1 }

</bundles_post_ra>
